<compile_context>
chip_gen: v6e
topology: v6e:2x2x1
jax: 0.10.0
libtpu: 0.0.40
codegen_flags: <defaults>
</compile_context>

<pallas_src>
import functools
import math

import jax
import jax.numpy as jnp
from jax.experimental import pallas as pl
from jax.experimental.pallas import tpu as pltpu  # noqa: F401  (TPU backend)


# ----------------------------------------------------------------------------
# Model constants
# ----------------------------------------------------------------------------
NET_DIM = 32
HEADS = 4
DEC_LAYERS = 2
N_WORDS = 40
DIM_FF = NET_DIM << 1


# ----------------------------------------------------------------------------
# Pallas kernels
# ----------------------------------------------------------------------------
def _encode_kernel(mol_ref, w1_ref, b1_ref, rxn_ref, w2_ref, b2_ref,
                   mol_o_ref, rxn_o_ref):
    # linear1 and linear2 of the encoder fused into one launch.
    mol_o_ref[...] = (jnp.dot(mol_ref[...], w1_ref[...],
                              preferred_element_type=jnp.float32) + b1_ref[...])
    rxn_o_ref[...] = (jnp.dot(rxn_ref[...], w2_ref[...],
                              preferred_element_type=jnp.float32) + b2_ref[...])


def pallas_encode_linears(mol, w1, b1, rxn, w2, b2):
    return pl.pallas_call(
        _encode_kernel,
        out_shape=(jax.ShapeDtypeStruct((mol.shape[0], w1.shape[1]), jnp.float32),
                   jax.ShapeDtypeStruct((rxn.shape[0], w2.shape[1]), jnp.float32)),
    )(mol.astype(jnp.float32), w1, b1.reshape(1, -1),
      rxn.astype(jnp.float32), w2, b2.reshape(1, -1))


def _linear_kernel(x_ref, w_ref, b_ref, o_ref, *, relu):
    y = jnp.dot(x_ref[...], w_ref[...], preferred_element_type=jnp.float32)
    y = y + b_ref[...]
    if relu:
        y = jnp.maximum(y, 0.0)
    o_ref[...] = y


def pallas_linear(x, w, b, relu=False):
    M, _ = x.shape
    N = w.shape[1]
    return pl.pallas_call(
        functools.partial(_linear_kernel, relu=relu),
        out_shape=jax.ShapeDtypeStruct((M, N), jnp.float32),
    )(x.astype(jnp.float32), w, b.reshape(1, N))


def _ln_rows(x, g, b, eps=1e-5):
    mu = jnp.mean(x, axis=-1, keepdims=True)
    var = jnp.mean((x - mu) ** 2, axis=-1, keepdims=True)
    return (x - mu) * jax.lax.rsqrt(var + eps) * g + b


def _decoder_kernel(seq_ref, pe_ref, mask_ref,
                    wqkv_ref, bqkv_ref, wo_ref, bo_ref,
                    w1_ref, b1_ref, w2_ref, b2_ref,
                    ln1g_ref, ln1b_ref, ln2g_ref, ln2b_ref,
                    o1w_ref, o1b_ref, o2w_ref, o2b_ref,
                    out_ref, *, num_layers, heads):
    B, S, D = seq_ref.shape
    Dh = D // heads
    scale = 1.0 / math.sqrt(Dh)

    # additive mask: (S,S) broadcast across batch, or (B,S,S) with key padding
    mask = mask_ref[...]
    mask_b = mask[None] if mask.ndim == 2 else mask

    # positional encoding add, then flatten to (B*S, D) rows for the linears
    h2 = (seq_ref[...] + pe_ref[...][None, :, :]).reshape(B * S, D)

    for l in range(num_layers):                     # static unroll
        # --- self-attention (all heads inside this kernel, no grid) ---------
        qkv = (jnp.dot(h2, wqkv_ref[l], preferred_element_type=jnp.float32)
               + bqkv_ref[l])                       # (B*S, 3D)
        q3 = (qkv[:, 0 * D:1 * D] * scale).reshape(B, S, D)   # scale folded in q
        k3 = qkv[:, 1 * D:2 * D].reshape(B, S, D)
        v3 = qkv[:, 2 * D:3 * D].reshape(B, S, D)

        wo_l = wo_ref[l]                            # (D, D)
        ao = bo_ref[l]                              # (1, D), broadcasts on first add
        for hh in range(heads):                     # static unroll over heads
            lo, hi = hh * Dh, (hh + 1) * Dh
            s = jnp.einsum('bqd,bkd->bqk', q3[:, :, lo:hi], k3[:, :, lo:hi],
                           preferred_element_type=jnp.float32)   # (B, S, S)
            s = s + mask_b
            m = jnp.max(s, axis=-1, keepdims=True)
            p = jnp.exp(s - m)
            denom = jnp.maximum(jnp.sum(p, axis=-1, keepdims=True), 1e-20)
            p = p * pl.reciprocal(denom, approx=True)
            oh = jnp.einsum('bqk,bkd->bqd', p, v3[:, :, lo:hi],
                            preferred_element_type=jnp.float32)  # (B, S, Dh)
            # concat(heads) @ Wo  ==  sum_h  oh @ Wo[h*Dh:(h+1)*Dh, :]
            ao = ao + jnp.dot(oh.reshape(B * S, Dh), wo_l[lo:hi, :],
                              preferred_element_type=jnp.float32)

        h2 = _ln_rows(h2 + ao, ln1g_ref[l], ln1b_ref[l])          # residual + LN1

        # --- feed-forward ----------------------------------------------------
        ff = jnp.maximum(jnp.dot(h2, w1_ref[l],
                                 preferred_element_type=jnp.float32) + b1_ref[l],
                         0.0)
        ff = jnp.dot(ff, w2_ref[l], preferred_element_type=jnp.float32) + b2_ref[l]
        h2 = _ln_rows(h2 + ff, ln2g_ref[l], ln2b_ref[l])          # residual + LN2

    # --- out_layer: Linear -> ReLU -> (Dropout=id) -> Linear -----------------
    o = jnp.maximum(jnp.dot(h2, o1w_ref[...],
                            preferred_element_type=jnp.float32) + o1b_ref[...],
                    0.0)
    o = jnp.dot(o, o2w_ref[...], preferred_element_type=jnp.float32) + o2b_ref[...]
    out_ref[...] = o.reshape(B, S, -1)


def pallas_fused_decoder(seq, pe, mask, layers, out1_w, out1_b, out2_w, out2_b):
    B, S, _ = seq.shape
    L = len(layers)
    n_words = out2_w.shape[1]

    stk = lambda name: jnp.stack([lp[name] for lp in layers], axis=0)
    wqkv = stk("wqkv");  bqkv = stk("bqkv")[:, None, :]
    wo = stk("wo");      bo = stk("bo")[:, None, :]
    w1 = stk("w1");      b1 = stk("b1")[:, None, :]
    w2 = stk("w2");      b2 = stk("b2")[:, None, :]
    ln1g = stk("ln1_g")[:, None, :];  ln1b = stk("ln1_b")[:, None, :]
    ln2g = stk("ln2_g")[:, None, :];  ln2b = stk("ln2_b")[:, None, :]

    kernel = functools.partial(_decoder_kernel, num_layers=L, heads=HEADS)
    return pl.pallas_call(
        kernel,
        out_shape=jax.ShapeDtypeStruct((B, S, n_words), jnp.float32),
    )(seq.astype(jnp.float32), pe, mask.astype(jnp.float32),
      wqkv, bqkv, wo, bo, w1, b1, w2, b2,
      ln1g, ln1b, ln2g, ln2b,
      out1_w, out1_b.reshape(1, -1), out2_w, out2_b.reshape(1, -1))


# ----------------------------------------------------------------------------
# Parameter construction (deterministic, synthetic)
# ----------------------------------------------------------------------------
def init_params(key):
    keys = list(jax.random.split(key, 64))
    kit = iter(keys)

    def nrm(shape):
        return jax.random.normal(next(kit), shape, jnp.float32) * 0.02

    params = {
        "linear1_w": nrm((300, NET_DIM)), "linear1_b": nrm((NET_DIM,)),
        "linear2_w": nrm((600, NET_DIM)), "linear2_b": nrm((NET_DIM,)),
        "edge_emb": nrm((2, NET_DIM)),      # row 0 = 'reactant', row 1 = 'product'
        "gnn_w": nrm((NET_DIM, NET_DIM)), "gnn_b": nrm((NET_DIM,)),
        "word_emb": nrm((N_WORDS, NET_DIM)),
        "out1_w": nrm((NET_DIM, NET_DIM)), "out1_b": nrm((NET_DIM,)),
        "out2_w": nrm((NET_DIM, N_WORDS)), "out2_b": nrm((N_WORDS,)),
        "layers": [],
    }
    for _ in range(DEC_LAYERS):
        params["layers"].append({
            "wqkv": nrm((NET_DIM, 3 * NET_DIM)), "bqkv": nrm((3 * NET_DIM,)),
            "wo": nrm((NET_DIM, NET_DIM)), "bo": nrm((NET_DIM,)),
            "w1": nrm((NET_DIM, DIM_FF)), "b1": nrm((DIM_FF,)),
            "w2": nrm((DIM_FF, NET_DIM)), "b2": nrm((NET_DIM,)),
            "ln1_g": jnp.ones((NET_DIM,), jnp.float32),
            "ln1_b": jnp.zeros((NET_DIM,), jnp.float32),
            "ln2_g": jnp.ones((NET_DIM,), jnp.float32),
            "ln2_b": jnp.zeros((NET_DIM,), jnp.float32),
        })
    return params


def sinusoidal_pe(seq_len, d_model):
    pos = jnp.arange(seq_len, dtype=jnp.float32)[:, None]
    i = jnp.arange(0, d_model, 2, dtype=jnp.float32)[None, :]
    div = jnp.exp(-math.log(10000.0) * i / d_model)
    pe = jnp.zeros((seq_len, d_model), jnp.float32)
    pe = pe.at[:, 0::2].set(jnp.sin(pos * div))
    pe = pe.at[:, 1::2].set(jnp.cos(pos * div))
    return pe


# ----------------------------------------------------------------------------
# Forward pass
# ----------------------------------------------------------------------------
def react_embedding_forward(params, molecules, molecule_mask, reaction_feats,
                            reaction_ids, required_ids, edge_index,
                            edge_type_ids, labels, attn_mask,
                            key_padding_mask=None):
    D = NET_DIM
    n_nodes = molecule_mask.shape[0]
    n_mol = molecules.shape[0]

    # ---- encode -------------------------------------------------------------
    mol_h, rxn_h = pallas_encode_linears(
        molecules.squeeze(1), params["linear1_w"], params["linear1_b"],
        reaction_feats, params["linear2_w"], params["linear2_b"])

    x_feat = jnp.zeros((n_nodes, D), jnp.float32)
    # fill_value=n_nodes => any padding index is out-of-bounds and dropped by scatter
    mol_ids = jnp.nonzero(molecule_mask, size=n_mol, fill_value=n_nodes)[0]
    x_feat = x_feat.at[mol_ids].set(mol_h)
    x_feat = x_feat.at[reaction_ids].set(rxn_h)

    edge_feats = params["edge_emb"][edge_type_ids]          # (E, D)

    # TODO(synk): gnn2 is an externally supplied module in the torch code; it is
    # modeled here as one message-passing layer (sum-aggregate src+edge, linear, ReLU).
    src, dst = edge_index[0], edge_index[1]
    msgs = x_feat[src] + edge_feats
    agg = jax.ops.segment_sum(msgs, dst, num_segments=n_nodes)
    net_x = pallas_linear(x_feat + agg, params["gnn_w"], params["gnn_b"], relu=True)

    memory = net_x[required_ids]                             # (B, D)

    # ---- decode (single fused Pallas kernel) --------------------------------
    x_input = params["word_emb"][labels]                     # (B, L, D)
    seq = jnp.concatenate([memory[:, None, :], x_input], axis=1)  # (B, S, D)
    B, S, _ = seq.shape
    pe = sinusoidal_pe(S, D)                                  # (S, D), added in-kernel

    mask = attn_mask.astype(jnp.float32)                      # (S, S), additive
    if key_padding_mask is not None:
        mask = (mask[None]
                + jnp.where(key_padding_mask, -1e9, 0.0)[:, None, :])  # (B, S, S)

    return pallas_fused_decoder(seq, pe, mask, params["layers"],
                                params["out1_w"], params["out1_b"],
                                params["out2_w"], params["out2_b"])


# ----------------------------------------------------------------------------
# Example run
# ----------------------------------------------------------------------------
if __name__ == "__main__":
    key = jax.random.PRNGKey(0)
    pkey, k_mol, k_rxn, k_lab = jax.random.split(key, 4)

    params = init_params(pkey)

    n_mol, n_rxn = 6, 2
    n_nodes = n_mol + n_rxn
    L = 7  # label length -> transformer sequence length S = L + 1 = 8

    molecules = jax.random.normal(k_mol, (n_mol, 1, 300), jnp.float32)
    molecule_mask = jnp.array([True] * n_mol + [False] * n_rxn)
    reaction_feats = jax.random.normal(k_rxn, (n_rxn, 600), jnp.float32)
    reaction_ids = jnp.array([6, 7], jnp.int32)
    required_ids = jnp.array([6, 7], jnp.int32)  # -> batch B = 2

    # bipartite edges molecule <-> reaction; (2, E) with row0=src, row1=dst
    edge_index = jnp.array([[0, 1, 2, 6, 3, 4, 5, 7],
                            [6, 6, 6, 0, 7, 7, 7, 3]], jnp.int32)
    # edge_types: 'reactant' -> 0, 'product' -> 1
    edge_type_ids = jnp.array([0, 0, 0, 1, 0, 0, 0, 1], jnp.int32)

    labels = jax.random.randint(k_lab, (n_rxn, L), 0, N_WORDS, jnp.int32)

    S = L + 1
    causal = jnp.triu(jnp.full((S, S), -1e9, jnp.float32), k=1)  # additive causal mask

    fwd = jax.jit(functools.partial(react_embedding_forward, params))
    out = fwd(molecules, molecule_mask, reaction_feats, reaction_ids,
              required_ids, edge_index, edge_type_ids, labels, causal,
              key_padding_mask=None)

    out = jax.block_until_ready(out)
    assert out.shape == (2, S, N_WORDS)
    assert bool(jnp.all(jnp.isfinite(out)))
    print("KERNEL_OK")
</pallas_src>

<mosaic_0001>
module attributes {stable_mosaic.version = 11 : i64} {
  func.func private @main(%arg0: i32) attributes {dimension_semantics = [#tpu.dimension_semantics<core_parallel>], iteration_bounds = array<i64: 2>, tpu.core_type = #tpu.core_type<sc_scalar_subcore>, window_params = []} {
    return
  }
}

module attributes {stable_mosaic.version = 11 : i64} {
  func.func private @main(%arg0: i32) attributes {dimension_semantics = [#tpu.dimension_semantics<core_parallel>], iteration_bounds = array<i64: 2>, tpu.core_type = #tpu.core_type<sc_scalar_subcore>, window_params = []} {
    return
  }
}

module attributes {stable_mosaic.version = 11 : i64} {
  func.func @_encode_kernel(%arg0: memref<6x300xf32, #tpu.memory_space<vmem>>, %arg1: memref<300x32xf32, #tpu.memory_space<vmem>>, %arg2: memref<1x32xf32, #tpu.memory_space<vmem>>, %arg3: memref<2x600xf32, #tpu.memory_space<vmem>>, %arg4: memref<600x32xf32, #tpu.memory_space<vmem>>, %arg5: memref<1x32xf32, #tpu.memory_space<vmem>>, %arg6: memref<6x32xf32, #tpu.memory_space<vmem>>, %arg7: memref<2x32xf32, #tpu.memory_space<vmem>>) attributes {dimension_semantics = [], scalar_prefetch = 0 : i64, scratch_operands = 0 : i64, tpu.core_type = #tpu.core_type<tc>} {
    %c0 = arith.constant 0 : index
    %c0_0 = arith.constant 0 : index
    %0 = vector.load %arg0[%c0, %c0_0] : memref<6x300xf32, #tpu.memory_space<vmem>>, vector<6x300xf32>
    %c0_1 = arith.constant 0 : index
    %c0_2 = arith.constant 0 : index
    %1 = vector.load %arg1[%c0_1, %c0_2] : memref<300x32xf32, #tpu.memory_space<vmem>>, vector<300x32xf32>
    %cst = arith.constant dense<0.000000e+00> : vector<6x32xf32>
    %2 = tpu.matmul %0, %1, %cst {dimension_numbers = #tpu.dot_dimension_numbers<[1], [0], [0], [1], [0, 0, 1, 1], [], []>} : vector<6x300xf32>, vector<300x32xf32>, vector<6x32xf32> -> vector<6x32xf32>
    %c0_3 = arith.constant 0 : index
    %c0_4 = arith.constant 0 : index
    %3 = vector.load %arg2[%c0_3, %c0_4] : memref<1x32xf32, #tpu.memory_space<vmem>>, vector<1x32xf32>
    %4 = vector.broadcast %3 : vector<1x32xf32> to vector<6x32xf32>
    %5 = arith.addf %2, %4 : vector<6x32xf32>
    %c0_5 = arith.constant 0 : index
    %c0_6 = arith.constant 0 : index
    %6 = vector.load %arg6[%c0_5, %c0_6] : memref<6x32xf32, #tpu.memory_space<vmem>>, vector<6x32xf32>
    tpu.vector_store %arg6[%c0_5, %c0_6], %5 {strides = array<i32>} : memref<6x32xf32, #tpu.memory_space<vmem>>, vector<6x32xf32>,
    %c0_7 = arith.constant 0 : index
    %c0_8 = arith.constant 0 : index
    %7 = vector.load %arg3[%c0_7, %c0_8] : memref<2x600xf32, #tpu.memory_space<vmem>>, vector<2x600xf32>
    %c0_9 = arith.constant 0 : index
    %c0_10 = arith.constant 0 : index
    %8 = vector.load %arg4[%c0_9, %c0_10] : memref<600x32xf32, #tpu.memory_space<vmem>>, vector<600x32xf32>
    %cst_11 = arith.constant dense<0.000000e+00> : vector<2x32xf32>
    %9 = tpu.matmul %7, %8, %cst_11 {dimension_numbers = #tpu.dot_dimension_numbers<[1], [0], [0], [1], [0, 0, 1, 1], [], []>} : vector<2x600xf32>, vector<600x32xf32>, vector<2x32xf32> -> vector<2x32xf32>
    %c0_12 = arith.constant 0 : index
    %c0_13 = arith.constant 0 : index
    %10 = vector.load %arg5[%c0_12, %c0_13] : memref<1x32xf32, #tpu.memory_space<vmem>>, vector<1x32xf32>
    %11 = vector.broadcast %10 : vector<1x32xf32> to vector<2x32xf32>
    %12 = arith.addf %9, %11 : vector<2x32xf32>
    %c0_14 = arith.constant 0 : index
    %c0_15 = arith.constant 0 : index
    %13 = vector.load %arg7[%c0_14, %c0_15] : memref<2x32xf32, #tpu.memory_space<vmem>>, vector<2x32xf32>
    tpu.vector_store %arg7[%c0_14, %c0_15], %12 {strides = array<i32>} : memref<2x32xf32, #tpu.memory_space<vmem>>, vector<2x32xf32>,
    return
  }
}

module attributes {stable_mosaic.version = 11 : i64} {
  func.func @_linear_kernel(%arg0: memref<8x32xf32, #tpu.memory_space<vmem>>, %arg1: memref<32x32xf32, #tpu.memory_space<vmem>>, %arg2: memref<1x32xf32, #tpu.memory_space<vmem>>, %arg3: memref<8x32xf32, #tpu.memory_space<vmem>>) attributes {dimension_semantics = [], scalar_prefetch = 0 : i64, scratch_operands = 0 : i64, tpu.core_type = #tpu.core_type<tc>} {
    %c0 = arith.constant 0 : index
    %c0_0 = arith.constant 0 : index
    %0 = vector.load %arg0[%c0, %c0_0] : memref<8x32xf32, #tpu.memory_space<vmem>>, vector<8x32xf32>
    %c0_1 = arith.constant 0 : index
    %c0_2 = arith.constant 0 : index
    %1 = vector.load %arg1[%c0_1, %c0_2] : memref<32x32xf32, #tpu.memory_space<vmem>>, vector<32x32xf32>
    %cst = arith.constant dense<0.000000e+00> : vector<8x32xf32>
    %2 = tpu.matmul %0, %1, %cst {dimension_numbers = #tpu.dot_dimension_numbers<[1], [0], [0], [1], [0, 0, 1, 1], [], []>} : vector<8x32xf32>, vector<32x32xf32>, vector<8x32xf32> -> vector<8x32xf32>
    %c0_3 = arith.constant 0 : index
    %c0_4 = arith.constant 0 : index
    %3 = vector.load %arg2[%c0_3, %c0_4] : memref<1x32xf32, #tpu.memory_space<vmem>>, vector<1x32xf32>
    %4 = vector.broadcast %3 : vector<1x32xf32> to vector<8x32xf32>
    %5 = arith.addf %2, %4 : vector<8x32xf32>
    %cst_5 = arith.constant 0.000000e+00 : f32
    %6 = vector.broadcast %cst_5 : f32 to vector<8x32xf32>
    %7 = arith.maximumf %5, %6 : vector<8x32xf32>
    %c0_6 = arith.constant 0 : index
    %c0_7 = arith.constant 0 : index
    %8 = vector.load %arg3[%c0_6, %c0_7] : memref<8x32xf32, #tpu.memory_space<vmem>>, vector<8x32xf32>
    tpu.vector_store %arg3[%c0_6, %c0_7], %7 {strides = array<i32>} : memref<8x32xf32, #tpu.memory_space<vmem>>, vector<8x32xf32>,
    return
  }
}

module attributes {stable_mosaic.version = 11 : i64} {
  func.func @_decoder_kernel(%arg0: memref<2x8x32xf32, #tpu.memory_space<vmem>>, %arg1: memref<8x32xf32, #tpu.memory_space<vmem>>, %arg2: memref<8x8xf32, #tpu.memory_space<vmem>>, %arg3: memref<2x32x96xf32, #tpu.memory_space<vmem>>, %arg4: memref<2x1x96xf32, #tpu.memory_space<vmem>>, %arg5: memref<2x32x32xf32, #tpu.memory_space<vmem>>, %arg6: memref<2x1x32xf32, #tpu.memory_space<vmem>>, %arg7: memref<2x32x64xf32, #tpu.memory_space<vmem>>, %arg8: memref<2x1x64xf32, #tpu.memory_space<vmem>>, %arg9: memref<2x64x32xf32, #tpu.memory_space<vmem>>, %arg10: memref<2x1x32xf32, #tpu.memory_space<vmem>>, %arg11: memref<2x1x32xf32, #tpu.memory_space<vmem>>, %arg12: memref<2x1x32xf32, #tpu.memory_space<vmem>>, %arg13: memref<2x1x32xf32, #tpu.memory_space<vmem>>, %arg14: memref<2x1x32xf32, #tpu.memory_space<vmem>>, %arg15: memref<32x32xf32, #tpu.memory_space<vmem>>, %arg16: memref<1x32xf32, #tpu.memory_space<vmem>>, %arg17: memref<32x40xf32, #tpu.memory_space<vmem>>, %arg18: memref<1x40xf32, #tpu.memory_space<vmem>>, %arg19: memref<2x8x40xf32, #tpu.memory_space<vmem>>) attributes {dimension_semantics = [], scalar_prefetch = 0 : i64, scratch_operands = 0 : i64, tpu.core_type = #tpu.core_type<tc>} {
    %c0 = arith.constant 0 : index
    %c0_0 = arith.constant 0 : index
    %0 = vector.load %arg2[%c0, %c0_0] : memref<8x8xf32, #tpu.memory_space<vmem>>, vector<8x8xf32>
    %1 = vector.shape_cast %0 : vector<8x8xf32> to vector<1x8x8xf32>
    %c0_1 = arith.constant 0 : index
    %c0_2 = arith.constant 0 : index
    %c0_3 = arith.constant 0 : index
    %2 = vector.load %arg0[%c0_1, %c0_2, %c0_3] : memref<2x8x32xf32, #tpu.memory_space<vmem>>, vector<2x8x32xf32>
    %c0_4 = arith.constant 0 : index
    %c0_5 = arith.constant 0 : index
    %3 = vector.load %arg1[%c0_4, %c0_5] : memref<8x32xf32, #tpu.memory_space<vmem>>, vector<8x32xf32>
    %4 = vector.shape_cast %3 : vector<8x32xf32> to vector<1x8x32xf32>
    %5 = vector.broadcast %4 : vector<1x8x32xf32> to vector<2x8x32xf32>
    %6 = arith.addf %2, %5 : vector<2x8x32xf32>
    %7 = vector.shape_cast %6 : vector<2x8x32xf32> to vector<16x32xf32>
    %c0_6 = arith.constant 0 : index
    %c0_7 = arith.constant 0 : index
    %c0_8 = arith.constant 0 : index
    %8 = vector.load %arg3[%c0_6, %c0_7, %c0_8] : memref<2x32x96xf32, #tpu.memory_space<vmem>>, vector<1x32x96xf32>
    %9 = vector.shape_cast %8 : vector<1x32x96xf32> to vector<32x96xf32>
    %cst = arith.constant dense<0.000000e+00> : vector<16x96xf32>
    %10 = tpu.matmul %7, %9, %cst {dimension_numbers = #tpu.dot_dimension_numbers<[1], [0], [0], [1], [0, 0, 1, 1], [], []>} : vector<16x32xf32>, vector<32x96xf32>, vector<16x96xf32> -> vector<16x96xf32>
    %c0_9 = arith.constant 0 : index
    %c0_10 = arith.constant 0 : index
    %c0_11 = arith.constant 0 : index
    %11 = vector.load %arg4[%c0_9, %c0_10, %c0_11] : memref<2x1x96xf32, #tpu.memory_space<vmem>>, vector<1x1x96xf32>
    %12 = vector.shape_cast %11 : vector<1x1x96xf32> to vector<1x96xf32>
    %13 = vector.broadcast %12 : vector<1x96xf32> to vector<16x96xf32>
    %14 = arith.addf %10, %13 : vector<16x96xf32>
    %15 = vector.extract_strided_slice %14 {offsets = [0, 0], sizes = [16, 32], strides = [1, 1]} : vector<16x96xf32> to vector<16x32xf32>
    %cst_12 = arith.constant 0.353553385 : f32
    %16 = vector.broadcast %cst_12 : f32 to vector<16x32xf32>
    %17 = arith.mulf %15, %16 : vector<16x32xf32>
    %18 = vector.shape_cast %17 : vector<16x32xf32> to vector<2x8x32xf32>
    %19 = vector.extract_strided_slice %14 {offsets = [0, 32], sizes = [16, 32], strides = [1, 1]} : vector<16x96xf32> to vector<16x32xf32>
    %20 = vector.shape_cast %19 : vector<16x32xf32> to vector<2x8x32xf32>
    %21 = vector.extract_strided_slice %14 {offsets = [0, 64], sizes = [16, 32], strides = [1, 1]} : vector<16x96xf32> to vector<16x32xf32>
    %22 = vector.shape_cast %21 : vector<16x32xf32> to vector<2x8x32xf32>
    %c0_13 = arith.constant 0 : index
    %c0_14 = arith.constant 0 : index
    %c0_15 = arith.constant 0 : index
    %23 = vector.load %arg5[%c0_13, %c0_14, %c0_15] : memref<2x32x32xf32, #tpu.memory_space<vmem>>, vector<1x32x32xf32>
    %24 = vector.shape_cast %23 : vector<1x32x32xf32> to vector<32x32xf32>
    %c0_16 = arith.constant 0 : index
    %c0_17 = arith.constant 0 : index
    %c0_18 = arith.constant 0 : index
    %25 = vector.load %arg6[%c0_16, %c0_17, %c0_18] : memref<2x1x32xf32, #tpu.memory_space<vmem>>, vector<1x1x32xf32>
    %26 = vector.shape_cast %25 : vector<1x1x32xf32> to vector<1x32xf32>
    %27 = vector.extract_strided_slice %18 {offsets = [0, 0, 0], sizes = [2, 8, 8], strides = [1, 1, 1]} : vector<2x8x32xf32> to vector<2x8x8xf32>
    %28 = vector.extract_strided_slice %20 {offsets = [0, 0, 0], sizes = [2, 8, 8], strides = [1, 1, 1]} : vector<2x8x32xf32> to vector<2x8x8xf32>
    "tpu.trace_start"() <{level = 10 : i32, message = "bqd,bkd->bqk"}> : () -> ()
    %cst_19 = arith.constant dense<0.000000e+00> : vector<2x8x8xf32>
    %29 = tpu.matmul %27, %28, %cst_19 {dimension_numbers = #tpu.dot_dimension_numbers<[2], [2], [1], [1], [0, 0, 0, 1, 1, 1], [0], [0]>} : vector<2x8x8xf32>, vector<2x8x8xf32>, vector<2x8x8xf32> -> vector<2x8x8xf32>
    "tpu.trace_stop"() : () -> ()
    %30 = vector.broadcast %1 : vector<1x8x8xf32> to vector<2x8x8xf32>
    %31 = arith.addf %29, %30 : vector<2x8x8xf32>
    %cst_20 = arith.constant dense<0xFF800000> : vector<2x8xf32>
    %32 = vector.multi_reduction <maximumf>, %31, %cst_20 [2] : vector<2x8x8xf32> to vector<2x8xf32>
    %33 = vector.shape_cast %32 : vector<2x8xf32> to vector<2x8x1xf32>
    %34 = vector.broadcast %33 : vector<2x8x1xf32> to vector<2x8x8xf32>
    %35 = arith.subf %31, %34 : vector<2x8x8xf32>
    %36 = math.exp %35 : vector<2x8x8xf32>
    %cst_21 = arith.constant dense<0.000000e+00> : vector<2x8xf32>
    %37 = vector.multi_reduction <add>, %36, %cst_21 [2] : vector<2x8x8xf32> to vector<2x8xf32>
    %38 = vector.shape_cast %37 : vector<2x8xf32> to vector<2x8x1xf32>
    %cst_22 = arith.constant 9.99999968E-21 : f32
    %39 = vector.broadcast %cst_22 : f32 to vector<2x8x1xf32>
    %40 = arith.maximumf %38, %39 : vector<2x8x1xf32>
    %41 = tpu.reciprocal %40 {approx = true} : vector<2x8x1xf32> -> vector<2x8x1xf32>
    %42 = vector.broadcast %41 : vector<2x8x1xf32> to vector<2x8x8xf32>
    %43 = arith.mulf %36, %42 : vector<2x8x8xf32>
    %44 = vector.extract_strided_slice %22 {offsets = [0, 0, 0], sizes = [2, 8, 8], strides = [1, 1, 1]} : vector<2x8x32xf32> to vector<2x8x8xf32>
    "tpu.trace_start"() <{level = 10 : i32, message = "bqk,bkd->bqd"}> : () -> ()
    %cst_23 = arith.constant dense<0.000000e+00> : vector<2x8x8xf32>
    %45 = tpu.matmul %43, %44, %cst_23 {dimension_numbers = #tpu.dot_dimension_numbers<[2], [1], [1], [2], [0, 0, 0, 1, 1, 2], [0], [0]>} : vector<2x8x8xf32>, vector<2x8x8xf32>, vector<2x8x8xf32> -> vector<2x8x8xf32>
    "tpu.trace_stop"() : () -> ()
    %46 = vector.shape_cast %45 : vector<2x8x8xf32> to vector<16x8xf32>
    %47 = vector.extract_strided_slice %24 {offsets = [0, 0], sizes = [8, 32], strides = [1, 1]} : vector<32x32xf32> to vector<8x32xf32>
    %cst_24 = arith.constant dense<0.000000e+00> : vector<16x32xf32>
    %48 = tpu.matmul %46, %47, %cst_24 {dimension_numbers = #tpu.dot_dimension_numbers<[1], [0], [0], [1], [0, 0, 1, 1], [], []>} : vector<16x8xf32>, vector<8x32xf32>, vector<16x32xf32> -> vector<16x32xf32>
    %49 = vector.broadcast %26 : vector<1x32xf32> to vector<16x32xf32>
    %50 = arith.addf %49, %48 : vector<16x32xf32>
    %51 = vector.extract_strided_slice %18 {offsets = [0, 0, 8], sizes = [2, 8, 8], strides = [1, 1, 1]} : vector<2x8x32xf32> to vector<2x8x8xf32>
    %52 = vector.extract_strided_slice %20 {offsets = [0, 0, 8], sizes = [2, 8, 8], strides = [1, 1, 1]} : vector<2x8x32xf32> to vector<2x8x8xf32>
    "tpu.trace_start"() <{level = 10 : i32, message = "bqd,bkd->bqk"}> : () -> ()
    %cst_25 = arith.constant dense<0.000000e+00> : vector<2x8x8xf32>
    %53 = tpu.matmul %51, %52, %cst_25 {dimension_numbers = #tpu.dot_dimension_numbers<[2], [2], [1], [1], [0, 0, 0, 1, 1, 1], [0], [0]>} : vector<2x8x8xf32>, vector<2x8x8xf32>, vector<2x8x8xf32> -> vector<2x8x8xf32>
    "tpu.trace_stop"() : () -> ()
    %54 = vector.broadcast %1 : vector<1x8x8xf32> to vector<2x8x8xf32>
    %55 = arith.addf %53, %54 : vector<2x8x8xf32>
    %cst_26 = arith.constant dense<0xFF800000> : vector<2x8xf32>
    %56 = vector.multi_reduction <maximumf>, %55, %cst_26 [2] : vector<2x8x8xf32> to vector<2x8xf32>
    %57 = vector.shape_cast %56 : vector<2x8xf32> to vector<2x8x1xf32>
    %58 = vector.broadcast %57 : vector<2x8x1xf32> to vector<2x8x8xf32>
    %59 = arith.subf %55, %58 : vector<2x8x8xf32>
    %60 = math.exp %59 : vector<2x8x8xf32>
    %cst_27 = arith.constant dense<0.000000e+00> : vector<2x8xf32>
    %61 = vector.multi_reduction <add>, %60, %cst_27 [2] : vector<2x8x8xf32> to vector<2x8xf32>
    %62 = vector.shape_cast %61 : vector<2x8xf32> to vector<2x8x1xf32>
    %cst_28 = arith.constant 9.99999968E-21 : f32
    %63 = vector.broadcast %cst_28 : f32 to vector<2x8x1xf32>
    %64 = arith.maximumf %62, %63 : vector<2x8x1xf32>
    %65 = tpu.reciprocal %64 {approx = true} : vector<2x8x1xf32> -> vector<2x8x1xf32>
    %66 = vector.broadcast %65 : vector<2x8x1xf32> to vector<2x8x8xf32>
    %67 = arith.mulf %60, %66 : vector<2x8x8xf32>
    %68 = vector.extract_strided_slice %22 {offsets = [0, 0, 8], sizes = [2, 8, 8], strides = [1, 1, 1]} : vector<2x8x32xf32> to vector<2x8x8xf32>
    "tpu.trace_start"() <{level = 10 : i32, message = "bqk,bkd->bqd"}> : () -> ()
    %cst_29 = arith.constant dense<0.000000e+00> : vector<2x8x8xf32>
    %69 = tpu.matmul %67, %68, %cst_29 {dimension_numbers = #tpu.dot_dimension_numbers<[2], [1], [1], [2], [0, 0, 0, 1, 1, 2], [0], [0]>} : vector<2x8x8xf32>, vector<2x8x8xf32>, vector<2x8x8xf32> -> vector<2x8x8xf32>
    "tpu.trace_stop"() : () -> ()
    %70 = vector.shape_cast %69 : vector<2x8x8xf32> to vector<16x8xf32>
    %71 = vector.extract_strided_slice %24 {offsets = [8, 0], sizes = [8, 32], strides = [1, 1]} : vector<32x32xf32> to vector<8x32xf32>
    %cst_30 = arith.constant dense<0.000000e+00> : vector<16x32xf32>
    %72 = tpu.matmul %70, %71, %cst_30 {dimension_numbers = #tpu.dot_dimension_numbers<[1], [0], [0], [1], [0, 0, 1, 1], [], []>} : vector<16x8xf32>, vector<8x32xf32>, vector<16x32xf32> -> vector<16x32xf32>
    %73 = arith.addf %50, %72 : vector<16x32xf32>
    %74 = vector.extract_strided_slice %18 {offsets = [0, 0, 16], sizes = [2, 8, 8], strides = [1, 1, 1]} : vector<2x8x32xf32> to vector<2x8x8xf32>
    %75 = vector.extract_strided_slice %20 {offsets = [0, 0, 16], sizes = [2, 8, 8], strides = [1, 1, 1]} : vector<2x8x32xf32> to vector<2x8x8xf32>
    "tpu.trace_start"() <{level = 10 : i32, message = "bqd,bkd->bqk"}> : () -> ()
    %cst_31 = arith.constant dense<0.000000e+00> : vector<2x8x8xf32>
    %76 = tpu.matmul %74, %75, %cst_31 {dimension_numbers = #tpu.dot_dimension_numbers<[2], [2], [1], [1], [0, 0, 0, 1, 1, 1], [0], [0]>} : vector<2x8x8xf32>, vector<2x8x8xf32>, vector<2x8x8xf32> -> vector<2x8x8xf32>
    "tpu.trace_stop"() : () -> ()
    %77 = vector.broadcast %1 : vector<1x8x8xf32> to vector<2x8x8xf32>
    %78 = arith.addf %76, %77 : vector<2x8x8xf32>
    %cst_32 = arith.constant dense<0xFF800000> : vector<2x8xf32>
    %79 = vector.multi_reduction <maximumf>, %78, %cst_32 [2] : vector<2x8x8xf32> to vector<2x8xf32>
    %80 = vector.shape_cast %79 : vector<2x8xf32> to vector<2x8x1xf32>
    %81 = vector.broadcast %80 : vector<2x8x1xf32> to vector<2x8x8xf32>
    %82 = arith.subf %78, %81 : vector<2x8x8xf32>
    %83 = math.exp %82 : vector<2x8x8xf32>
    %cst_33 = arith.constant dense<0.000000e+00> : vector<2x8xf32>
    %84 = vector.multi_reduction <add>, %83, %cst_33 [2] : vector<2x8x8xf32> to vector<2x8xf32>
    %85 = vector.shape_cast %84 : vector<2x8xf32> to vector<2x8x1xf32>
    %cst_34 = arith.constant 9.99999968E-21 : f32
    %86 = vector.broadcast %cst_34 : f32 to vector<2x8x1xf32>
    %87 = arith.maximumf %85, %86 : vector<2x8x1xf32>
    %88 = tpu.reciprocal %87 {approx = true} : vector<2x8x1xf32> -> vector<2x8x1xf32>
    %89 = vector.broadcast %88 : vector<2x8x1xf32> to vector<2x8x8xf32>
    %90 = arith.mulf %83, %89 : vector<2x8x8xf32>
    %91 = vector.extract_strided_slice %22 {offsets = [0, 0, 16], sizes = [2, 8, 8], strides = [1, 1, 1]} : vector<2x8x32xf32> to vector<2x8x8xf32>
    "tpu.trace_start"() <{level = 10 : i32, message = "bqk,bkd->bqd"}> : () -> ()
    %cst_35 = arith.constant dense<0.000000e+00> : vector<2x8x8xf32>
    %92 = tpu.matmul %90, %91, %cst_35 {dimension_numbers = #tpu.dot_dimension_numbers<[2], [1], [1], [2], [0, 0, 0, 1, 1, 2], [0], [0]>} : vector<2x8x8xf32>, vector<2x8x8xf32>, vector<2x8x8xf32> -> vector<2x8x8xf32>
    "tpu.trace_stop"() : () -> ()
    %93 = vector.shape_cast %92 : vector<2x8x8xf32> to vector<16x8xf32>
    %94 = vector.extract_strided_slice %24 {offsets = [16, 0], sizes = [8, 32], strides = [1, 1]} : vector<32x32xf32> to vector<8x32xf32>
    %cst_36 = arith.constant dense<0.000000e+00> : vector<16x32xf32>
    %95 = tpu.matmul %93, %94, %cst_36 {dimension_numbers = #tpu.dot_dimension_numbers<[1], [0], [0], [1], [0, 0, 1, 1], [], []>} : vector<16x8xf32>, vector<8x32xf32>, vector<16x32xf32> -> vector<16x32xf32>
    %96 = arith.addf %73, %95 : vector<16x32xf32>
    %97 = vector.extract_strided_slice %18 {offsets = [0, 0, 24], sizes = [2, 8, 8], strides = [1, 1, 1]} : vector<2x8x32xf32> to vector<2x8x8xf32>
    %98 = vector.extract_strided_slice %20 {offsets = [0, 0, 24], sizes = [2, 8, 8], strides = [1, 1, 1]} : vector<2x8x32xf32> to vector<2x8x8xf32>
    "tpu.trace_start"() <{level = 10 : i32, message = "bqd,bkd->bqk"}> : () -> ()
    %cst_37 = arith.constant dense<0.000000e+00> : vector<2x8x8xf32>
    %99 = tpu.matmul %97, %98, %cst_37 {dimension_numbers = #tpu.dot_dimension_numbers<[2], [2], [1], [1], [0, 0, 0, 1, 1, 1], [0], [0]>} : vector<2x8x8xf32>, vector<2x8x8xf32>, vector<2x8x8xf32> -> vector<2x8x8xf32>
    "tpu.trace_stop"() : () -> ()
    %100 = vector.broadcast %1 : vector<1x8x8xf32> to vector<2x8x8xf32>
    %101 = arith.addf %99, %100 : vector<2x8x8xf32>
    %cst_38 = arith.constant dense<0xFF800000> : vector<2x8xf32>
    %102 = vector.multi_reduction <maximumf>, %101, %cst_38 [2] : vector<2x8x8xf32> to vector<2x8xf32>
    %103 = vector.shape_cast %102 : vector<2x8xf32> to vector<2x8x1xf32>
    %104 = vector.broadcast %103 : vector<2x8x1xf32> to vector<2x8x8xf32>
    %105 = arith.subf %101, %104 : vector<2x8x8xf32>
    %106 = math.exp %105 : vector<2x8x8xf32>
    %cst_39 = arith.constant dense<0.000000e+00> : vector<2x8xf32>
    %107 = vector.multi_reduction <add>, %106, %cst_39 [2] : vector<2x8x8xf32> to vector<2x8xf32>
    %108 = vector.shape_cast %107 : vector<2x8xf32> to vector<2x8x1xf32>
    %cst_40 = arith.constant 9.99999968E-21 : f32
    %109 = vector.broadcast %cst_40 : f32 to vector<2x8x1xf32>
    %110 = arith.maximumf %108, %109 : vector<2x8x1xf32>
    %111 = tpu.reciprocal %110 {approx = true} : vector<2x8x1xf32> -> vector<2x8x1xf32>
    %112 = vector.broadcast %111 : vector<2x8x1xf32> to vector<2x8x8xf32>
    %113 = arith.mulf %106, %112 : vector<2x8x8xf32>
    %114 = vector.extract_strided_slice %22 {offsets = [0, 0, 24], sizes = [2, 8, 8], strides = [1, 1, 1]} : vector<2x8x32xf32> to vector<2x8x8xf32>
    "tpu.trace_start"() <{level = 10 : i32, message = "bqk,bkd->bqd"}> : () -> ()
    %cst_41 = arith.constant dense<0.000000e+00> : vector<2x8x8xf32>
    %115 = tpu.matmul %113, %114, %cst_41 {dimension_numbers = #tpu.dot_dimension_numbers<[2], [1], [1], [2], [0, 0, 0, 1, 1, 2], [0], [0]>} : vector<2x8x8xf32>, vector<2x8x8xf32>, vector<2x8x8xf32> -> vector<2x8x8xf32>
    "tpu.trace_stop"() : () -> ()
    %116 = vector.shape_cast %115 : vector<2x8x8xf32> to vector<16x8xf32>
    %117 = vector.extract_strided_slice %24 {offsets = [24, 0], sizes = [8, 32], strides = [1, 1]} : vector<32x32xf32> to vector<8x32xf32>
    %cst_42 = arith.constant dense<0.000000e+00> : vector<16x32xf32>
    %118 = tpu.matmul %116, %117, %cst_42 {dimension_numbers = #tpu.dot_dimension_numbers<[1], [0], [0], [1], [0, 0, 1, 1], [], []>} : vector<16x8xf32>, vector<8x32xf32>, vector<16x32xf32> -> vector<16x32xf32>
    %119 = arith.addf %96, %118 : vector<16x32xf32>
    %120 = arith.addf %7, %119 : vector<16x32xf32>
    %c0_43 = arith.constant 0 : index
    %c0_44 = arith.constant 0 : index
    %c0_45 = arith.constant 0 : index
    %121 = vector.load %arg11[%c0_43, %c0_44, %c0_45] : memref<2x1x32xf32, #tpu.memory_space<vmem>>, vector<1x1x32xf32>
    %122 = vector.shape_cast %121 : vector<1x1x32xf32> to vector<1x32xf32>
    %c0_46 = arith.constant 0 : index
    %c0_47 = arith.constant 0 : index
    %c0_48 = arith.constant 0 : index
    %123 = vector.load %arg12[%c0_46, %c0_47, %c0_48] : memref<2x1x32xf32, #tpu.memory_space<vmem>>, vector<1x1x32xf32>
    %124 = vector.shape_cast %123 : vector<1x1x32xf32> to vector<1x32xf32>
    %cst_49 = arith.constant dense<0.000000e+00> : vector<16xf32>
    %125 = vector.multi_reduction <add>, %120, %cst_49 [1] : vector<16x32xf32> to vector<16xf32>
    %126 = vector.shape_cast %125 : vector<16xf32> to vector<16x1xf32>
    %cst_50 = arith.constant 3.200000e+01 : f32
    %127 = vector.broadcast %cst_50 : f32 to vector<16x1xf32>
    %128 = arith.divf %126, %127 : vector<16x1xf32>
    %129 = vector.broadcast %128 : vector<16x1xf32> to vector<16x32xf32>
    %130 = arith.subf %120, %129 : vector<16x32xf32>
    %131 = arith.mulf %130, %130 : vector<16x32xf32>
    %cst_51 = arith.constant dense<0.000000e+00> : vector<16xf32>
    %132 = vector.multi_reduction <add>, %131, %cst_51 [1] : vector<16x32xf32> to vector<16xf32>
    %133 = vector.shape_cast %132 : vector<16xf32> to vector<16x1xf32>
    %cst_52 = arith.constant 3.200000e+01 : f32
    %134 = vector.broadcast %cst_52 : f32 to vector<16x1xf32>
    %135 = arith.divf %133, %134 : vector<16x1xf32>
    %136 = vector.broadcast %128 : vector<16x1xf32> to vector<16x32xf32>
    %137 = arith.subf %120, %136 : vector<16x32xf32>
    %cst_53 = arith.constant 9.99999974E-6 : f32
    %138 = vector.broadcast %cst_53 : f32 to vector<16x1xf32>
    %139 = arith.addf %135, %138 : vector<16x1xf32>
    %140 = math.rsqrt %139 : vector<16x1xf32>
    %141 = vector.broadcast %140 : vector<16x1xf32> to vector<16x32xf32>
    %142 = arith.mulf %137, %141 : vector<16x32xf32>
    %143 = vector.broadcast %122 : vector<1x32xf32> to vector<16x32xf32>
    %144 = arith.mulf %142, %143 : vector<16x32xf32>
    %145 = vector.broadcast %124 : vector<1x32xf32> to vector<16x32xf32>
    %146 = arith.addf %144, %145 : vector<16x32xf32>
    %c0_54 = arith.constant 0 : index
    %c0_55 = arith.constant 0 : index
    %c0_56 = arith.constant 0 : index
    %147 = vector.load %arg7[%c0_54, %c0_55, %c0_56] : memref<2x32x64xf32, #tpu.memory_space<vmem>>, vector<1x32x64xf32>
    %148 = vector.shape_cast %147 : vector<1x32x64xf32> to vector<32x64xf32>
    %cst_57 = arith.constant dense<0.000000e+00> : vector<16x64xf32>
    %149 = tpu.matmul %146, %148, %cst_57 {dimension_numbers = #tpu.dot_dimension_numbers<[1], [0], [0], [1], [0, 0, 1, 1], [], []>} : vector<16x32xf32>, vector<32x64xf32>, vector<16x64xf32> -> vector<16x64xf32>
    %c0_58 = arith.constant 0 : index
    %c0_59 = arith.constant 0 : index
    %c0_60 = arith.constant 0 : index
    %150 = vector.load %arg8[%c0_58, %c0_59, %c0_60] : memref<2x1x64xf32, #tpu.memory_space<vmem>>, vector<1x1x64xf32>
    %151 = vector.shape_cast %150 : vector<1x1x64xf32> to vector<1x64xf32>
    %152 = vector.broadcast %151 : vector<1x64xf32> to vector<16x64xf32>
    %153 = arith.addf %149, %152 : vector<16x64xf32>
    %cst_61 = arith.constant 0.000000e+00 : f32
    %154 = vector.broadcast %cst_61 : f32 to vector<16x64xf32>
    %155 = arith.maximumf %153, %154 : vector<16x64xf32>
    %c0_62 = arith.constant 0 : index
    %c0_63 = arith.constant 0 : index
    %c0_64 = arith.constant 0 : index
    %156 = vector.load %arg9[%c0_62, %c0_63, %c0_64] : memref<2x64x32xf32, #tpu.memory_space<vmem>>, vector<1x64x32xf32>
    %157 = vector.shape_cast %156 : vector<1x64x32xf32> to vector<64x32xf32>
    %cst_65 = arith.constant dense<0.000000e+00> : vector<16x32xf32>
    %158 = tpu.matmul %155, %157, %cst_65 {dimension_numbers = #tpu.dot_dimension_numbers<[1], [0], [0], [1], [0, 0, 1, 1], [], []>} : vector<16x64xf32>, vector<64x32xf32>, vector<16x32xf32> -> vector<16x32xf32>
    %c0_66 = arith.constant 0 : index
    %c0_67 = arith.constant 0 : index
    %c0_68 = arith.constant 0 : index
    %159 = vector.load %arg10[%c0_66, %c0_67, %c0_68] : memref<2x1x32xf32, #tpu.memory_space<vmem>>, vector<1x1x32xf32>
    %160 = vector.shape_cast %159 : vector<1x1x32xf32> to vector<1x32xf32>
    %161 = vector.broadcast %160 : vector<1x32xf32> to vector<16x32xf32>
    %162 = arith.addf %158, %161 : vector<16x32xf32>
    %163 = arith.addf %146, %162 : vector<16x32xf32>
    %c0_69 = arith.constant 0 : index
    %c0_70 = arith.constant 0 : index
    %c0_71 = arith.constant 0 : index
    %164 = vector.load %arg13[%c0_69, %c0_70, %c0_71] : memref<2x1x32xf32, #tpu.memory_space<vmem>>, vector<1x1x32xf32>
    %165 = vector.shape_cast %164 : vector<1x1x32xf32> to vector<1x32xf32>
    %c0_72 = arith.constant 0 : index
    %c0_73 = arith.constant 0 : index
    %c0_74 = arith.constant 0 : index
    %166 = vector.load %arg14[%c0_72, %c0_73, %c0_74] : memref<2x1x32xf32, #tpu.memory_space<vmem>>, vector<1x1x32xf32>
    %167 = vector.shape_cast %166 : vector<1x1x32xf32> to vector<1x32xf32>
    %cst_75 = arith.constant dense<0.000000e+00> : vector<16xf32>
    %168 = vector.multi_reduction <add>, %163, %cst_75 [1] : vector<16x32xf32> to vector<16xf32>
    %169 = vector.shape_cast %168 : vector<16xf32> to vector<16x1xf32>
    %cst_76 = arith.constant 3.200000e+01 : f32
    %170 = vector.broadcast %cst_76 : f32 to vector<16x1xf32>
    %171 = arith.divf %169, %170 : vector<16x1xf32>
    %172 = vector.broadcast %171 : vector<16x1xf32> to vector<16x32xf32>
    %173 = arith.subf %163, %172 : vector<16x32xf32>
    %174 = arith.mulf %173, %173 : vector<16x32xf32>
    %cst_77 = arith.constant dense<0.000000e+00> : vector<16xf32>
    %175 = vector.multi_reduction <add>, %174, %cst_77 [1] : vector<16x32xf32> to vector<16xf32>
    %176 = vector.shape_cast %175 : vector<16xf32> to vector<16x1xf32>
    %cst_78 = arith.constant 3.200000e+01 : f32
    %177 = vector.broadcast %cst_78 : f32 to vector<16x1xf32>
    %178 = arith.divf %176, %177 : vector<16x1xf32>
    %179 = vector.broadcast %171 : vector<16x1xf32> to vector<16x32xf32>
    %180 = arith.subf %163, %179 : vector<16x32xf32>
    %cst_79 = arith.constant 9.99999974E-6 : f32
    %181 = vector.broadcast %cst_79 : f32 to vector<16x1xf32>
    %182 = arith.addf %178, %181 : vector<16x1xf32>
    %183 = math.rsqrt %182 : vector<16x1xf32>
    %184 = vector.broadcast %183 : vector<16x1xf32> to vector<16x32xf32>
    %185 = arith.mulf %180, %184 : vector<16x32xf32>
    %186 = vector.broadcast %165 : vector<1x32xf32> to vector<16x32xf32>
    %187 = arith.mulf %185, %186 : vector<16x32xf32>
    %188 = vector.broadcast %167 : vector<1x32xf32> to vector<16x32xf32>
    %189 = arith.addf %187, %188 : vector<16x32xf32>
    %c1 = arith.constant 1 : index
    %c0_80 = arith.constant 0 : index
    %c0_81 = arith.constant 0 : index
    %190 = vector.load %arg3[%c1, %c0_80, %c0_81] : memref<2x32x96xf32, #tpu.memory_space<vmem>>, vector<1x32x96xf32>
    %191 = vector.shape_cast %190 : vector<1x32x96xf32> to vector<32x96xf32>
    %cst_82 = arith.constant dense<0.000000e+00> : vector<16x96xf32>
    %192 = tpu.matmul %189, %191, %cst_82 {dimension_numbers = #tpu.dot_dimension_numbers<[1], [0], [0], [1], [0, 0, 1, 1], [], []>} : vector<16x32xf32>, vector<32x96xf32>, vector<16x96xf32> -> vector<16x96xf32>
    %c1_83 = arith.constant 1 : index
    %c0_84 = arith.constant 0 : index
    %c0_85 = arith.constant 0 : index
    %193 = vector.load %arg4[%c1_83, %c0_84, %c0_85] : memref<2x1x96xf32, #tpu.memory_space<vmem>>, vector<1x1x96xf32>
    %194 = vector.shape_cast %193 : vector<1x1x96xf32> to vector<1x96xf32>
    %195 = vector.broadcast %194 : vector<1x96xf32> to vector<16x96xf32>
    %196 = arith.addf %192, %195 : vector<16x96xf32>
    %197 = vector.extract_strided_slice %196 {offsets = [0, 0], sizes = [16, 32], strides = [1, 1]} : vector<16x96xf32> to vector<16x32xf32>
    %cst_86 = arith.constant 0.353553385 : f32
    %198 = vector.broadcast %cst_86 : f32 to vector<16x32xf32>
    %199 = arith.mulf %197, %198 : vector<16x32xf32>
    %200 = vector.shape_cast %199 : vector<16x32xf32> to vector<2x8x32xf32>
    %201 = vector.extract_strided_slice %196 {offsets = [0, 32], sizes = [16, 32], strides = [1, 1]} : vector<16x96xf32> to vector<16x32xf32>
    %202 = vector.shape_cast %201 : vector<16x32xf32> to vector<2x8x32xf32>
    %203 = vector.extract_strided_slice %196 {offsets = [0, 64], sizes = [16, 32], strides = [1, 1]} : vector<16x96xf32> to vector<16x32xf32>
    %204 = vector.shape_cast %203 : vector<16x32xf32> to vector<2x8x32xf32>
    %c1_87 = arith.constant 1 : index
    %c0_88 = arith.constant 0 : index
    %c0_89 = arith.constant 0 : index
    %205 = vector.load %arg5[%c1_87, %c0_88, %c0_89] : memref<2x32x32xf32, #tpu.memory_space<vmem>>, vector<1x32x32xf32>
    %206 = vector.shape_cast %205 : vector<1x32x32xf32> to vector<32x32xf32>
    %c1_90 = arith.constant 1 : index
    %c0_91 = arith.constant 0 : index
    %c0_92 = arith.constant 0 : index
    %207 = vector.load %arg6[%c1_90, %c0_91, %c0_92] : memref<2x1x32xf32, #tpu.memory_space<vmem>>, vector<1x1x32xf32>
    %208 = vector.shape_cast %207 : vector<1x1x32xf32> to vector<1x32xf32>
    %209 = vector.extract_strided_slice %200 {offsets = [0, 0, 0], sizes = [2, 8, 8], strides = [1, 1, 1]} : vector<2x8x32xf32> to vector<2x8x8xf32>
    %210 = vector.extract_strided_slice %202 {offsets = [0, 0, 0], sizes = [2, 8, 8], strides = [1, 1, 1]} : vector<2x8x32xf32> to vector<2x8x8xf32>
    "tpu.trace_start"() <{level = 10 : i32, message = "bqd,bkd->bqk"}> : () -> ()
    %cst_93 = arith.constant dense<0.000000e+00> : vector<2x8x8xf32>
    %211 = tpu.matmul %209, %210, %cst_93 {dimension_numbers = #tpu.dot_dimension_numbers<[2], [2], [1], [1], [0, 0, 0, 1, 1, 1], [0], [0]>} : vector<2x8x8xf32>, vector<2x8x8xf32>, vector<2x8x8xf32> -> vector<2x8x8xf32>
    "tpu.trace_stop"() : () -> ()
    %212 = vector.broadcast %1 : vector<1x8x8xf32> to vector<2x8x8xf32>
    %213 = arith.addf %211, %212 : vector<2x8x8xf32>
    %cst_94 = arith.constant dense<0xFF800000> : vector<2x8xf32>
    %214 = vector.multi_reduction <maximumf>, %213, %cst_94 [2] : vector<2x8x8xf32> to vector<2x8xf32>
    %215 = vector.shape_cast %214 : vector<2x8xf32> to vector<2x8x1xf32>
    %216 = vector.broadcast %215 : vector<2x8x1xf32> to vector<2x8x8xf32>
    %217 = arith.subf %213, %216 : vector<2x8x8xf32>
    %218 = math.exp %217 : vector<2x8x8xf32>
    %cst_95 = arith.constant dense<0.000000e+00> : vector<2x8xf32>
    %219 = vector.multi_reduction <add>, %218, %cst_95 [2] : vector<2x8x8xf32> to vector<2x8xf32>
    %220 = vector.shape_cast %219 : vector<2x8xf32> to vector<2x8x1xf32>
    %cst_96 = arith.constant 9.99999968E-21 : f32
    %221 = vector.broadcast %cst_96 : f32 to vector<2x8x1xf32>
    %222 = arith.maximumf %220, %221 : vector<2x8x1xf32>
    %223 = tpu.reciprocal %222 {approx = true} : vector<2x8x1xf32> -> vector<2x8x1xf32>
    %224 = vector.broadcast %223 : vector<2x8x1xf32> to vector<2x8x8xf32>
    %225 = arith.mulf %218, %224 : vector<2x8x8xf32>
    %226 = vector.extract_strided_slice %204 {offsets = [0, 0, 0], sizes = [2, 8, 8], strides = [1, 1, 1]} : vector<2x8x32xf32> to vector<2x8x8xf32>
    "tpu.trace_start"() <{level = 10 : i32, message = "bqk,bkd->bqd"}> : () -> ()
    %cst_97 = arith.constant dense<0.000000e+00> : vector<2x8x8xf32>
    %227 = tpu.matmul %225, %226, %cst_97 {dimension_numbers = #tpu.dot_dimension_numbers<[2], [1], [1], [2], [0, 0, 0, 1, 1, 2], [0], [0]>} : vector<2x8x8xf32>, vector<2x8x8xf32>, vector<2x8x8xf32> -> vector<2x8x8xf32>
    "tpu.trace_stop"() : () -> ()
    %228 = vector.shape_cast %227 : vector<2x8x8xf32> to vector<16x8xf32>
    %229 = vector.extract_strided_slice %206 {offsets = [0, 0], sizes = [8, 32], strides = [1, 1]} : vector<32x32xf32> to vector<8x32xf32>
    %cst_98 = arith.constant dense<0.000000e+00> : vector<16x32xf32>
    %230 = tpu.matmul %228, %229, %cst_98 {dimension_numbers = #tpu.dot_dimension_numbers<[1], [0], [0], [1], [0, 0, 1, 1], [], []>} : vector<16x8xf32>, vector<8x32xf32>, vector<16x32xf32> -> vector<16x32xf32>
    %231 = vector.broadcast %208 : vector<1x32xf32> to vector<16x32xf32>
    %232 = arith.addf %231, %230 : vector<16x32xf32>
    %233 = vector.extract_strided_slice %200 {offsets = [0, 0, 8], sizes = [2, 8, 8], strides = [1, 1, 1]} : vector<2x8x32xf32> to vector<2x8x8xf32>
    %234 = vector.extract_strided_slice %202 {offsets = [0, 0, 8], sizes = [2, 8, 8], strides = [1, 1, 1]} : vector<2x8x32xf32> to vector<2x8x8xf32>
    "tpu.trace_start"() <{level = 10 : i32, message = "bqd,bkd->bqk"}> : () -> ()
    %cst_99 = arith.constant dense<0.000000e+00> : vector<2x8x8xf32>
    %235 = tpu.matmul %233, %234, %cst_99 {dimension_numbers = #tpu.dot_dimension_numbers<[2], [2], [1], [1], [0, 0, 0, 1, 1, 1], [0], [0]>} : vector<2x8x8xf32>, vector<2x8x8xf32>, vector<2x8x8xf32> -> vector<2x8x8xf32>
    "tpu.trace_stop"() : () -> ()
    %236 = vector.broadcast %1 : vector<1x8x8xf32> to vector<2x8x8xf32>
    %237 = arith.addf %235, %236 : vector<2x8x8xf32>
    %cst_100 = arith.constant dense<0xFF800000> : vector<2x8xf32>
    %238 = vector.multi_reduction <maximumf>, %237, %cst_100 [2] : vector<2x8x8xf32> to vector<2x8xf32>
    %239 = vector.shape_cast %238 : vector<2x8xf32> to vector<2x8x1xf32>
    %240 = vector.broadcast %239 : vector<2x8x1xf32> to vector<2x8x8xf32>
    %241 = arith.subf %237, %240 : vector<2x8x8xf32>
    %242 = math.exp %241 : vector<2x8x8xf32>
    %cst_101 = arith.constant dense<0.000000e+00> : vector<2x8xf32>
    %243 = vector.multi_reduction <add>, %242, %cst_101 [2] : vector<2x8x8xf32> to vector<2x8xf32>
    %244 = vector.shape_cast %243 : vector<2x8xf32> to vector<2x8x1xf32>
    %cst_102 = arith.constant 9.99999968E-21 : f32
    %245 = vector.broadcast %cst_102 : f32 to vector<2x8x1xf32>
    %246 = arith.maximumf %244, %245 : vector<2x8x1xf32>
    %247 = tpu.reciprocal %246 {approx = true} : vector<2x8x1xf32> -> vector<2x8x1xf32>
    %248 = vector.broadcast %247 : vector<2x8x1xf32> to vector<2x8x8xf32>
    %249 = arith.mulf %242, %248 : vector<2x8x8xf32>
    %250 = vector.extract_strided_slice %204 {offsets = [0, 0, 8], sizes = [2, 8, 8], strides = [1, 1, 1]} : vector<2x8x32xf32> to vector<2x8x8xf32>
    "tpu.trace_start"() <{level = 10 : i32, message = "bqk,bkd->bqd"}> : () -> ()
    %cst_103 = arith.constant dense<0.000000e+00> : vector<2x8x8xf32>
    %251 = tpu.matmul %249, %250, %cst_103 {dimension_numbers = #tpu.dot_dimension_numbers<[2], [1], [1], [2], [0, 0, 0, 1, 1, 2], [0], [0]>} : vector<2x8x8xf32>, vector<2x8x8xf32>, vector<2x8x8xf32> -> vector<2x8x8xf32>
    "tpu.trace_stop"() : () -> ()
    %252 = vector.shape_cast %251 : vector<2x8x8xf32> to vector<16x8xf32>
    %253 = vector.extract_strided_slice %206 {offsets = [8, 0], sizes = [8, 32], strides = [1, 1]} : vector<32x32xf32> to vector<8x32xf32>
    %cst_104 = arith.constant dense<0.000000e+00> : vector<16x32xf32>
    %254 = tpu.matmul %252, %253, %cst_104 {dimension_numbers = #tpu.dot_dimension_numbers<[1], [0], [0], [1], [0, 0, 1, 1], [], []>} : vector<16x8xf32>, vector<8x32xf32>, vector<16x32xf32> -> vector<16x32xf32>
    %255 = arith.addf %232, %254 : vector<16x32xf32>
    %256 = vector.extract_strided_slice %200 {offsets = [0, 0, 16], sizes = [2, 8, 8], strides = [1, 1, 1]} : vector<2x8x32xf32> to vector<2x8x8xf32>
    %257 = vector.extract_strided_slice %202 {offsets = [0, 0, 16], sizes = [2, 8, 8], strides = [1, 1, 1]} : vector<2x8x32xf32> to vector<2x8x8xf32>
    "tpu.trace_start"() <{level = 10 : i32, message = "bqd,bkd->bqk"}> : () -> ()
    %cst_105 = arith.constant dense<0.000000e+00> : vector<2x8x8xf32>
    %258 = tpu.matmul %256, %257, %cst_105 {dimension_numbers = #tpu.dot_dimension_numbers<[2], [2], [1], [1], [0, 0, 0, 1, 1, 1], [0], [0]>} : vector<2x8x8xf32>, vector<2x8x8xf32>, vector<2x8x8xf32> -> vector<2x8x8xf32>
    "tpu.trace_stop"() : () -> ()
    %259 = vector.broadcast %1 : vector<1x8x8xf32> to vector<2x8x8xf32>
    %260 = arith.addf %258, %259 : vector<2x8x8xf32>
    %cst_106 = arith.constant dense<0xFF800000> : vector<2x8xf32>
    %261 = vector.multi_reduction <maximumf>, %260, %cst_106 [2] : vector<2x8x8xf32> to vector<2x8xf32>
    %262 = vector.shape_cast %261 : vector<2x8xf32> to vector<2x8x1xf32>
    %263 = vector.broadcast %262 : vector<2x8x1xf32> to vector<2x8x8xf32>
    %264 = arith.subf %260, %263 : vector<2x8x8xf32>
    %265 = math.exp %264 : vector<2x8x8xf32>
    %cst_107 = arith.constant dense<0.000000e+00> : vector<2x8xf32>
    %266 = vector.multi_reduction <add>, %265, %cst_107 [2] : vector<2x8x8xf32> to vector<2x8xf32>
    %267 = vector.shape_cast %266 : vector<2x8xf32> to vector<2x8x1xf32>
    %cst_108 = arith.constant 9.99999968E-21 : f32
    %268 = vector.broadcast %cst_108 : f32 to vector<2x8x1xf32>
    %269 = arith.maximumf %267, %268 : vector<2x8x1xf32>
    %270 = tpu.reciprocal %269 {approx = true} : vector<2x8x1xf32> -> vector<2x8x1xf32>
    %271 = vector.broadcast %270 : vector<2x8x1xf32> to vector<2x8x8xf32>
    %272 = arith.mulf %265, %271 : vector<2x8x8xf32>
    %273 = vector.extract_strided_slice %204 {offsets = [0, 0, 16], sizes = [2, 8, 8], strides = [1, 1, 1]} : vector<2x8x32xf32> to vector<2x8x8xf32>
    "tpu.trace_start"() <{level = 10 : i32, message = "bqk,bkd->bqd"}> : () -> ()
    %cst_109 = arith.constant dense<0.000000e+00> : vector<2x8x8xf32>
    %274 = tpu.matmul %272, %273, %cst_109 {dimension_numbers = #tpu.dot_dimension_numbers<[2], [1], [1], [2], [0, 0, 0, 1, 1, 2], [0], [0]>} : vector<2x8x8xf32>, vector<2x8x8xf32>, vector<2x8x8xf32> -> vector<2x8x8xf32>
    "tpu.trace_stop"() : () -> ()
    %275 = vector.shape_cast %274 : vector<2x8x8xf32> to vector<16x8xf32>
    %276 = vector.extract_strided_slice %206 {offsets = [16, 0], sizes = [8, 32], strides = [1, 1]} : vector<32x32xf32> to vector<8x32xf32>
    %cst_110 = arith.constant dense<0.000000e+00> : vector<16x32xf32>
    %277 = tpu.matmul %275, %276, %cst_110 {dimension_numbers = #tpu.dot_dimension_numbers<[1], [0], [0], [1], [0, 0, 1, 1], [], []>} : vector<16x8xf32>, vector<8x32xf32>, vector<16x32xf32> -> vector<16x32xf32>
    %278 = arith.addf %255, %277 : vector<16x32xf32>
    %279 = vector.extract_strided_slice %200 {offsets = [0, 0, 24], sizes = [2, 8, 8], strides = [1, 1, 1]} : vector<2x8x32xf32> to vector<2x8x8xf32>
    %280 = vector.extract_strided_slice %202 {offsets = [0, 0, 24], sizes = [2, 8, 8], strides = [1, 1, 1]} : vector<2x8x32xf32> to vector<2x8x8xf32>
    "tpu.trace_start"() <{level = 10 : i32, message = "bqd,bkd->bqk"}> : () -> ()
    %cst_111 = arith.constant dense<0.000000e+00> : vector<2x8x8xf32>
    %281 = tpu.matmul %279, %280, %cst_111 {dimension_numbers = #tpu.dot_dimension_numbers<[2], [2], [1], [1], [0, 0, 0, 1, 1, 1], [0], [0]>} : vector<2x8x8xf32>, vector<2x8x8xf32>, vector<2x8x8xf32> -> vector<2x8x8xf32>
    "tpu.trace_stop"() : () -> ()
    %282 = vector.broadcast %1 : vector<1x8x8xf32> to vector<2x8x8xf32>
    %283 = arith.addf %281, %282 : vector<2x8x8xf32>
    %cst_112 = arith.constant dense<0xFF800000> : vector<2x8xf32>
    %284 = vector.multi_reduction <maximumf>, %283, %cst_112 [2] : vector<2x8x8xf32> to vector<2x8xf32>
    %285 = vector.shape_cast %284 : vector<2x8xf32> to vector<2x8x1xf32>
    %286 = vector.broadcast %285 : vector<2x8x1xf32> to vector<2x8x8xf32>
    %287 = arith.subf %283, %286 : vector<2x8x8xf32>
    %288 = math.exp %287 : vector<2x8x8xf32>
    %cst_113 = arith.constant dense<0.000000e+00> : vector<2x8xf32>
    %289 = vector.multi_reduction <add>, %288, %cst_113 [2] : vector<2x8x8xf32> to vector<2x8xf32>
    %290 = vector.shape_cast %289 : vector<2x8xf32> to vector<2x8x1xf32>
    %cst_114 = arith.constant 9.99999968E-21 : f32
    %291 = vector.broadcast %cst_114 : f32 to vector<2x8x1xf32>
    %292 = arith.maximumf %290, %291 : vector<2x8x1xf32>
    %293 = tpu.reciprocal %292 {approx = true} : vector<2x8x1xf32> -> vector<2x8x1xf32>
    %294 = vector.broadcast %293 : vector<2x8x1xf32> to vector<2x8x8xf32>
    %295 = arith.mulf %288, %294 : vector<2x8x8xf32>
    %296 = vector.extract_strided_slice %204 {offsets = [0, 0, 24], sizes = [2, 8, 8], strides = [1, 1, 1]} : vector<2x8x32xf32> to vector<2x8x8xf32>
    "tpu.trace_start"() <{level = 10 : i32, message = "bqk,bkd->bqd"}> : () -> ()
    %cst_115 = arith.constant dense<0.000000e+00> : vector<2x8x8xf32>
    %297 = tpu.matmul %295, %296, %cst_115 {dimension_numbers = #tpu.dot_dimension_numbers<[2], [1], [1], [2], [0, 0, 0, 1, 1, 2], [0], [0]>} : vector<2x8x8xf32>, vector<2x8x8xf32>, vector<2x8x8xf32> -> vector<2x8x8xf32>
    "tpu.trace_stop"() : () -> ()
    %298 = vector.shape_cast %297 : vector<2x8x8xf32> to vector<16x8xf32>
    %299 = vector.extract_strided_slice %206 {offsets = [24, 0], sizes = [8, 32], strides = [1, 1]} : vector<32x32xf32> to vector<8x32xf32>
    %cst_116 = arith.constant dense<0.000000e+00> : vector<16x32xf32>
    %300 = tpu.matmul %298, %299, %cst_116 {dimension_numbers = #tpu.dot_dimension_numbers<[1], [0], [0], [1], [0, 0, 1, 1], [], []>} : vector<16x8xf32>, vector<8x32xf32>, vector<16x32xf32> -> vector<16x32xf32>
    %301 = arith.addf %278, %300 : vector<16x32xf32>
    %302 = arith.addf %189, %301 : vector<16x32xf32>
    %c1_117 = arith.constant 1 : index
    %c0_118 = arith.constant 0 : index
    %c0_119 = arith.constant 0 : index
    %303 = vector.load %arg11[%c1_117, %c0_118, %c0_119] : memref<2x1x32xf32, #tpu.memory_space<vmem>>, vector<1x1x32xf32>
    %304 = vector.shape_cast %303 : vector<1x1x32xf32> to vector<1x32xf32>
    %c1_120 = arith.constant 1 : index
    %c0_121 = arith.constant 0 : index
    %c0_122 = arith.constant 0 : index
    %305 = vector.load %arg12[%c1_120, %c0_121, %c0_122] : memref<2x1x32xf32, #tpu.memory_space<vmem>>, vector<1x1x32xf32>
    %306 = vector.shape_cast %305 : vector<1x1x32xf32> to vector<1x32xf32>
    %cst_123 = arith.constant dense<0.000000e+00> : vector<16xf32>
    %307 = vector.multi_reduction <add>, %302, %cst_123 [1] : vector<16x32xf32> to vector<16xf32>
    %308 = vector.shape_cast %307 : vector<16xf32> to vector<16x1xf32>
    %cst_124 = arith.constant 3.200000e+01 : f32
    %309 = vector.broadcast %cst_124 : f32 to vector<16x1xf32>
    %310 = arith.divf %308, %309 : vector<16x1xf32>
    %311 = vector.broadcast %310 : vector<16x1xf32> to vector<16x32xf32>
    %312 = arith.subf %302, %311 : vector<16x32xf32>
    %313 = arith.mulf %312, %312 : vector<16x32xf32>
    %cst_125 = arith.constant dense<0.000000e+00> : vector<16xf32>
    %314 = vector.multi_reduction <add>, %313, %cst_125 [1] : vector<16x32xf32> to vector<16xf32>
    %315 = vector.shape_cast %314 : vector<16xf32> to vector<16x1xf32>
    %cst_126 = arith.constant 3.200000e+01 : f32
    %316 = vector.broadcast %cst_126 : f32 to vector<16x1xf32>
    %317 = arith.divf %315, %316 : vector<16x1xf32>
    %318 = vector.broadcast %310 : vector<16x1xf32> to vector<16x32xf32>
    %319 = arith.subf %302, %318 : vector<16x32xf32>
    %cst_127 = arith.constant 9.99999974E-6 : f32
    %320 = vector.broadcast %cst_127 : f32 to vector<16x1xf32>
    %321 = arith.addf %317, %320 : vector<16x1xf32>
    %322 = math.rsqrt %321 : vector<16x1xf32>
    %323 = vector.broadcast %322 : vector<16x1xf32> to vector<16x32xf32>
    %324 = arith.mulf %319, %323 : vector<16x32xf32>
    %325 = vector.broadcast %304 : vector<1x32xf32> to vector<16x32xf32>
    %326 = arith.mulf %324, %325 : vector<16x32xf32>
    %327 = vector.broadcast %306 : vector<1x32xf32> to vector<16x32xf32>
    %328 = arith.addf %326, %327 : vector<16x32xf32>
    %c1_128 = arith.constant 1 : index
    %c0_129 = arith.constant 0 : index
    %c0_130 = arith.constant 0 : index
    %329 = vector.load %arg7[%c1_128, %c0_129, %c0_130] : memref<2x32x64xf32, #tpu.memory_space<vmem>>, vector<1x32x64xf32>
    %330 = vector.shape_cast %329 : vector<1x32x64xf32> to vector<32x64xf32>
    %cst_131 = arith.constant dense<0.000000e+00> : vector<16x64xf32>
    %331 = tpu.matmul %328, %330, %cst_131 {dimension_numbers = #tpu.dot_dimension_numbers<[1], [0], [0], [1], [0, 0, 1, 1], [], []>} : vector<16x32xf32>, vector<32x64xf32>, vector<16x64xf32> -> vector<16x64xf32>
    %c1_132 = arith.constant 1 : index
    %c0_133 = arith.constant 0 : index
    %c0_134 = arith.constant 0 : index
    %332 = vector.load %arg8[%c1_132, %c0_133, %c0_134] : memref<2x1x64xf32, #tpu.memory_space<vmem>>, vector<1x1x64xf32>
    %333 = vector.shape_cast %332 : vector<1x1x64xf32> to vector<1x64xf32>
    %334 = vector.broadcast %333 : vector<1x64xf32> to vector<16x64xf32>
    %335 = arith.addf %331, %334 : vector<16x64xf32>
    %cst_135 = arith.constant 0.000000e+00 : f32
    %336 = vector.broadcast %cst_135 : f32 to vector<16x64xf32>
    %337 = arith.maximumf %335, %336 : vector<16x64xf32>
    %c1_136 = arith.constant 1 : index
    %c0_137 = arith.constant 0 : index
    %c0_138 = arith.constant 0 : index
    %338 = vector.load %arg9[%c1_136, %c0_137, %c0_138] : memref<2x64x32xf32, #tpu.memory_space<vmem>>, vector<1x64x32xf32>
    %339 = vector.shape_cast %338 : vector<1x64x32xf32> to vector<64x32xf32>
    %cst_139 = arith.constant dense<0.000000e+00> : vector<16x32xf32>
    %340 = tpu.matmul %337, %339, %cst_139 {dimension_numbers = #tpu.dot_dimension_numbers<[1], [0], [0], [1], [0, 0, 1, 1], [], []>} : vector<16x64xf32>, vector<64x32xf32>, vector<16x32xf32> -> vector<16x32xf32>
    %c1_140 = arith.constant 1 : index
    %c0_141 = arith.constant 0 : index
    %c0_142 = arith.constant 0 : index
    %341 = vector.load %arg10[%c1_140, %c0_141, %c0_142] : memref<2x1x32xf32, #tpu.memory_space<vmem>>, vector<1x1x32xf32>
    %342 = vector.shape_cast %341 : vector<1x1x32xf32> to vector<1x32xf32>
    %343 = vector.broadcast %342 : vector<1x32xf32> to vector<16x32xf32>
    %344 = arith.addf %340, %343 : vector<16x32xf32>
    %345 = arith.addf %328, %344 : vector<16x32xf32>
    %c1_143 = arith.constant 1 : index
    %c0_144 = arith.constant 0 : index
    %c0_145 = arith.constant 0 : index
    %346 = vector.load %arg13[%c1_143, %c0_144, %c0_145] : memref<2x1x32xf32, #tpu.memory_space<vmem>>, vector<1x1x32xf32>
    %347 = vector.shape_cast %346 : vector<1x1x32xf32> to vector<1x32xf32>
    %c1_146 = arith.constant 1 : index
    %c0_147 = arith.constant 0 : index
    %c0_148 = arith.constant 0 : index
    %348 = vector.load %arg14[%c1_146, %c0_147, %c0_148] : memref<2x1x32xf32, #tpu.memory_space<vmem>>, vector<1x1x32xf32>
    %349 = vector.shape_cast %348 : vector<1x1x32xf32> to vector<1x32xf32>
    %cst_149 = arith.constant dense<0.000000e+00> : vector<16xf32>
    %350 = vector.multi_reduction <add>, %345, %cst_149 [1] : vector<16x32xf32> to vector<16xf32>
    %351 = vector.shape_cast %350 : vector<16xf32> to vector<16x1xf32>
    %cst_150 = arith.constant 3.200000e+01 : f32
    %352 = vector.broadcast %cst_150 : f32 to vector<16x1xf32>
    %353 = arith.divf %351, %352 : vector<16x1xf32>
    %354 = vector.broadcast %353 : vector<16x1xf32> to vector<16x32xf32>
    %355 = arith.subf %345, %354 : vector<16x32xf32>
    %356 = arith.mulf %355, %355 : vector<16x32xf32>
    %cst_151 = arith.constant dense<0.000000e+00> : vector<16xf32>
    %357 = vector.multi_reduction <add>, %356, %cst_151 [1] : vector<16x32xf32> to vector<16xf32>
    %358 = vector.shape_cast %357 : vector<16xf32> to vector<16x1xf32>
    %cst_152 = arith.constant 3.200000e+01 : f32
    %359 = vector.broadcast %cst_152 : f32 to vector<16x1xf32>
    %360 = arith.divf %358, %359 : vector<16x1xf32>
    %361 = vector.broadcast %353 : vector<16x1xf32> to vector<16x32xf32>
    %362 = arith.subf %345, %361 : vector<16x32xf32>
    %cst_153 = arith.constant 9.99999974E-6 : f32
    %363 = vector.broadcast %cst_153 : f32 to vector<16x1xf32>
    %364 = arith.addf %360, %363 : vector<16x1xf32>
    %365 = math.rsqrt %364 : vector<16x1xf32>
    %366 = vector.broadcast %365 : vector<16x1xf32> to vector<16x32xf32>
    %367 = arith.mulf %362, %366 : vector<16x32xf32>
    %368 = vector.broadcast %347 : vector<1x32xf32> to vector<16x32xf32>
    %369 = arith.mulf %367, %368 : vector<16x32xf32>
    %370 = vector.broadcast %349 : vector<1x32xf32> to vector<16x32xf32>
    %371 = arith.addf %369, %370 : vector<16x32xf32>
    %c0_154 = arith.constant 0 : index
    %c0_155 = arith.constant 0 : index
    %372 = vector.load %arg15[%c0_154, %c0_155] : memref<32x32xf32, #tpu.memory_space<vmem>>, vector<32x32xf32>
    %cst_156 = arith.constant dense<0.000000e+00> : vector<16x32xf32>
    %373 = tpu.matmul %371, %372, %cst_156 {dimension_numbers = #tpu.dot_dimension_numbers<[1], [0], [0], [1], [0, 0, 1, 1], [], []>} : vector<16x32xf32>, vector<32x32xf32>, vector<16x32xf32> -> vector<16x32xf32>
    %c0_157 = arith.constant 0 : index
    %c0_158 = arith.constant 0 : index
    %374 = vector.load %arg16[%c0_157, %c0_158] : memref<1x32xf32, #tpu.memory_space<vmem>>, vector<1x32xf32>
    %375 = vector.broadcast %374 : vector<1x32xf32> to vector<16x32xf32>
    %376 = arith.addf %373, %375 : vector<16x32xf32>
    %cst_159 = arith.constant 0.000000e+00 : f32
    %377 = vector.broadcast %cst_159 : f32 to vector<16x32xf32>
    %378 = arith.maximumf %376, %377 : vector<16x32xf32>
    %c0_160 = arith.constant 0 : index
    %c0_161 = arith.constant 0 : index
    %379 = vector.load %arg17[%c0_160, %c0_161] : memref<32x40xf32, #tpu.memory_space<vmem>>, vector<32x40xf32>
    %cst_162 = arith.constant dense<0.000000e+00> : vector<16x40xf32>
    %380 = tpu.matmul %378, %379, %cst_162 {dimension_numbers = #tpu.dot_dimension_numbers<[1], [0], [0], [1], [0, 0, 1, 1], [], []>} : vector<16x32xf32>, vector<32x40xf32>, vector<16x40xf32> -> vector<16x40xf32>
    %c0_163 = arith.constant 0 : index
    %c0_164 = arith.constant 0 : index
    %381 = vector.load %arg18[%c0_163, %c0_164] : memref<1x40xf32, #tpu.memory_space<vmem>>, vector<1x40xf32>
    %382 = vector.broadcast %381 : vector<1x40xf32> to vector<16x40xf32>
    %383 = arith.addf %380, %382 : vector<16x40xf32>
    %384 = vector.shape_cast %383 : vector<16x40xf32> to vector<2x8x40xf32>
    %c0_165 = arith.constant 0 : index
    %c0_166 = arith.constant 0 : index
    %c0_167 = arith.constant 0 : index
    %385 = vector.load %arg19[%c0_165, %c0_166, %c0_167] : memref<2x8x40xf32, #tpu.memory_space<vmem>>, vector<2x8x40xf32>
    tpu.vector_store %arg19[%c0_165, %c0_166, %c0_167], %384 {strides = array<i32>} : memref<2x8x40xf32, #tpu.memory_space<vmem>>, vector<2x8x40xf32>,
    return
  }
}

</mosaic_0001>

<bundles_post_ra>
// kernel: react_embedding_forward.3
= control target key start
LH: loop header
LB: loop body
LE: loop exit
PB: predicated region body
PF: predicated region fallthrough
CT: control target
= control target key end

     0   :  { %vm77_vm0 = vcmask 1043456   ;;  %v734_v3 = vmov 0.0   ;;  %vm735_vm1 = vmmov 0   ;;  %vm73_vm2 = vcmask 359424   ;;  %s1173_s1 = inlined_call_operand.vmem [shape: f32[300,32], index: 1, kind: input, shape index: {}]   ;;  %s1174_s4 = inlined_call_operand.vmem [shape: f32[600,32], index: 4, kind: input, shape index: {}]   ;;  %s1175_s0 = inlined_call_operand.vmem [shape: f32[6,300], index: 0, kind: input, shape index: {}]   ;;  %s1176_s3 = inlined_call_operand.vmem [shape: f32[2,600], index: 3, kind: input, shape index: {}]   ;;  %s1177_s2 = inlined_call_operand.vmem [shape: f32[1,32], index: 2, kind: input, shape index: {}]   ;;  %s1178_s6 = inlined_call_operand.vmem [shape: f32[6,32], index: 6, kind: output, shape index: {0}]   ;;  %s1179_s5 = inlined_call_operand.vmem [shape: f32[1,32], index: 5, kind: input, shape index: {}]   ;;  %s1180_s7 = inlined_call_operand.vmem [shape: f32[2,32], index: 7, kind: output, shape index: {1}]  }
   0x1   :  { %v59_v0 = vld [vmem:[%s1173_s1 + $0xf8] sm:$0xff]  ;;  %v58_v2 = vld [vmem:[%s1173_s1 + $0xf0] sm:$0xff]  ;;  %690 = vmatprep.subr.mxu1 %v734_v3  ;;  %702 = vmatprep.mubr.msk.f32.mxu1 %vm735_vm1, %v734_v3  ;;  %v65_v5 = vld [vmem:[%s1173_s1 + $0x128] sm:$0xf]  ;;  %v736_v55 = vmov 1983009808   ;;  %v313_v57 = vlaneseq }
   0x2   :  { %v43_v1 = vld [vmem:[%s1173_s1 + $0x78] sm:$0xff]  ;;  %566 = vmatprep.subr.mxu0 %v59_v0  ;;  %v42_v4 = vld [vmem:[%s1173_s1 + $0x70] sm:$0xff]  ;;  %691 = vmatpush3.msk.msra.mxu1 %vm77_vm0, %v65_v5  ;;  %v57_v6 = vld [vmem:[%s1173_s1 + $0xe8] sm:$0xff]  ;;  %v311_v56 = vunpack.c.l.s4 %v736_v55  ;;  %vm337_vm3 = vcmask 719872   ;;  %vm221_vm4 = vcmask 259072   ;;  %vm550_vm5 = vcmask 254976  }
   0x3   :  { %567 = vmatpush3.msra.mxu0 %v43_v1  ;;  %v64_v7 = vld [vmem:[%s1173_s1 + $0x120] sm:$0xff]  ;;  %692 = vmatprep.subr.mxu1 %v734_v3  ;;  %v41_v8 = vld [vmem:[%s1173_s1 + $0x68] sm:$0xff]  ;;  %v63_v9 = vld [vmem:[%s1173_s1 + $0x118] sm:$0xff] }
   0x4   :  { %568 = vmatprep.subr.mxu0 %v58_v2  ;;  %693 = vmatpush3.msra.mxu1 %v64_v7  ;;  %v56_v10 = vld [vmem:[%s1173_s1 + $0xe0] sm:$0xff]  ;;  %v62_v12 = vld [vmem:[%s1173_s1 + $0x110] sm:$0xff]  ;;  %v55_v13 = vld [vmem:[%s1173_s1 + $0xd8] sm:$0xff]  ;;  %v312_v2 = vunpack.c.0.s8 %v311_v56 }
   0x5   :  { %569 = vmatpush3.msra.mxu0 %v42_v4  ;;  %694 = vmatprep.subr.mxu1 %v734_v3  ;;  %v40_v11 = vld [vmem:[%s1173_s1 + $0x60] sm:$0xff]  ;;  %v39_v14 = vld [vmem:[%s1173_s1 + $0x58] sm:$0xff]  ;;  %v61_v15 = vld [vmem:[%s1173_s1 + $0x108] sm:$0xff]  ;;  %v314_v4 = vshrl.u32 %v313_v57, 7 }
   0x6   :  { %570 = vmatprep.subr.mxu0 %v57_v6  ;;  %695 = vmatpush3.msra.mxu1 %v63_v9  ;;  %v54_v16 = vld [vmem:[%s1173_s1 + $0xd0] sm:$0xff]  ;;  %v60_v18 = vld [vmem:[%s1173_s1 + $0x100] sm:$0xff]  ;;  %v53_v19 = vld [vmem:[%s1173_s1 + $0xc8] sm:$0xff] }
   0x7   :  { %571 = vmatpush3.msra.mxu0 %v41_v8  ;;  %696 = vmatprep.subr.mxu1 %v734_v3  ;;  %v38_v17 = vld [vmem:[%s1173_s1 + $0x50] sm:$0xff]  ;;  %v256_v20 = vld [vmem:[%s1174_s4 + $0xf8] sm:$0xff]  ;;  %v37_v21 = vld [vmem:[%s1173_s1 + $0x48] sm:$0xff] }
   0x8   :  { %572 = vmatprep.subr.mxu0 %v56_v10  ;;  %697 = vmatpush3.msra.mxu1 %v62_v12  ;;  %v27_v22 = vld [vmem:[%s1175_s0 + $0x10] sm:$0x3f]  ;;  %v52_v23 = vld [vmem:[%s1173_s1 + $0xc0] sm:$0xff]  ;;  %v240_v24 = vld [vmem:[%s1174_s4 + $0x78] sm:$0xff] }
   0x9   :  { %573 = vmatpush3.msra.mxu0 %v40_v11  ;;  %698 = vmatprep.subr.mxu1 %v734_v3  ;;  %v36_v25 = vld [vmem:[%s1173_s1 + $0x40] sm:$0xff]  ;;  %v255_v26 = vld [vmem:[%s1174_s4 + $0xf0] sm:$0xff]  ;;  %v51_v27 = vld [vmem:[%s1173_s1 + $0xb8] sm:$0xff] }
   0xa   :  { %574 = vmatprep.subr.mxu0 %v55_v13  ;;  %699 = vmatpush3.msra.mxu1 %v61_v15  ;;  %v239_v28 = vld [vmem:[%s1174_s4 + $0x70] sm:$0xff]  ;;  %v35_v29 = vld [vmem:[%s1173_s1 + $0x38] sm:$0xff]  ;;  %v254_v30 = vld [vmem:[%s1174_s4 + $0xe8] sm:$0xff]  ;;  %v995_v13 = vsub.s32 %v312_v2, %v314_v4 }
   0xb   :  { %575 = vmatpush3.msra.mxu0 %v39_v14  ;;  %700 = vmatprep.subr.mxu1 %v734_v3  ;;  %v50_v31 = vld [vmem:[%s1173_s1 + $0xb0] sm:$0xff]  ;;  %v238_v32 = vld [vmem:[%s1174_s4 + $0x68] sm:$0xff]  ;;  %v253_v34 = vld [vmem:[%s1174_s4 + $0xe0] sm:$0xff] }
   0xc   :  { %576 = vmatprep.subr.mxu0 %v54_v16  ;;  %701 = vmatpush3.msra.mxu1 %v60_v18  ;;  %v34_v33 = vld [vmem:[%s1173_s1 + $0x30] sm:$0xff]  ;;  %v49_v35 = vld [vmem:[%s1173_s1 + $0xa8] sm:$0xff]  ;;  %v237_v36 = vld [vmem:[%s1174_s4 + $0x60] sm:$0xff] }
   0xd   :  { %577 = vmatpush3.msra.mxu0 %v38_v17  ;;  %608 = vmatprep.subr.mxu1 %v256_v20  ;;  %v33_v37 = vld [vmem:[%s1173_s1 + $0x28] sm:$0xff]  ;;  %v252_v38 = vld [vmem:[%s1174_s4 + $0xd8] sm:$0xff]  ;;  %v48_v39 = vld [vmem:[%s1173_s1 + $0xa0] sm:$0xff] }
   0xe   :  { %578 = vmatprep.subr.mxu0 %v53_v19  ;;  %703 = vmatmul.mubr.msk.f32.vlgmr.msra.gmra.mxu1 %vm73_vm2, %v27_v22  ;;  %v236_v40 = vld [vmem:[%s1174_s4 + $0x58] sm:$0xff]  ;;  %v32_v41 = vld [vmem:[%s1173_s1 + $0x20] sm:$0xff]  ;;  %v251_v42 = vld [vmem:[%s1174_s4 + $0xd0] sm:$0xff] }
   0xf   :  { %579 = vmatpush3.msra.mxu0 %v37_v21  ;;  %609 = vmatpush3.msra.mxu1 %v240_v24  ;;  %v47_v43 = vld [vmem:[%s1173_s1 + $0x98] sm:$0xff]  ;;  %v235_v44 = vld [vmem:[%s1174_s4 + $0x50] sm:$0xff]  ;;  %v250_v46 = vld [vmem:[%s1174_s4 + $0xc8] sm:$0xff] }
  0x10   :  { %580 = vmatprep.subr.mxu0 %v52_v23  ;;  %610 = vmatprep.subr.mxu1 %v255_v26  ;;  %v31_v45 = vld [vmem:[%s1173_s1 + $0x18] sm:$0xff]  ;;  %v46_v47 = vld [vmem:[%s1173_s1 + $0x90] sm:$0xff]  ;;  %v234_v48 = vld [vmem:[%s1174_s4 + $0x48] sm:$0xff] }
  0x11   :  { %581 = vmatpush3.msra.mxu0 %v36_v25  ;;  %611 = vmatpush3.msra.mxu1 %v239_v28  ;;  %v30_v49 = vld [vmem:[%s1173_s1 + $0x10] sm:$0xff]  ;;  %v249_v50 = vld [vmem:[%s1174_s4 + $0xc0] sm:$0xff]  ;;  %v45_v51 = vld [vmem:[%s1173_s1 + $0x88] sm:$0xff] }
  0x12   :  { %582 = vmatprep.subr.mxu0 %v51_v27  ;;  %612 = vmatprep.subr.mxu1 %v254_v30  ;;  %v233_v52 = vld [vmem:[%s1174_s4 + $0x40] sm:$0xff]  ;;  %v29_v53 = vld [vmem:[%s1173_s1 + $0x8] sm:$0xff]  ;;  %v248_v54 = vld [vmem:[%s1174_s4 + $0xb8] sm:$0xff] }
  0x13   :  { %583 = vmatpush3.msra.mxu0 %v35_v29  ;;  %613 = vmatpush3.msra.mxu1 %v238_v32  ;;  %v44_v58 = vld [vmem:[%s1173_s1 + $0x80] sm:$0xff]  ;;  %v26_v59 = vld [vmem:[%s1175_s0 + $0x8] sm:$0x3f]  ;;  %v232_v61 = vld [vmem:[%s1174_s4 + $0x38] sm:$0xff] }
  0x14   :  { %584 = vmatprep.subr.mxu0 %v50_v31  ;;  %614 = vmatprep.subr.mxu1 %v253_v34  ;;  %v28_v60 = vld [vmem:[%s1173_s1] sm:$0xff]  ;;  %v247_v63 = vld [vmem:[%s1174_s4 + $0xb0] sm:$0xff]  ;;  %v288_v0 = vld [vmem:[%s1174_s4 + $0x1f8] sm:$0xff] }
  0x15   :  { %585 = vmatpush3.msra.mxu0 %v34_v33  ;;  %615 = vmatpush3.msra.mxu1 %v237_v36  ;;  %v25_v62 = vld [vmem:[%s1175_s0] sm:$0x3f]  ;;  %v231_v1 = vld [vmem:[%s1174_s4 + $0x30] sm:$0xff]  ;;  %v272_v5 = vld [vmem:[%s1174_s4 + $0x178] sm:$0xff] }
  0x16   :  { %586 = vmatprep.subr.mxu0 %v49_v35  ;;  %616 = vmatprep.subr.mxu1 %v252_v38  ;;  %v246_v6 = vld [vmem:[%s1174_s4 + $0xa8] sm:$0xff]  ;;  %v287_v7 = vld [vmem:[%s1174_s4 + $0x1f0] sm:$0xff]  ;;  %v245_v10 = vld [vmem:[%s1174_s4 + $0xa0] sm:$0xff] }
  0x17   :  { %587 = vmatpush3.msra.mxu0 %v33_v37  ;;  %617 = vmatpush3.msra.mxu1 %v236_v40  ;;  %v230_v8 = vld [vmem:[%s1174_s4 + $0x28] sm:$0xff]  ;;  %v271_v9 = vld [vmem:[%s1174_s4 + $0x170] sm:$0xff]  ;;  %v229_v12 = vld [vmem:[%s1174_s4 + $0x20] sm:$0xff] }
  0x18   :  { %588 = vmatprep.subr.mxu0 %v48_v39  ;;  %618 = vmatprep.subr.mxu1 %v251_v42  ;;  %v286_v11 = vld [vmem:[%s1174_s4 + $0x1e8] sm:$0xff]  ;;  %v244_v15 = vld [vmem:[%s1174_s4 + $0x98] sm:$0xff]  ;;  %v1006_v16 = vld [vmem:[%s1176_s3] sm:$0xff] }
  0x19   :  { %589 = vmatpush3.msra.mxu0 %v32_v41  ;;  %619 = vmatpush3.msra.mxu1 %v235_v44  ;;  %v270_v14 = vld [vmem:[%s1174_s4 + $0x168] sm:$0xff]  ;;  %v285_v17 = vld [vmem:[%s1174_s4 + $0x1e0] sm:$0xff]  ;;  %v228_v18 = vld [vmem:[%s1174_s4 + $0x18] sm:$0xff]  ;;  %v316_v23 = vrot.slane %v1006_v16, %v995_v13 }
  0x1a   :  { %590 = vmatprep.subr.mxu0 %v47_v43  ;;  %620 = vmatprep.subr.mxu1 %v250_v46  ;;  %v269_v19 = vld [vmem:[%s1174_s4 + $0x160] sm:$0xff]  ;;  %v243_v20 = vld [vmem:[%s1174_s4 + $0x90] sm:$0xff]  ;;  %v284_v21 = vld [vmem:[%s1174_s4 + $0x1d8] sm:$0xff] }
  0x1b   :  { %591 = vmatpush3.msra.mxu0 %v31_v45  ;;  %621 = vmatpush3.msra.mxu1 %v234_v48  ;;  %v227_v22 = vld [vmem:[%s1174_s4 + $0x10] sm:$0xff]  ;;  %v268_v24 = vld [vmem:[%s1174_s4 + $0x158] sm:$0xff]  ;;  %v242_v25 = vld [vmem:[%s1174_s4 + $0x88] sm:$0xff]  ;;  %v324_v32 = vcombine.high %v316_v23, %v316_v23  ;;  %v309_v48 = vcombine.high %v1006_v16, %v1006_v16 }
  0x1c   :  { %592 = vmatprep.subr.mxu0 %v46_v47  ;;  %622 = vmatprep.subr.mxu1 %v249_v50  ;;  %v283_v26 = vld [vmem:[%s1174_s4 + $0x1d0] sm:$0xff]  ;;  %v226_v27 = vld [vmem:[%s1174_s4 + $0x8] sm:$0xff]  ;;  %v241_v29 = vld [vmem:[%s1174_s4 + $0x80] sm:$0xff] }
  0x1d   :  { %593 = vmatpush3.msra.mxu0 %v30_v49  ;;  %623 = vmatpush3.msra.mxu1 %v233_v52  ;;  %v267_v28 = vld [vmem:[%s1174_s4 + $0x150] sm:$0xff]  ;;  %v282_v30 = vld [vmem:[%s1174_s4 + $0x1c8] sm:$0xff]  ;;  %v225_v31 = vld [vmem:[%s1174_s4] sm:$0xff]  ;;  %v323_v55 = vrot.slane %v309_v48, %v995_v13 }
  0x1e   :  { %594 = vmatprep.subr.mxu0 %v45_v51  ;;  %624 = vmatprep.subr.mxu1 %v248_v54  ;;  %v266_v33 = vld [vmem:[%s1174_s4 + $0x148] sm:$0xff]  ;;  %v281_v34 = vld [vmem:[%s1174_s4 + $0x1c0] sm:$0xff]  ;;  %v299_v36 = vld [vmem:[%s1174_s4 + $0x250] sm:$0xff] }
  0x1f   :  { %595 = vmatpush3.msra.mxu0 %v29_v53  ;;  %145 = vmatprep.mubr.f32.mxu0 %v26_v59  ;;  %v265_v35 = vld [vmem:[%s1174_s4 + $0x140] sm:$0xff]  ;;  %v280_v37 = vld [vmem:[%s1174_s4 + $0x1b8] sm:$0xff]  ;;  %v298_v39 = vld [vmem:[%s1174_s4 + $0x248] sm:$0xff] }
  0x20   :  { %596 = vmatprep.subr.mxu0 %v44_v58  ;;  %625 = vmatpush3.msra.mxu1 %v232_v61  ;;  %v264_v38 = vld [vmem:[%s1174_s4 + $0x138] sm:$0xff]  ;;  %v279_v40 = vld [vmem:[%s1174_s4 + $0x1b0] sm:$0xff]  ;;  %v297_v42 = vld [vmem:[%s1174_s4 + $0x240] sm:$0xff] }
  0x21   :  { %597 = vmatpush3.msra.mxu0 %v28_v60  ;;  %626 = vmatprep.subr.mxu1 %v247_v63  ;;  %v263_v41 = vld [vmem:[%s1174_s4 + $0x130] sm:$0xff]  ;;  %v278_v43 = vld [vmem:[%s1174_s4 + $0x1a8] sm:$0xff]  ;;  %v296_v45 = vld [vmem:[%s1174_s4 + $0x238] sm:$0xff] }
  0x22   :  { %146 = vmatmul.mubr.f32.vlgmr.msra.gmra.mxu0 %v25_v62  ;;  %643 = vmatprep.subr.mxu0 %v288_v0  ;;  %v262_v44 = vld [vmem:[%s1174_s4 + $0x128] sm:$0xff]  ;;  %v277_v46 = vld [vmem:[%s1174_s4 + $0x1a0] sm:$0xff]  ;;  %v295_v49 = vld [vmem:[%s1174_s4 + $0x230] sm:$0xff]  ;;  %v325_v62 = vcombine.high %v323_v55, %v323_v55 }
  0x23   :  { %627 = vmatpush3.msra.mxu1 %v231_v1  ;;  %644 = vmatpush3.msra.mxu0 %v272_v5  ;;  %v261_v47 = vld [vmem:[%s1174_s4 + $0x120] sm:$0xff]  ;;  %v276_v50 = vld [vmem:[%s1174_s4 + $0x198] sm:$0xff]  ;;  %v294_v52 = vld [vmem:[%s1174_s4 + $0x228] sm:$0xff] }
  0x24   :  { %628 = vmatprep.subr.mxu1 %v246_v6  ;;  %645 = vmatprep.subr.mxu0 %v287_v7  ;;  %v260_v51 = vld [vmem:[%s1174_s4 + $0x118] sm:$0xff]  ;;  %v275_v53 = vld [vmem:[%s1174_s4 + $0x190] sm:$0xff]  ;;  %v293_v56 = vld [vmem:[%s1174_s4 + $0x220] sm:$0xff] }
  0x25   :  { %629 = vmatpush3.msra.mxu1 %v230_v8  ;;  %646 = vmatpush3.msra.mxu0 %v271_v9  ;;  %v259_v54 = vld [vmem:[%s1174_s4 + $0x110] sm:$0xff]  ;;  %v274_v57 = vld [vmem:[%s1174_s4 + $0x188] sm:$0xff]  ;;  %v292_v59 = vld [vmem:[%s1174_s4 + $0x218] sm:$0xff] }
  0x26   :  { %630 = vmatprep.subr.mxu1 %v245_v10  ;;  %647 = vmatprep.subr.mxu0 %v286_v11  ;;  %v258_v58 = vld [vmem:[%s1174_s4 + $0x108] sm:$0xff]  ;;  %v273_v60 = vld [vmem:[%s1174_s4 + $0x180] sm:$0xff]  ;;  %v291_v63 = vld [vmem:[%s1174_s4 + $0x210] sm:$0xff] }
  0x27   :  { %631 = vmatpush3.msra.mxu1 %v229_v12  ;;  %648 = vmatpush3.msra.mxu0 %v270_v14  ;;  %v257_v61 = vld [vmem:[%s1174_s4 + $0x100] sm:$0xff]  ;;  %v290_v0 = vld [vmem:[%s1174_s4 + $0x208] sm:$0xff] }
  0x28   :  { %632 = vmatprep.subr.mxu1 %v244_v15  ;;  %649 = vmatprep.subr.mxu0 %v285_v17  ;;  %v289_v1 = vld [vmem:[%s1174_s4 + $0x200] sm:$0xff]  ;;  %v564_v2 = vld.sshfl [vmem:[%s1176_s3 + $0x8] sm:$0x3 pattern:$0x76325410] }
  0x29   :  { %633 = vmatpush3.msra.mxu1 %v228_v18  ;;  %650 = vmatpush3.msra.mxu0 %v269_v19  ;;  %v560_v7 = vld [vmem:[%s1177_s2] ss:$0 sm:$0xff] }
  0x2a   :  { %634 = vmatprep.subr.mxu1 %v243_v20  ;;  %651 = vmatprep.subr.mxu0 %v284_v21  ;;  %v563_v14 = vld [vmem:[%s1179_s5] ss:$0 sm:$0xff] }
  0x2b   :  { %635 = vmatpush3.msra.mxu1 %v227_v22  ;;  %652 = vmatpush3.msra.mxu0 %v268_v24 }
  0x2c   :  { %636 = vmatprep.subr.mxu1 %v242_v25  ;;  %653 = vmatprep.subr.mxu0 %v283_v26 }
  0x2d   :  { %637 = vmatpush3.msra.mxu1 %v226_v27  ;;  %654 = vmatpush3.msra.mxu0 %v267_v28 }
  0x2e   :  { %638 = vmatprep.subr.mxu1 %v241_v29  ;;  %655 = vmatprep.subr.mxu0 %v282_v30 }
  0x2f   :  { %639 = vmatpush3.msra.mxu1 %v225_v31  ;;  %656 = vmatpush3.msra.mxu0 %v266_v33 }
  0x30   :  { %404 = vmatprep.mubr.f32.mxu1 %v324_v32  ;;  %657 = vmatprep.subr.mxu0 %v281_v34 }
  0x31   :  { %705 = vmatprep.subr.mxu1 %v734_v3  ;;  %405 = vmatmul.mubr.f32.vlgmr.msra.gmra.mxu1 %v316_v23 }
  0x32   :  { %658 = vmatpush3.msra.mxu0 %v265_v35  ;;  %706 = vmatpush3.msra.mxu1 %v299_v36 }
  0x33   :  { %659 = vmatprep.subr.mxu0 %v280_v37  ;;  %707 = vmatprep.subr.mxu1 %v734_v3 }
  0x34   :  { %660 = vmatpush3.msra.mxu0 %v264_v38  ;;  %708 = vmatpush3.msra.mxu1 %v298_v39 }
  0x35   :  { %661 = vmatprep.subr.mxu0 %v279_v40  ;;  %709 = vmatprep.subr.mxu1 %v734_v3 }
  0x36   :  { %662 = vmatpush3.msra.mxu0 %v263_v41  ;;  %710 = vmatpush3.msra.mxu1 %v297_v42 }
  0x37   :  { %663 = vmatprep.subr.mxu0 %v278_v43  ;;  %711 = vmatprep.subr.mxu1 %v734_v3 }
  0x38   :  { %664 = vmatpush3.msra.mxu0 %v262_v44  ;;  %712 = vmatpush3.msra.mxu1 %v296_v45 }
  0x39   :  { %665 = vmatprep.subr.mxu0 %v277_v46  ;;  %713 = vmatprep.subr.mxu1 %v734_v3 }
  0x3a   :  { %666 = vmatpush3.msra.mxu0 %v261_v47  ;;  %714 = vmatpush3.msra.mxu1 %v295_v49 }
  0x3b   :  { %667 = vmatprep.subr.mxu0 %v276_v50  ;;  %715 = vmatprep.subr.mxu1 %v734_v3 }
  0x3c   :  { %668 = vmatpush3.msra.mxu0 %v260_v51  ;;  %716 = vmatpush3.msra.mxu1 %v294_v52 }
  0x3d   :  { %669 = vmatprep.subr.mxu0 %v275_v53  ;;  %717 = vmatprep.subr.mxu1 %v734_v3 }
  0x3e   :  { %670 = vmatpush3.msra.mxu0 %v259_v54  ;;  %718 = vmatpush3.msra.mxu1 %v293_v56 }
  0x3f   :  { %671 = vmatprep.subr.mxu0 %v274_v57  ;;  %719 = vmatprep.subr.mxu1 %v734_v3 }
  0x40   :  { %672 = vmatpush3.msra.mxu0 %v258_v58  ;;  %720 = vmatpush3.msra.mxu1 %v292_v59 }
  0x41   :  { %673 = vmatprep.subr.mxu0 %v273_v60  ;;  %721 = vmatprep.subr.mxu1 %v734_v3 }
  0x42   :  { %674 = vmatpush3.msra.mxu0 %v257_v61  ;;  %474 = vmatprep.mubr.f32.mxu0 %v325_v62 }
  0x43   :  { %722 = vmatpush3.msra.mxu1 %v291_v63  ;;  %475 = vmatmul.mubr.f32.vlgmr.msra.gmra.mxu0 %v323_v55 }
  0x44   :  { %723 = vmatprep.subr.mxu1 %v734_v3  ;;  %727 = vmatprep.mubr.msk.f32.mxu1 %vm735_vm1, %v734_v3 }
  0x45   :  { %724 = vmatpush3.msra.mxu1 %v290_v0 }
  0x46   :  { %725 = vmatprep.subr.mxu1 %v734_v3 }
  0x47   :  { %726 = vmatpush3.msra.mxu1 %v289_v1 }
  0x48   :  { %728 = vmatmul.mubr.msk.f32.vlgmr.msra.gmra.mxu1 %vm337_vm3, %v564_v2 }
  0xce   :  { %v217_v4 = vpop.f32.mrf.mxu1 }
  0xd0   :  { %v704_v5 = vpop.f32.mrf.mxu1 }
  0xe2   :  { %v598_v6 = vpop.f32.mrf.mxu0 }
  0xe4   :  { %v599_v8 = vpop.f32.mrf.mxu0 }
  0xe5   :  { %v600_v9 = vadd.f32 %v599_v8, %v598_v6 }
  0xe7   :  { %v148_v10 = vadd.f32 %v600_v9, %v560_v7 }
  0xe9   :  { %v218_v11 = vadd.f32 %v217_v4, %v148_v10 }
  0xeb   :  { %222 = vst.msk [vmem:[%s1178_s6] sm:$0x3f] %vm221_vm4, %v218_v11 }
  0xf1   :  { %v640_v12 = vpop.f32.mrf.mxu1 }
  0xf3   :  { %v641_v3 = vpop.f32.mrf.mxu1 }
  0xf4   :  { %v642_v13 = vadd.f32 %v641_v3, %v640_v12 }
  0xf6   :  { %v407_v17 = vadd.f32 %v642_v13, %v563_v14 }
 0x103   :  { %v675_v15 = vpop.f32.mrf.mxu0 }
 0x105   :  { %v676_v16 = vpop.f32.mrf.mxu0 }
 0x106   :  { %v677_v18 = vadd.f32 %v676_v16, %v675_v15 }
 0x108   :  { %v546_v19 = vpop.f32.mrf.mxu1  ;;  %v477_v20 = vadd.f32 %v677_v18, %v407_v17 }
 0x10a   :  { %v729_v21 = vpop.f32.mrf.mxu1  ;;  %v547_v22 = vadd.f32 %v546_v19, %v477_v20 }
 0x10c   :  { %551 = vst.msk [vmem:[%s1180_s7] sm:$0x3] %vm550_vm5, %v547_v22 }

// kernel: react_embedding_forward.4
= control target key start
LH: loop header
LB: loop body
LE: loop exit
PB: predicated region body
PF: predicated region fallthrough
CT: control target
= control target key end

     0   :  { %v126_v0 = vmov 0.0   ;;  %vm127_vm0 = vmmov 0   ;;  %vm26_vm1 = vcmask 261120   ;;  %s169_s1 = inlined_call_operand.vmem [shape: f32[32,32], index: 1, kind: input, shape index: {}]   ;;  %s170_s0 = inlined_call_operand.vmem [shape: f32[8,32], index: 0, kind: input, shape index: {}]   ;;  %s171_s2 = inlined_call_operand.vmem [shape: f32[1,32], index: 2, kind: input, shape index: {}]   ;;  %s172_s3 = inlined_call_operand.vmem [shape: f32[8,32], index: 3, kind: output, shape index: {}]  }
   0x1   :  { %113 = vmatprep.subr.mxu0 %v126_v0  ;;  %v18_v1 = vld [vmem:[%s169_s1 + $0x18] sm:$0xff]  ;;  %v17_v2 = vld [vmem:[%s169_s1 + $0x10] sm:$0xff]  ;;  %121 = vmatprep.mubr.msk.f32.mxu0 %vm127_vm0, %v126_v0  ;;  %v16_v3 = vld [vmem:[%s169_s1 + $0x8] sm:$0xff] }
   0x2   :  { %114 = vmatpush3.msra.mxu0 %v18_v1  ;;  %v15_v4 = vld [vmem:[%s169_s1] sm:$0xff] }
   0x3   :  { %115 = vmatprep.subr.mxu0 %v126_v0  ;;  %v14_v5 = vld [vmem:[%s170_s0] sm:$0xff] }
   0x4   :  { %116 = vmatpush3.msra.mxu0 %v17_v2  ;;  %v106_v6 = vld [vmem:[%s171_s2] ss:$0 sm:$0xff] }
   0x5   :  { %117 = vmatprep.subr.mxu0 %v126_v0 }
   0x6   :  { %118 = vmatpush3.msra.mxu0 %v16_v3 }
   0x7   :  { %119 = vmatprep.subr.mxu0 %v126_v0 }
   0x8   :  { %120 = vmatpush3.msra.mxu0 %v15_v4 }
   0x9   :  { %122 = vmatmul.mubr.msk.f32.vlgmr.msra.gmra.mxu0 %vm26_vm1, %v14_v5 }
  0xc9   :  { %v96_v7 = vpop.f32.mrf.mxu0 }
  0xca   :  { %v97_v8 = vadd.f32 %v106_v6, %v96_v7 }
  0xcb   :  { %v123_v9 = vpop.f32.mrf.mxu0 }
  0xcc   :  { %v100_v10 = vmax.f32 %v97_v8, 0.0 }
  0xce   :  { %101 = vst.msk [vmem:[%s172_s3] sm:$0xff] %vm26_vm1, %v100_v10 }

// kernel: react_embedding_forward.5
= control target key start
LH: loop header
LB: loop body
LE: loop exit
PB: predicated region body
PF: predicated region fallthrough
CT: control target
= control target key end

     0   :  { %s5805_s0 = inlined_call_operand.vmem [shape: f32[2,8,32], index: 0, kind: input, shape index: {}]   ;;  %s5806_s1 = inlined_call_operand.vmem [shape: f32[8,32], index: 1, kind: input, shape index: {}]   ;;  %s5807_s2 = inlined_call_operand.vmem [shape: f32[8,8], index: 2, kind: input, shape index: {}]   ;;  %s5808_s3 = inlined_call_operand.vmem [shape: f32[2,32,96], index: 3, kind: input, shape index: {}]   ;;  %s5809_s4 = inlined_call_operand.vmem [shape: f32[2,1,96], index: 4, kind: input, shape index: {}]   ;;  %s5810_s5 = inlined_call_operand.vmem [shape: f32[2,32,32], index: 5, kind: input, shape index: {}]   ;;  %s5811_s6 = inlined_call_operand.vmem [shape: f32[2,1,32], index: 6, kind: input, shape index: {}]   ;;  %s5812_s7 = inlined_call_operand.vmem [shape: f32[2,32,64], index: 7, kind: input, shape index: {}]   ;;  %s5813_s8 = inlined_call_operand.vmem [shape: f32[2,1,64], index: 8, kind: input, shape index: {}]   ;;  %s5814_s9 = inlined_call_operand.vmem [shape: f32[2,64,32], index: 9, kind: input, shape index: {}]   ;;  %s5815_s10 = inlined_call_operand.vmem [shape: f32[2,1,32], index: 10, kind: input, shape index: {}]   ;;  %s5816_s11 = inlined_call_operand.vmem [shape: f32[2,1,32], index: 11, kind: input, shape index: {}, may-alias: {11,13}]   ;;  %s5817_s12 = inlined_call_operand.vmem [shape: f32[2,1,32], index: 12, kind: input, shape index: {}, may-alias: {12,14}]   ;;  %s5818_s13 = inlined_call_operand.vmem [shape: f32[2,1,32], index: 13, kind: input, shape index: {}, may-alias: {11,13}]   ;;  %s5819_s14 = inlined_call_operand.vmem [shape: f32[2,1,32], index: 14, kind: input, shape index: {}, may-alias: {12,14}]   ;;  %s5820_s15 = inlined_call_operand.vmem [shape: f32[32,32], index: 15, kind: input, shape index: {}]   ;;  %s5821_s16 = inlined_call_operand.vmem [shape: f32[1,32], index: 16, kind: input, shape index: {}]   ;;  %s5822_s17 = inlined_call_operand.vmem [shape: f32[32,40], index: 17, kind: input, shape index: {}]   ;;  %s5823_s18 = inlined_call_operand.vmem [shape: f32[1,40], index: 18, kind: input, shape index: {}]   ;;  %s5824_s19 = inlined_call_operand.hbm [shape: f32[2,8,40], index: 19, kind: output, shape index: {}]  }
   0x1   :  { %5840 = sst [smem:[#allocation5_spill]] %s5805_s0 }
   0x2   :  { %5841 = sst [smem:[#allocation6_spill]] %s5806_s1 }
   0x3   :  { %5842 = sst [smem:[#allocation7_spill]] %s5807_s2 }
   0x4   :  { %5843 = sst [smem:[#allocation8_spill]] %s5808_s3 }
   0x5   :  { %s5844_s20 = sld [smem:[#allocation8_spill]]  ;;  %vm80_vm0 = vcmask 261120  }
   0x6   :  { %s5845_s25 = sld [smem:[#allocation5_spill]] }
   0x7   :  { %s5846_s29 = sld [smem:[#allocation6_spill]] }
   0xb   :  { %v72_v0 = vld [vmem:[%s5844_s20 + $0x18] sm:$0xff]  ;;  %v71_v1 = vld [vmem:[%s5844_s20 + $0x10] sm:$0xff]  ;;  %v70_v2 = vld [vmem:[%s5844_s20 + $0x8] sm:$0xff] }
   0xc   :  { %4654 = vmatprep.subr.mxu0 %v72_v0  ;;  %v64_v3 = vld [vmem:[%s5845_s25] sm:$0xff]  ;;  %v65_v4 = vld [vmem:[%s5845_s25 + $0x8] sm:$0xff] }
   0xd   :  { %4655 = vmatpush3.msra.mxu0 %v72_v0  ;;  %v66_v5 = vld [vmem:[%s5846_s29] sm:$0xff] }
   0xe   :  { %24 = vsyncpa [#allocation3], 0  ;;  %4656 = vmatprep.subr.mxu0 %v71_v1  ;;  %v5211_v6 = vadd.f32 %v66_v5, %v64_v3  ;;  %v69_v7 = vld [vmem:[%s5844_s20] sm:$0xff]  ;;  %v5216_v8 = vadd.f32 %v66_v5, %v65_v4  ;;  %v5077_v9 = vmov 0.0   ;;  %vm5078_vm1 = vmmov 0   ;;  %s5079_s22 = smov 96  }
   0xf   :  { %4657 = vmatpush3.msra.mxu0 %v71_v1  ;;  %4665 = vmatprep.subr.mxu1 %v5077_v9  ;;  %v4384_v11 = vld [vmem:[%s5809_s4] ss:$0 sm:$0xff]  ;;  %vm172_vm2 = vcmask 64512   ;;  %s5847_s24 = sld [smem:[#allocation7_spill]]  ;;  %s5080_s25 = smov 64   ;;  %vm1992_vm3 = vcmask 523264  }
  0x10   :  { %4658 = vmatprep.subr.mxu0 %v70_v2  ;;  %4662 = vmatprep.mubr.msk.f32.mxu0 %vm80_vm0, %v5211_v6  ;;  %s5081_s3 = smov 120   ;;  %s5082_s26 = smov 88   ;;  %v164_v50 = vld [vmem:[%s5810_s5] sm:$0xff]  ;;  %vm4365_vm4 = vcmask 326656  }
  0x11   :  { %4659 = vmatpush3.msra.mxu0 %v70_v2  ;;  %4667 = vmatprep.mubr.msk.f32.mxu1 %vm5078_vm1, %v5077_v9  ;;  %s5083_s29 = smov 56   ;;  %s5836_s0 = smov 112  }
  0x12   :  { %4660 = vmatprep.subr.mxu0 %v69_v7  ;;  %s5838_s30 = smov 80   ;;  %s5834_s27 = smov 48  }
  0x13   :  { %4661 = vmatpush3.msra.mxu0 %v69_v7  ;;  %s5832_s28 = smov 72   ;;  %s5830_s21 = smov 104  }
  0x14   :  { %4663 = vmatmul.mubr.msk.f32.vlgmr.msra.gmra.mxu0 %vm80_vm0, %v5216_v8  ;;  %4685 = vmatprep.subr.mxu0 %v164_v50  ;;  %s5828_s23 = smov 40   ;;  %s5850_s1 = smov 48  }
  0x15   :  { %v5257_v19 = vld [vmem:[%s5847_s24] sm:$0xff]  ;;  %4686 = vmatpush3.msra.mxu0 %v164_v50  ;;  %s5852_s2 = smov 104  }
  0x16   :  { %4695 = vmatprep.subr.mxu0 %v5077_v9 }
  0xd4   :  { %v4664_v10 = vpop.f32.mrf.mxu0 }
  0xd5   :  { %v5232_v14 = vadd.f32 %v4664_v10, %v4384_v11 }
  0xd6   :  { %v153_v12 = vpop.f32.mrf.mxu0 }
  0xd7   :  { %v5228_v13 = vadd.f32 %v4384_v11, %v153_v12  ;;  %v5247_v18 = vmul.f32 0.35355338, %v5232_v14 }
  0xd9   :  { %170 = vrot.lane.b32.xlu0 %v5228_v13, %s5079_s22  ;;  %v5239_v16 = vmul.f32 0.35355338, %v5228_v13 }
  0xdd   :  { %249 = vrot.lane.b32.xlu0 %v5232_v14, %s5079_s22 }
 0x14b   :  { %v171_v15 = vpop.permute.xlu0 %170 }
 0x14c   :  { %4666 = vmatpush3.xpose.msk.msra.mxu1 %vm172_vm2, %v171_v15 }
 0x14d   :  { %4670 = vmatprep.subr.mxu1 %v5077_v9 }
 0x14f   :  { %v250_v17 = vpop.permute.xlu0 %249  ;;  %4668 = vmatmul.mubr.msk.f32.vlgmr.msra.gmra.mxu1 %vm172_vm2, %v5239_v16 }
 0x150   :  { %4671 = vmatpush3.xpose.msk.msra.mxu1 %vm172_vm2, %v250_v17  ;;  %4672 = vmatprep.mubr.msk.f32.mxu1 %vm5078_vm1, %v5077_v9 }
 0x151   :  { %4675 = vmatprep.subr.mxu1 %v5077_v9 }
 0x153   :  { %4673 = vmatmul.mubr.msk.f32.vlgmr.msra.gmra.mxu1 %vm172_vm2, %v5247_v18 }
 0x154   :  { %4677 = vmatprep.mubr.msk.f32.mxu1 %vm5078_vm1, %v5077_v9 }
 0x20f   :  { %v244_v20 = vpop.f32.mrf.mxu1 }
 0x210   :  { %v245_v21 = vadd.f32 %v244_v20, %v5257_v19 }
 0x211   :  { %v4669_v22 = vpop.f32.mrf.mxu1 }
 0x212   :  { %v326_v23 = vsel %vm172_vm2, %v245_v21, -inf }
 0x213   :  { %v322_v24 = vpop.f32.mrf.mxu1  ;;  %327 = vmax.xlane.f32.xlu1 %v326_v23 }
 0x214   :  { %v323_v25 = vadd.f32 %v322_v24, %v5257_v19 }
 0x215   :  { %v4674_v26 = vpop.f32.mrf.mxu1 }
 0x216   :  { %v329_v27 = vsel %vm172_vm2, %v323_v25, -inf }
 0x217   :  { %330 = vmax.xlane.f32.xlu1 %v329_v27 }
 0x228   :  { %350 = vrot.lane.b32.xlu1 %v5228_v13, %s5080_s25 }
 0x29c   :  { %v328_v28 = vpop.xlane.xlu1 %327 }
 0x29d   :  { %v332_v29 = vsub.f32 %v245_v21, %v328_v28 }
 0x29f   :  { %v334_v30 = vmul.f32 1.442695, %v332_v29 }
 0x2a0   :  { %v331_v31 = vpop.xlane.xlu1 %330 }
 0x2a1   :  { %4974 = vpow2.f32 %v334_v30  ;;  %v333_v32 = vsub.f32 %v323_v25, %v331_v31 }
 0x2a3   :  { %v336_v33 = vmul.f32 1.442695, %v333_v32 }
 0x2a4   :  { %v351_v34 = vpop.permute.xlu1 %350 }
 0x2a5   :  { %4976 = vpow2.f32 %v336_v33  ;;  %4676 = vmatpush3.msra.mxu1 %v351_v34  ;;  %v165_v33 = vld [vmem:[%s5810_s5 + $0x8] sm:$0xff] }
 0x2a6   :  { %4680 = vmatprep.subr.mxu1 %v5077_v9 }
 0x2ae   :  { %v4975_v35 = vpop.eup %4974 }
 0x2af   :  { %v338_v36 = vsel %vm172_vm2, %v4975_v35, 0.0 }
 0x2b0   :  { %339 = vadd.xlane.f32.xlu0 %v338_v36 }
 0x2b2   :  { %v4977_v37 = vpop.eup %4976 }
 0x2b3   :  { %v341_v38 = vsel %vm172_vm2, %v4977_v37, 0.0 }
 0x2b4   :  { %342 = vadd.xlane.f32.xlu1 %v341_v38 }
 0x2c5   :  { %426 = vrot.lane.b32.xlu1 %v5232_v14, %s5080_s25 }
 0x2c6   :  { %591 = vrot.lane.b32.xlu0 %v5239_v16, %s5081_s3 }
 0x2c9   :  { %593 = vrot.lane.b32.xlu1 %v5228_v13, %s5082_s26 }
 0x2cd   :  { %671 = vrot.lane.b32.xlu1 %v5232_v14, %s5082_s26 }
 0x2d1   :  { %669 = vrot.lane.b32.xlu1 %v5247_v18, %s5081_s3 }
 0x339   :  { %v340_v39 = vpop.xlane.xlu0 %339 }
 0x33a   :  { %v344_v40 = vmax.f32 %v340_v39, 1e-20 }
 0x33c   :  { %4978 = vrcp.f32 %v344_v40 }
 0x33d   :  { %v343_v41 = vpop.xlane.xlu1 %342  ;;  %v592_v49 = vpop.permute.xlu0 %591 }
 0x33e   :  { %v345_v42 = vmax.f32 %v343_v41, 1e-20 }
 0x340   :  { %4980 = vrcp.f32 %v345_v42 }
 0x341   :  { %v427_v44 = vpop.permute.xlu1 %426 }
 0x345   :  { %v594_v48 = vpop.permute.xlu1 %593 }
 0x349   :  { %v4979_v43 = vpop.eup %4978  ;;  %v672_v52 = vpop.permute.xlu1 %671 }
 0x34a   :  { %v348_v45 = vmul.f32 %v4979_v43, %v4975_v35 }
 0x34c   :  { %4678 = vmatmul.mubr.msk.f32.vlgmr.msra.gmra.mxu1 %vm172_vm2, %v348_v45 }
 0x34d   :  { %v4981_v46 = vpop.eup %4980  ;;  %4681 = vmatpush3.msra.mxu1 %v427_v44  ;;  %4682 = vmatprep.mubr.msk.f32.mxu1 %vm5078_vm1, %v5077_v9  ;;  %v670_v56 = vpop.permute.xlu1 %669 }
 0x34e   :  { %4690 = vmatprep.subr.mxu1 %v5077_v9  ;;  %v349_v47 = vmul.f32 %v4981_v46, %v4977_v37 }
 0x350   :  { %4683 = vmatmul.mubr.msk.f32.vlgmr.msra.gmra.mxu1 %vm172_vm2, %v349_v47 }
 0x351   :  { %4691 = vmatpush3.xpose.msk.msra.mxu1 %vm172_vm2, %v594_v48  ;;  %4692 = vmatprep.mubr.msk.f32.mxu1 %vm5078_vm1, %v5077_v9 }
 0x352   :  { %4700 = vmatprep.subr.mxu1 %v5077_v9 }
 0x354   :  { %4693 = vmatmul.mubr.msk.f32.vlgmr.msra.gmra.mxu1 %vm172_vm2, %v592_v49  ;;  %v4395_v49 = vld [vmem:[%s5811_s6] ss:$0 sm:$0xff] }
 0x355   :  { %4702 = vmatprep.mubr.msk.f32.mxu1 %vm5078_vm1, %v5077_v9 }
 0x40c   :  { %v422_v51 = vpop.f32.mrf.mxu1 }
 0x40d   :  { %4687 = vmatprep.mubr.msk.f32.mxu0 %vm172_vm2, %v422_v51 }
 0x40e   :  { %v4679_v53 = vpop.f32.mrf.mxu1 }
 0x410   :  { %v498_v54 = vpop.f32.mrf.mxu1 }
 0x411   :  { %4688 = vmatmul.mubr.msk.f32.vlgmr.msra.gmra.mxu0 %vm172_vm2, %v498_v54 }
 0x412   :  { %4696 = vmatpush3.xpose.msk.msra.mxu0 %vm172_vm2, %v672_v52  ;;  %v4684_v55 = vpop.f32.mrf.mxu1  ;;  %4697 = vmatprep.mubr.msk.f32.mxu0 %vm5078_vm1, %v5077_v9 }
 0x413   :  { %4705 = vmatprep.subr.mxu0 %v5077_v9 }
 0x414   :  { %v665_v57 = vpop.f32.mrf.mxu1 }
 0x415   :  { %v666_v58 = vadd.f32 %v665_v57, %v5257_v19  ;;  %4698 = vmatmul.mubr.msk.f32.vlgmr.msra.gmra.mxu0 %vm172_vm2, %v670_v56 }
 0x416   :  { %v4694_v59 = vpop.f32.mrf.mxu1  ;;  %4707 = vmatprep.mubr.msk.f32.mxu0 %vm5078_vm1, %v5077_v9 }
 0x417   :  { %v747_v60 = vsel %vm172_vm2, %v666_v58, -inf }
 0x418   :  { %748 = vmax.xlane.f32.xlu1 %v747_v60 }
 0x4a1   :  { %v749_v61 = vpop.xlane.xlu1 %748 }
 0x4a2   :  { %v753_v62 = vsub.f32 %v666_v58, %v749_v61 }
 0x4a4   :  { %v755_v63 = vmul.f32 1.442695, %v753_v62 }
 0x4a6   :  { %4982 = vpow2.f32 %v755_v63 }
 0x4b3   :  { %v4983_v0 = vpop.eup %4982 }
 0x4b4   :  { %v759_v1 = vsel %vm172_vm2, %v4983_v0, 0.0 }
 0x4b5   :  { %760 = vadd.xlane.f32.xlu1 %v759_v1 }
 0x4d1   :  { %v5306_v2 = vpop.f32.mrf.mxu0 }
 0x4d2   :  { %v590_v50 = vadd.f32 %v5306_v2, %v4395_v49 }
 0x4d3   :  { %v5308_v3 = vpop.f32.mrf.mxu0 }
 0x4d4   :  { %v589_v52 = vadd.f32 %v4395_v49, %v5308_v3 }
 0x4d5   :  { %v743_v4 = vpop.f32.mrf.mxu0 }
 0x4d6   :  { %v744_v5 = vadd.f32 %v743_v4, %v5257_v19 }
 0x4d7   :  { %v4699_v7 = vpop.f32.mrf.mxu0 }
 0x4d8   :  { %v750_v10 = vsel %vm172_vm2, %v744_v5, -inf }
 0x4d9   :  { %751 = vmax.xlane.f32.xlu0 %v750_v10 }
 0x4ef   :  { %847 = vrot.lane.b32.xlu0 %v5232_v14, %s5083_s29 }
 0x4f3   :  { %1006 = vrot.lane.b32.xlu0 %v5239_v16, %s5836_s0 }
 0x53e   :  { %v761_v22 = vpop.xlane.xlu1 %760 }
 0x53f   :  { %v765_v23 = vmax.f32 %v761_v22, 1e-20 }
 0x562   :  { %v752_v11 = vpop.xlane.xlu0 %751 }
 0x563   :  { %v754_v12 = vsub.f32 %v744_v5, %v752_v11 }
 0x565   :  { %v757_v15 = vmul.f32 1.442695, %v754_v12 }
 0x566   :  { %v848_v17 = vpop.permute.xlu0 %847 }
 0x567   :  { %4984 = vpow2.f32 %v757_v15  ;;  %4706 = vmatpush3.msra.mxu0 %v848_v17 }
 0x568   :  { %4715 = vmatprep.subr.mxu0 %v5077_v9  ;;  %4986 = vrcp.f32 %v765_v23 }
 0x56a   :  { %v1007_v32 = vpop.permute.xlu0 %1006 }
 0x574   :  { %v4985_v20 = vpop.eup %4984 }
 0x575   :  { %v762_v21 = vsel %vm172_vm2, %v4985_v20, 0.0  ;;  %v4987_v25 = vpop.eup %4986 }
 0x576   :  { %763 = vadd.xlane.f32.xlu1 %v762_v21  ;;  %v769_v28 = vmul.f32 %v4987_v25, %v4983_v0 }
 0x587   :  { %771 = vrot.lane.b32.xlu1 %v5228_v13, %s5083_s29 }
 0x58b   :  { %1008 = vrot.lane.b32.xlu1 %v5228_v13, %s5838_s30 }
 0x58f   :  { %1086 = vrot.lane.b32.xlu1 %v5232_v14, %s5838_s30 }
 0x593   :  { %1084 = vrot.lane.b32.xlu1 %v5247_v18, %s5836_s0 }
 0x5ff   :  { %v764_v24 = vpop.xlane.xlu1 %763 }
 0x600   :  { %v766_v26 = vmax.f32 %v764_v24, 1e-20 }
 0x602   :  { %4988 = vrcp.f32 %v766_v26 }
 0x603   :  { %v772_v27 = vpop.permute.xlu1 %771 }
 0x604   :  { %4701 = vmatpush3.msra.mxu1 %v772_v27 }
 0x605   :  { %4703 = vmatmul.mubr.msk.f32.vlgmr.msra.gmra.mxu1 %vm172_vm2, %v769_v28  ;;  %4710 = vmatprep.subr.mxu1 %v165_v33 }
 0x606   :  { %4711 = vmatpush3.msra.mxu1 %v165_v33 }
 0x607   :  { %v1009_v31 = vpop.permute.xlu1 %1008  ;;  %4720 = vmatprep.subr.mxu1 %v5077_v9 }
 0x60b   :  { %v1087_v36 = vpop.permute.xlu1 %1086 }
 0x60f   :  { %v4989_v29 = vpop.eup %4988  ;;  %v1085_v39 = vpop.permute.xlu1 %1084 }
 0x610   :  { %v770_v30 = vmul.f32 %v4989_v29, %v4985_v20 }
 0x612   :  { %4708 = vmatmul.mubr.msk.f32.vlgmr.msra.gmra.mxu0 %vm172_vm2, %v770_v30 }
 0x613   :  { %4716 = vmatpush3.xpose.msk.msra.mxu0 %vm172_vm2, %v1009_v31  ;;  %4717 = vmatprep.mubr.msk.f32.mxu0 %vm5078_vm1, %v5077_v9 }
 0x614   :  { %4725 = vmatprep.subr.mxu0 %v5077_v9 }
 0x616   :  { %4718 = vmatmul.mubr.msk.f32.vlgmr.msra.gmra.mxu0 %vm172_vm2, %v1007_v32 }
 0x617   :  { %4727 = vmatprep.mubr.msk.f32.mxu0 %vm5078_vm1, %v5077_v9 }
 0x6c5   :  { %v843_v34 = vpop.f32.mrf.mxu1 }
 0x6c6   :  { %4712 = vmatprep.mubr.msk.f32.mxu1 %vm172_vm2, %v843_v34 }
 0x6c7   :  { %v4704_v35 = vpop.f32.mrf.mxu1 }
 0x6d2   :  { %v919_v37 = vpop.f32.mrf.mxu0 }
 0x6d3   :  { %4713 = vmatmul.mubr.msk.f32.vlgmr.msra.gmra.mxu1 %vm172_vm2, %v919_v37 }
 0x6d4   :  { %4721 = vmatpush3.xpose.msk.msra.mxu1 %vm172_vm2, %v1087_v36  ;;  %v4709_v38 = vpop.f32.mrf.mxu0  ;;  %4722 = vmatprep.mubr.msk.f32.mxu1 %vm5078_vm1, %v5077_v9 }
 0x6d5   :  { %4730 = vmatprep.subr.mxu1 %v5077_v9 }
 0x6d6   :  { %v1080_v40 = vpop.f32.mrf.mxu0 }
 0x6d7   :  { %v1081_v41 = vadd.f32 %v1080_v40, %v5257_v19  ;;  %4723 = vmatmul.mubr.msk.f32.vlgmr.msra.gmra.mxu1 %vm172_vm2, %v1085_v39 }
 0x6d8   :  { %v4719_v42 = vpop.f32.mrf.mxu0  ;;  %4732 = vmatprep.mubr.msk.f32.mxu1 %vm5078_vm1, %v5077_v9 }
 0x6d9   :  { %v1162_v43 = vsel %vm172_vm2, %v1081_v41, -inf }
 0x6da   :  { %1163 = vmax.xlane.f32.xlu0 %v1162_v43 }
 0x763   :  { %v1164_v44 = vpop.xlane.xlu0 %1163 }
 0x764   :  { %v1168_v45 = vsub.f32 %v1081_v41, %v1164_v44 }
 0x766   :  { %v1170_v46 = vmul.f32 1.442695, %v1168_v45 }
 0x768   :  { %4990 = vpow2.f32 %v1170_v46 }
 0x775   :  { %v4991_v47 = vpop.eup %4990 }
 0x776   :  { %v1174_v48 = vsel %vm172_vm2, %v4991_v47, 0.0 }
 0x777   :  { %1175 = vadd.xlane.f32.xlu0 %v1174_v48 }
 0x793   :  { %v4714_v51 = vpop.f32.mrf.mxu1 }
 0x794   :  { %v5356_v53 = vadd.f32 %v4714_v51, %v590_v50 }
 0x795   :  { %v995_v54 = vpop.f32.mrf.mxu1 }
 0x796   :  { %v5358_v55 = vadd.f32 %v995_v54, %v589_v52 }
 0x797   :  { %v1158_v56 = vpop.f32.mrf.mxu1 }
 0x798   :  { %v1159_v57 = vadd.f32 %v1158_v56, %v5257_v19 }
 0x799   :  { %v4724_v58 = vpop.f32.mrf.mxu1 }
 0x79a   :  { %v1165_v59 = vsel %vm172_vm2, %v1159_v57, -inf }
 0x79b   :  { %1166 = vmax.xlane.f32.xlu1 %v1165_v59 }
 0x7ac   :  { %1186 = vrot.lane.b32.xlu1 %v5228_v13, %s5834_s27 }
 0x7b0   :  { %1423 = vrot.lane.b32.xlu1 %v5228_v13, %s5832_s28 }
 0x7b4   :  { %1501 = vrot.lane.b32.xlu1 %v5232_v14, %s5832_s28 }
 0x7b8   :  { %1499 = vrot.lane.b32.xlu1 %v5247_v18, %s5830_s21  ;;  %v166_v18 = vld [vmem:[%s5810_s5 + $0x10] sm:$0xff] }
 0x800   :  { %v1176_v60 = vpop.xlane.xlu0 %1175 }
 0x801   :  { %v1180_v61 = vmax.f32 %v1176_v60, 1e-20 }
 0x803   :  { %4992 = vrcp.f32 %v1180_v61 }
 0x810   :  { %v4993_v63 = vpop.eup %4992 }
 0x811   :  { %v1184_v3 = vmul.f32 %v4993_v63, %v4991_v47 }
 0x824   :  { %v1167_v62 = vpop.xlane.xlu1 %1166 }
 0x825   :  { %v1169_v0 = vsub.f32 %v1159_v57, %v1167_v62 }
 0x827   :  { %v1172_v1 = vmul.f32 1.442695, %v1169_v0 }
 0x828   :  { %v1187_v2 = vpop.permute.xlu1 %1186 }
 0x829   :  { %4994 = vpow2.f32 %v1172_v1  ;;  %4726 = vmatpush3.msra.mxu0 %v1187_v2 }
 0x82a   :  { %4728 = vmatmul.mubr.msk.f32.vlgmr.msra.gmra.mxu0 %vm172_vm2, %v1184_v3  ;;  %4735 = vmatprep.subr.mxu0 %v166_v18 }
 0x82b   :  { %4736 = vmatpush3.msra.mxu0 %v166_v18 }
 0x82c   :  { %4745 = vmatprep.subr.mxu0 %v5077_v9  ;;  %v1424_v17 = vpop.permute.xlu1 %1423 }
 0x830   :  { %v1502_v22 = vpop.permute.xlu1 %1501 }
 0x834   :  { %v1500_v25 = vpop.permute.xlu1 %1499 }
 0x836   :  { %v4995_v4 = vpop.eup %4994 }
 0x837   :  { %v1177_v5 = vsel %vm172_vm2, %v4995_v4, 0.0 }
 0x838   :  { %1178 = vadd.xlane.f32.xlu0 %v1177_v5 }
 0x84e   :  { %1262 = vrot.lane.b32.xlu0 %v5232_v14, %s5834_s27 }
 0x852   :  { %1421 = vrot.lane.b32.xlu0 %v5239_v16, %s5830_s21 }
 0x8c1   :  { %v1179_v7 = vpop.xlane.xlu0 %1178 }
 0x8c2   :  { %v1181_v10 = vmax.f32 %v1179_v7, 1e-20 }
 0x8c4   :  { %4996 = vrcp.f32 %v1181_v10 }
 0x8c5   :  { %v1263_v11 = vpop.permute.xlu0 %1262 }
 0x8c6   :  { %4731 = vmatpush3.msra.mxu1 %v1263_v11 }
 0x8c7   :  { %4740 = vmatprep.subr.mxu1 %v5077_v9 }
 0x8c9   :  { %v1422_v16 = vpop.permute.xlu0 %1421 }
 0x8d1   :  { %v4997_v12 = vpop.eup %4996 }
 0x8d2   :  { %v1185_v15 = vmul.f32 %v4997_v12, %v4995_v4 }
 0x8d4   :  { %4733 = vmatmul.mubr.msk.f32.vlgmr.msra.gmra.mxu1 %vm172_vm2, %v1185_v15 }
 0x8d5   :  { %4741 = vmatpush3.xpose.msk.msra.mxu1 %vm172_vm2, %v1424_v17  ;;  %4742 = vmatprep.mubr.msk.f32.mxu1 %vm5078_vm1, %v5077_v9 }
 0x8d6   :  { %4750 = vmatprep.subr.mxu1 %v5077_v9 }
 0x8d8   :  { %4743 = vmatmul.mubr.msk.f32.vlgmr.msra.gmra.mxu1 %vm172_vm2, %v1422_v16 }
 0x8d9   :  { %4752 = vmatprep.mubr.msk.f32.mxu1 %vm5078_vm1, %v5077_v9 }
 0x8ea   :  { %v1258_v20 = vpop.f32.mrf.mxu0 }
 0x8eb   :  { %4737 = vmatprep.mubr.msk.f32.mxu0 %vm172_vm2, %v1258_v20  ;;  %v1885_v20 = vld [vmem:[%s5812_s7 + $0x10] sm:$0xff] }
 0x8ec   :  { %v4729_v21 = vpop.f32.mrf.mxu0 }
 0x8ed   :  { %v1884_v21 = vld [vmem:[%s5812_s7 + $0x8] sm:$0xff] }
 0x994   :  { %v1334_v23 = vpop.f32.mrf.mxu1 }
 0x995   :  { %4738 = vmatmul.mubr.msk.f32.vlgmr.msra.gmra.mxu0 %vm172_vm2, %v1334_v23  ;;  %v1984_v23 = vld [vmem:[%s5814_s9 + $0x38] sm:$0xff] }
 0x996   :  { %4746 = vmatpush3.xpose.msk.msra.mxu0 %vm172_vm2, %v1502_v22  ;;  %v4734_v24 = vpop.f32.mrf.mxu1  ;;  %4747 = vmatprep.mubr.msk.f32.mxu0 %vm5078_vm1, %v5077_v9  ;;  %v1883_v22 = vld [vmem:[%s5812_s7] sm:$0xff] }
 0x997   :  { %4755 = vmatprep.subr.mxu0 %v5077_v9  ;;  %v1983_v24 = vld [vmem:[%s5814_s9 + $0x30] sm:$0xff] }
 0x998   :  { %v1495_v26 = vpop.f32.mrf.mxu1 }
 0x999   :  { %v1496_v27 = vadd.f32 %v1495_v26, %v5257_v19  ;;  %4748 = vmatmul.mubr.msk.f32.vlgmr.msra.gmra.mxu0 %vm172_vm2, %v1500_v25  ;;  %v1982_v25 = vld [vmem:[%s5814_s9 + $0x28] sm:$0xff]  ;;  %v1981_v26 = vld [vmem:[%s5814_s9 + $0x20] sm:$0xff] }
 0x99a   :  { %v4744_v28 = vpop.f32.mrf.mxu1  ;;  %4757 = vmatprep.mubr.msk.f32.mxu0 %vm5078_vm1, %v5077_v9 }
 0x99b   :  { %v1577_v29 = vsel %vm172_vm2, %v1496_v27, -inf }
 0x99c   :  { %1578 = vmax.xlane.f32.xlu0 %v1577_v29 }
 0xa25   :  { %v1579_v30 = vpop.xlane.xlu0 %1578 }
 0xa26   :  { %v1583_v31 = vsub.f32 %v1496_v27, %v1579_v30 }
 0xa28   :  { %v1585_v32 = vmul.f32 1.442695, %v1583_v31 }
 0xa2a   :  { %4998 = vpow2.f32 %v1585_v32 }
 0xa37   :  { %v4999_v33 = vpop.eup %4998 }
 0xa38   :  { %v1589_v34 = vsel %vm172_vm2, %v4999_v33, 0.0 }
 0xa39   :  { %1590 = vadd.xlane.f32.xlu0 %v1589_v34  ;;  %v4420_v34 = vld [vmem:[%s5816_s11] ss:$0 sm:$0xff] }
 0xa55   :  { %v4739_v35 = vpop.f32.mrf.mxu0 }
 0xa56   :  { %v1420_v36 = vadd.f32 %v4739_v35, %v5356_v53 }
 0xa57   :  { %v1410_v37 = vpop.f32.mrf.mxu0 }
 0xa58   :  { %v1419_v38 = vadd.f32 %v1410_v37, %v5358_v55 }
 0xa59   :  { %v1573_v39 = vpop.f32.mrf.mxu0 }
 0xa5a   :  { %v1574_v40 = vadd.f32 %v1573_v39, %v5257_v19  ;;  %v4421_v39 = vld [vmem:[%s5817_s12] ss:$0 sm:$0xff] }
 0xa5b   :  { %v4749_v41 = vpop.f32.mrf.mxu0 }
 0xa5c   :  { %v1580_v42 = vsel %vm172_vm2, %v1574_v40, -inf }
 0xa5d   :  { %1581 = vmax.xlane.f32.xlu1 %v1580_v42 }
 0xa6e   :  { %1601 = vrot.lane.b32.xlu1 %v5228_v13, %s5828_s23  ;;  %v167_v13 = vld [vmem:[%s5810_s5 + $0x18] sm:$0xff] }
 0xac2   :  { %v1591_v43 = vpop.xlane.xlu0 %1590 }
 0xac3   :  { %v1595_v44 = vmax.f32 %v1591_v43, 1e-20  ;;  %v1980_v43 = vld [vmem:[%s5814_s9 + $0x18] sm:$0xff] }
 0xac5   :  { %5000 = vrcp.f32 %v1595_v44  ;;  %v1979_v44 = vld [vmem:[%s5814_s9 + $0x10] sm:$0xff] }
 0xad2   :  { %v5001_v46 = vpop.eup %5000 }
 0xad3   :  { %v1599_v50 = vmul.f32 %v5001_v46, %v4999_v33  ;;  %v1977_v46 = vld [vmem:[%s5814_s9] sm:$0xff] }
 0xae6   :  { %v1582_v45 = vpop.xlane.xlu1 %1581 }
 0xae7   :  { %v1584_v47 = vsub.f32 %v1574_v40, %v1582_v45  ;;  %v1978_v45 = vld [vmem:[%s5814_s9 + $0x8] sm:$0xff] }
 0xae9   :  { %v1587_v48 = vmul.f32 1.442695, %v1584_v47  ;;  %v4422_v47 = vld [vmem:[%s5813_s8] ss:$0 sm:$0xff] }
 0xaea   :  { %v1602_v49 = vpop.permute.xlu1 %1601 }
 0xaeb   :  { %5002 = vpow2.f32 %v1587_v48  ;;  %4751 = vmatpush3.msra.mxu1 %v1602_v49 }
 0xaec   :  { %4753 = vmatmul.mubr.msk.f32.vlgmr.msra.gmra.mxu1 %vm172_vm2, %v1599_v50  ;;  %4760 = vmatprep.subr.mxu1 %v167_v13 }
 0xaed   :  { %4761 = vmatpush3.msra.mxu1 %v167_v13 }
 0xaee   :  { %4776 = vmatprep.subr.mxu1 %v1984_v23 }
 0xaf8   :  { %v5003_v51 = vpop.eup %5002 }
 0xaf9   :  { %v1592_v52 = vsel %vm172_vm2, %v5003_v51, 0.0 }
 0xafa   :  { %1593 = vadd.xlane.f32.xlu0 %v1592_v52 }
 0xb10   :  { %1677 = vrot.lane.b32.xlu0 %v5232_v14, %s5828_s23  ;;  %s5853_s23 = smov 40  }
 0xb83   :  { %v1594_v53 = vpop.xlane.xlu0 %1593 }
 0xb84   :  { %v1596_v54 = vmax.f32 %v1594_v53, 1e-20  ;;  %v4425_v53 = vld [vmem:[%s5815_s10] ss:$0 sm:$0xff] }
 0xb86   :  { %5004 = vrcp.f32 %v1596_v54 }
 0xb87   :  { %v1678_v55 = vpop.permute.xlu0 %1677 }
 0xb88   :  { %4756 = vmatpush3.msra.mxu0 %v1678_v55 }
 0xb93   :  { %v5005_v56 = vpop.eup %5004 }
 0xb94   :  { %v1600_v57 = vmul.f32 %v5005_v56, %v5003_v51 }
 0xb96   :  { %4758 = vmatmul.mubr.msk.f32.vlgmr.msra.gmra.mxu0 %vm172_vm2, %v1600_v57 }
 0xbac   :  { %v1673_v58 = vpop.f32.mrf.mxu1 }
 0xbad   :  { %4762 = vmatprep.mubr.msk.f32.mxu1 %vm172_vm2, %v1673_v58 }
 0xbae   :  { %v4754_v59 = vpop.f32.mrf.mxu1 }
 0xc56   :  { %v1749_v14 = vpop.f32.mrf.mxu0 }
 0xc57   :  { %4763 = vmatmul.mubr.msk.f32.vlgmr.msra.gmra.mxu1 %vm172_vm2, %v1749_v14 }
 0xc58   :  { %v4759_v60 = vpop.f32.mrf.mxu0  ;;  %4777 = vmatpush3.msra.mxu1 %v1984_v23 }
 0xc59   :  { %4778 = vmatprep.subr.mxu1 %v1983_v24 }
 0xc5a   :  { %4779 = vmatpush3.msra.mxu1 %v1983_v24 }
 0xc5b   :  { %4780 = vmatprep.subr.mxu1 %v1982_v25 }
 0xc5c   :  { %4781 = vmatpush3.msra.mxu1 %v1982_v25 }
 0xc5d   :  { %4782 = vmatprep.subr.mxu1 %v1981_v26 }
 0xc5e   :  { %4783 = vmatpush3.msra.mxu1 %v1981_v26 }
 0xc5f   :  { %4784 = vmatprep.subr.mxu1 %v1980_v43 }
 0xc60   :  { %4785 = vmatpush3.msra.mxu1 %v1980_v43 }
 0xc61   :  { %4786 = vmatprep.subr.mxu1 %v1979_v44 }
 0xc62   :  { %4787 = vmatpush3.msra.mxu1 %v1979_v44 }
 0xc63   :  { %4788 = vmatprep.subr.mxu1 %v1978_v45 }
 0xc64   :  { %4789 = vmatpush3.msra.mxu1 %v1978_v45 }
 0xc65   :  { %4790 = vmatprep.subr.mxu1 %v1977_v46 }
 0xc66   :  { %4791 = vmatpush3.msra.mxu1 %v1977_v46 }
 0xc67   :  { %4811 = vmatprep.subr.mxu1 %v5077_v9 }
 0xd17   :  { %v4764_v61 = vpop.f32.mrf.mxu1 }
 0xd18   :  { %v1835_v62 = vadd.f32 %v4764_v61, %v1420_v36 }
 0xd19   :  { %v1825_v63 = vpop.f32.mrf.mxu1 }
 0xd1a   :  { %v1834_v0 = vadd.f32 %v1825_v63, %v1419_v38  ;;  %v1837_v1 = vadd.f32 %v1835_v62, %v5216_v8 }
 0xd1c   :  { %v1843_v2 = vsel %vm80_vm0, %v1837_v1, 0.0  ;;  %v1836_v3 = vadd.f32 %v1834_v0, %v5211_v6  ;;  %v1886_v6 = vld [vmem:[%s5812_s7 + $0x18] sm:$0xff] }
 0xd1d   :  { %1844 = vadd.xlane.f32.xlu0 %v1843_v2  ;;  %4765 = vmatprep.subr.mxu0 %v1886_v6 }
 0xd1e   :  { %v1840_v4 = vsel %vm80_vm0, %v1836_v3, 0.0  ;;  %4766 = vmatpush3.msra.mxu0 %v1886_v6 }
 0xd1f   :  { %1841 = vadd.xlane.f32.xlu1 %v1840_v4  ;;  %4767 = vmatprep.subr.mxu0 %v1885_v20 }
 0xd20   :  { %4768 = vmatpush3.msra.mxu0 %v1885_v20 }
 0xd21   :  { %4769 = vmatprep.subr.mxu0 %v1884_v21 }
 0xd22   :  { %4770 = vmatpush3.msra.mxu0 %v1884_v21 }
 0xd23   :  { %4771 = vmatprep.subr.mxu0 %v1883_v22 }
 0xd24   :  { %4772 = vmatpush3.msra.mxu0 %v1883_v22  ;;  %v4428_v22 = vld [vmem:[%s5818_s13] ss:$0 sm:$0xff] }
 0xda6   :  { %v1845_v5 = vpop.xlane.xlu0 %1844 }
 0xda7   :  { %v1848_v18 = vmul.f32 0.03125, %v1845_v5 }
 0xda8   :  { %v1842_v7 = vpop.xlane.xlu1 %1841 }
 0xda9   :  { %v1850_v10 = vsub.f32 %v1837_v1, %v1848_v18  ;;  %v1847_v11 = vmul.f32 0.03125, %v1842_v7  ;;  %v4433_v7 = vld [vmem:[%s5844_s20 + $0x38] sm:$0xff] }
 0xdaa   :  { %4795 = vmatprep.subr.mxu0 %v4433_v7 }
 0xdab   :  { %v1849_v12 = vsub.f32 %v1836_v3, %v1847_v11  ;;  %v1852_v15 = vmul.f32 %v1850_v10, %v1850_v10  ;;  %v4431_v11 = vld [vmem:[%s5844_s20 + $0x28] sm:$0xff] }
 0xdad   :  { %v1856_v17 = vsel %vm80_vm0, %v1852_v15, 0.0  ;;  %v1851_v16 = vmul.f32 %v1849_v12, %v1849_v12 }
 0xdae   :  { %1857 = vadd.xlane.f32.xlu0 %v1856_v17 }
 0xdaf   :  { %v1853_v8 = vsel %vm80_vm0, %v1851_v16, 0.0 }
 0xdb0   :  { %1854 = vadd.xlane.f32.xlu1 %v1853_v8 }
 0xe37   :  { %v1858_v27 = vpop.xlane.xlu0 %1857 }
 0xe38   :  { %v1860_v28 = vmul.f32 0.03125, %v1858_v27  ;;  %v4429_v27 = vld [vmem:[%s5819_s14] ss:$0 sm:$0xff] }
 0xe39   :  { %v1855_v29 = vpop.xlane.xlu1 %1854 }
 0xe3a   :  { %v1862_v30 = vadd.f32 1e-05, %v1860_v28  ;;  %v1859_v31 = vmul.f32 0.03125, %v1855_v29 }
 0xe3c   :  { %5006 = vrsqrt.f32 %v1862_v30  ;;  %v1861_v32 = vadd.f32 1e-05, %v1859_v31  ;;  %v4435_v31 = vld [vmem:[%s5809_s4 + $0x1] ss:$0 sm:$0xff] }
 0xe3e   :  { %5008 = vrsqrt.f32 %v1861_v32 }
 0xe49   :  { %v5007_v33 = vpop.eup %5006 }
 0xe4a   :  { %v1866_v35 = vmul.f32 %v5007_v33, %v1850_v10  ;;  %v4432_v10 = vld [vmem:[%s5844_s20 + $0x30] sm:$0xff] }
 0xe4b   :  { %v5009_v36 = vpop.eup %5008 }
 0xe4c   :  { %v1865_v37 = vmul.f32 %v5009_v36, %v1849_v12  ;;  %v1874_v38 = vmul.f32 %v4420_v34, %v1866_v35  ;;  %v4430_v12 = vld [vmem:[%s5844_s20 + $0x20] sm:$0xff] }
 0xe4e   :  { %v1873_v40 = vmul.f32 %v4420_v34, %v1865_v37  ;;  %v1882_v42 = vadd.f32 %v4421_v39, %v1874_v38 }
 0xe50   :  { %v1881_v41 = vadd.f32 %v4421_v39, %v1873_v40 }
 0xe52   :  { %4773 = vmatprep.mubr.msk.f32.mxu0 %vm80_vm0, %v1881_v41 }
 0xe53   :  { %4774 = vmatmul.mubr.msk.f32.vlgmr.msra.gmra.mxu0 %vm80_vm0, %v1882_v42 }
 0xe54   :  { %4796 = vmatpush3.msra.mxu0 %v4433_v7 }
 0xe55   :  { %4797 = vmatprep.subr.mxu0 %v4432_v10 }
 0xe56   :  { %4798 = vmatpush3.msra.mxu0 %v4432_v10 }
 0xe57   :  { %4799 = vmatprep.subr.mxu0 %v4431_v11 }
 0xe58   :  { %4800 = vmatpush3.msra.mxu0 %v4431_v11 }
 0xe59   :  { %4801 = vmatprep.subr.mxu0 %v4430_v12 }
 0xe5a   :  { %4802 = vmatpush3.msra.mxu0 %v4430_v12  ;;  %v5577_v12 = vld [vmem:[%s5847_s24] sm:$0xff]  ;;  %s5848_s24 = smov 80  }
 0xe5b   :  { %4806 = vmatprep.subr.mxu0 %v5077_v9 }
 0xf13   :  { %v4775_v48 = vpop.f32.mrf.mxu0 }
 0xf14   :  { %v1972_v49 = vadd.f32 %v4775_v48, %v4422_v47 }
 0xf15   :  { %v1966_v50 = vpop.f32.mrf.mxu0 }
 0xf16   :  { %v1967_v51 = vadd.f32 %v4422_v47, %v1966_v50  ;;  %v1976_v13 = vmax.f32 %v1972_v49, 0.0 }
 0xf18   :  { %v1975_v52 = vmax.f32 %v1967_v51, 0.0 }
 0xf1a   :  { %4792 = vmatprep.mubr.msk.f32.mxu1 %vm1992_vm3, %v1975_v52 }
 0xf1b   :  { %4793 = vmatmul.mubr.msk.f32.vlgmr.msra.gmra.mxu1 %vm1992_vm3, %v1976_v13 }
 0xf1c   :  { %4813 = vmatprep.mubr.msk.f32.mxu1 %vm5078_vm1, %v5077_v9 }
 0xfdb   :  { %v4794_v54 = vpop.f32.mrf.mxu1 }
 0xfdc   :  { %v2071_v55 = vadd.f32 %v4794_v54, %v4425_v53 }
 0xfdd   :  { %v2065_v56 = vpop.f32.mrf.mxu1 }
 0xfde   :  { %v2066_v57 = vadd.f32 %v4425_v53, %v2065_v56  ;;  %v2075_v58 = vadd.f32 %v2071_v55, %v1882_v42 }
 0xfe0   :  { %v2081_v59 = vsel %vm80_vm0, %v2075_v58, 0.0  ;;  %v2074_v14 = vadd.f32 %v2066_v57, %v1881_v41 }
 0xfe1   :  { %2082 = vadd.xlane.f32.xlu0 %v2081_v59 }
 0xfe2   :  { %v2078_v60 = vsel %vm80_vm0, %v2074_v14, 0.0 }
 0xfe3   :  { %2079 = vadd.xlane.f32.xlu1 %v2078_v60 }
0x106a   :  { %v2083_v61 = vpop.xlane.xlu0 %2082 }
0x106b   :  { %v2085_v62 = vmul.f32 0.03125, %v2083_v61 }
0x106c   :  { %v2080_v63 = vpop.xlane.xlu1 %2079 }
0x106d   :  { %v2087_v0 = vsub.f32 %v2075_v58, %v2085_v62  ;;  %v2084_v1 = vmul.f32 0.03125, %v2080_v63 }
0x106f   :  { %v2086_v2 = vsub.f32 %v2074_v14, %v2084_v1  ;;  %v2089_v3 = vmul.f32 %v2087_v0, %v2087_v0 }
0x1071   :  { %v2093_v4 = vsel %vm80_vm0, %v2089_v3, 0.0  ;;  %v2088_v5 = vmul.f32 %v2086_v2, %v2086_v2  ;;  %v4438_v3 = vld [vmem:[%s5810_s5 + $0x20] sm:$0xff] }
0x1072   :  { %2094 = vadd.xlane.f32.xlu0 %v2093_v4 }
0x1073   :  { %v2090_v18 = vsel %vm80_vm0, %v2088_v5, 0.0 }
0x1074   :  { %2091 = vadd.xlane.f32.xlu1 %v2090_v18 }
0x10fb   :  { %v2095_v15 = vpop.xlane.xlu0 %2094 }
0x10fc   :  { %v2097_v17 = vmul.f32 0.03125, %v2095_v15 }
0x10fd   :  { %v2092_v16 = vpop.xlane.xlu1 %2091 }
0x10fe   :  { %v2099_v8 = vadd.f32 1e-05, %v2097_v17  ;;  %v2096_v6 = vmul.f32 0.03125, %v2092_v16 }
0x1100   :  { %5010 = vrsqrt.f32 %v2099_v8  ;;  %v2098_v20 = vadd.f32 1e-05, %v2096_v6 }
0x1102   :  { %5012 = vrsqrt.f32 %v2098_v20 }
0x110d   :  { %v5011_v21 = vpop.eup %5010 }
0x110e   :  { %v2103_v23 = vmul.f32 %v5011_v21, %v2087_v0 }
0x110f   :  { %v5013_v24 = vpop.eup %5012 }
0x1110   :  { %v2102_v25 = vmul.f32 %v5013_v24, %v2086_v2  ;;  %v2111_v26 = vmul.f32 %v4428_v22, %v2103_v23 }
0x1112   :  { %v2110_v28 = vmul.f32 %v4428_v22, %v2102_v25  ;;  %v5503_v30 = vadd.f32 %v4429_v27, %v2111_v26 }
0x1114   :  { %v5501_v29 = vadd.f32 %v4429_v27, %v2110_v28 }
0x1116   :  { %4803 = vmatprep.mubr.msk.f32.mxu0 %vm80_vm0, %v5501_v29 }
0x1117   :  { %4804 = vmatmul.mubr.msk.f32.vlgmr.msra.gmra.mxu0 %vm80_vm0, %v5503_v30 }
0x1118   :  { %4808 = vmatprep.mubr.msk.f32.mxu0 %vm5078_vm1, %v5077_v9 }
0x11d7   :  { %v4805_v32 = vpop.f32.mrf.mxu0 }
0x11d8   :  { %v5514_v33 = vadd.f32 %v4805_v32, %v4435_v31 }
0x11d9   :  { %v2205_v34 = vpop.f32.mrf.mxu0 }
0x11da   :  { %v5516_v35 = vadd.f32 %v4435_v31, %v2205_v34  ;;  %2302 = vrot.lane.b32.xlu0 %v5514_v33, %s5079_s22  ;;  %v5524_v38 = vmul.f32 0.35355338, %v5514_v33 }
0x11dc   :  { %2224 = vrot.lane.b32.xlu1 %v5516_v35, %s5079_s22  ;;  %v5531_v39 = vmul.f32 0.35355338, %v5516_v35 }
0x124c   :  { %v2303_v36 = vpop.permute.xlu0 %2302 }
0x124d   :  { %4812 = vmatpush3.xpose.msk.msra.mxu1 %vm172_vm2, %v2303_v36 }
0x124e   :  { %v2225_v37 = vpop.permute.xlu1 %2224  ;;  %4821 = vmatprep.subr.mxu1 %v5077_v9 }
0x124f   :  { %4807 = vmatpush3.xpose.msk.msra.mxu0 %vm172_vm2, %v2225_v37 }
0x1250   :  { %4814 = vmatmul.mubr.msk.f32.vlgmr.msra.gmra.mxu1 %vm172_vm2, %v5524_v38  ;;  %4816 = vmatprep.subr.mxu0 %v5077_v9 }
0x1251   :  { %4823 = vmatprep.mubr.msk.f32.mxu1 %vm5078_vm1, %v5077_v9 }
0x1252   :  { %4809 = vmatmul.mubr.msk.f32.vlgmr.msra.gmra.mxu0 %vm172_vm2, %v5531_v39 }
0x1253   :  { %4818 = vmatprep.mubr.msk.f32.mxu0 %vm5078_vm1, %v5077_v9 }
0x1310   :  { %v2375_v40 = vpop.f32.mrf.mxu1 }
0x1311   :  { %v2376_v41 = vadd.f32 %v2375_v40, %v5257_v19 }
0x1312   :  { %v2297_v42 = vpop.f32.mrf.mxu0  ;;  %v4815_v43 = vpop.f32.mrf.mxu1 }
0x1313   :  { %v2298_v44 = vadd.f32 %v2297_v42, %v5257_v19  ;;  %v2382_v45 = vsel %vm172_vm2, %v2376_v41, -inf }
0x1314   :  { %2383 = vmax.xlane.f32.xlu0 %v2382_v45  ;;  %v4810_v46 = vpop.f32.mrf.mxu0 }
0x1315   :  { %v2379_v47 = vsel %vm172_vm2, %v2298_v44, -inf  ;;  %v4439_v46 = vld [vmem:[%s5810_s5 + $0x28] sm:$0xff] }
0x1316   :  { %2380 = vmax.xlane.f32.xlu1 %v2379_v47 }
0x139d   :  { %v2384_v48 = vpop.xlane.xlu0 %2383 }
0x139e   :  { %v2386_v49 = vsub.f32 %v2376_v41, %v2384_v48 }
0x139f   :  { %v2381_v50 = vpop.xlane.xlu1 %2380 }
0x13a0   :  { %v2389_v51 = vmul.f32 1.442695, %v2386_v49  ;;  %v2385_v52 = vsub.f32 %v2298_v44, %v2381_v50 }
0x13a2   :  { %5014 = vpow2.f32 %v2389_v51  ;;  %v2387_v13 = vmul.f32 1.442695, %v2385_v52 }
0x13a4   :  { %5016 = vpow2.f32 %v2387_v13 }
0x13af   :  { %v5015_v53 = vpop.eup %5014 }
0x13b0   :  { %v2394_v54 = vsel %vm172_vm2, %v5015_v53, 0.0 }
0x13b1   :  { %v5017_v55 = vpop.eup %5016  ;;  %2395 = vadd.xlane.f32.xlu0 %v2394_v54 }
0x13b2   :  { %v2391_v19 = vsel %vm172_vm2, %v5017_v55, 0.0 }
0x13b3   :  { %2392 = vadd.xlane.f32.xlu1 %v2391_v19 }
0x13c4   :  { %2403 = vrot.lane.b32.xlu1 %v5516_v35, %s5080_s25 }
0x13c7   :  { %2479 = vrot.lane.b32.xlu0 %v5514_v33, %s5080_s25 }
0x13c8   :  { %2646 = vrot.lane.b32.xlu1 %v5516_v35, %s5082_s26 }
0x13cb   :  { %2644 = vrot.lane.b32.xlu0 %v5531_v39, %s5081_s3 }
0x13cc   :  { %2724 = vrot.lane.b32.xlu1 %v5514_v33, %s5082_s26  ;;  %s5849_s26 = smov 112  }
0x13d0   :  { %2722 = vrot.lane.b32.xlu1 %v5524_v38, %s5081_s3 }
0x143a   :  { %v2396_v56 = vpop.xlane.xlu0 %2395 }
0x143b   :  { %v2398_v57 = vmax.f32 %v2396_v56, 1e-20 }
0x143c   :  { %v2393_v58 = vpop.xlane.xlu1 %2392 }
0x143d   :  { %5018 = vrcp.f32 %v2398_v57  ;;  %v2397_v59 = vmax.f32 %v2393_v58, 1e-20 }
0x143e   :  { %v2480_v14 = vpop.permute.xlu0 %2479 }
0x143f   :  { %5020 = vrcp.f32 %v2397_v59  ;;  %4822 = vmatpush3.msra.mxu1 %v2480_v14 }
0x1440   :  { %v2404_v60 = vpop.permute.xlu1 %2403  ;;  %4831 = vmatprep.subr.mxu1 %v5077_v9 }
0x1441   :  { %4817 = vmatpush3.msra.mxu0 %v2404_v60 }
0x1442   :  { %v2645_v2 = vpop.permute.xlu0 %2644  ;;  %4826 = vmatprep.subr.mxu0 %v4438_v3 }
0x1444   :  { %v2647_v0 = vpop.permute.xlu1 %2646 }
0x1448   :  { %v2725_v5 = vpop.permute.xlu1 %2724 }
0x144a   :  { %v5019_v61 = vpop.eup %5018 }
0x144b   :  { %v2402_v62 = vmul.f32 %v5019_v61, %v5015_v53 }
0x144c   :  { %v5021_v63 = vpop.eup %5020  ;;  %v2723_v16 = vpop.permute.xlu1 %2722 }
0x144d   :  { %4824 = vmatmul.mubr.msk.f32.vlgmr.msra.gmra.mxu1 %vm172_vm2, %v2402_v62  ;;  %v2401_v1 = vmul.f32 %v5021_v63, %v5017_v55 }
0x144e   :  { %4832 = vmatpush3.xpose.msk.msra.mxu1 %vm172_vm2, %v2647_v0  ;;  %4833 = vmatprep.mubr.msk.f32.mxu1 %vm5078_vm1, %v5077_v9 }
0x144f   :  { %4819 = vmatmul.mubr.msk.f32.vlgmr.msra.gmra.mxu0 %vm172_vm2, %v2401_v1  ;;  %4841 = vmatprep.subr.mxu1 %v5077_v9 }
0x1450   :  { %4827 = vmatpush3.msra.mxu0 %v4438_v3 }
0x1451   :  { %4834 = vmatmul.mubr.msk.f32.vlgmr.msra.gmra.mxu1 %vm172_vm2, %v2645_v2  ;;  %4836 = vmatprep.subr.mxu0 %v5077_v9  ;;  %v4451_v2 = vld [vmem:[%s5811_s6 + $0x1] ss:$0 sm:$0xff]  ;;  %s5851_s6 = smov 72  }
0x1452   :  { %4843 = vmatprep.mubr.msk.f32.mxu1 %vm5078_vm1, %v5077_v9 }
0x150d   :  { %v2551_v4 = vpop.f32.mrf.mxu1 }
0x150f   :  { %v2475_v18 = vpop.f32.mrf.mxu0  ;;  %v4825_v7 = vpop.f32.mrf.mxu1 }
0x1510   :  { %4828 = vmatprep.mubr.msk.f32.mxu0 %vm172_vm2, %v2475_v18 }
0x1511   :  { %v4820_v10 = vpop.f32.mrf.mxu0  ;;  %4829 = vmatmul.mubr.msk.f32.vlgmr.msra.gmra.mxu0 %vm172_vm2, %v2551_v4  ;;  %v2718_v11 = vpop.f32.mrf.mxu1 }
0x1512   :  { %v2719_v15 = vadd.f32 %v5577_v12, %v2718_v11  ;;  %4837 = vmatpush3.xpose.msk.msra.mxu0 %vm172_vm2, %v2725_v5  ;;  %4838 = vmatprep.mubr.msk.f32.mxu0 %vm5078_vm1, %v5077_v9 }
0x1513   :  { %v4835_v17 = vpop.f32.mrf.mxu1  ;;  %4846 = vmatprep.subr.mxu0 %v5077_v9 }
0x1514   :  { %v2800_v8 = vsel %vm172_vm2, %v2719_v15, -inf }
0x1515   :  { %2801 = vmax.xlane.f32.xlu0 %v2800_v8  ;;  %4839 = vmatmul.mubr.msk.f32.vlgmr.msra.gmra.mxu0 %vm172_vm2, %v2723_v16 }
0x1516   :  { %4848 = vmatprep.mubr.msk.f32.mxu0 %vm5078_vm1, %v5077_v9 }
0x159e   :  { %v2802_v6 = vpop.xlane.xlu0 %2801 }
0x159f   :  { %v2806_v20 = vsub.f32 %v2719_v15, %v2802_v6 }
0x15a1   :  { %v2808_v21 = vmul.f32 1.442695, %v2806_v20 }
0x15a3   :  { %5022 = vpow2.f32 %v2808_v21 }
0x15b0   :  { %v5023_v22 = vpop.eup %5022 }
0x15b1   :  { %v2812_v23 = vsel %vm172_vm2, %v5023_v22, 0.0 }
0x15b2   :  { %2813 = vadd.xlane.f32.xlu0 %v2812_v23 }
0x15d1   :  { %v5589_v24 = vpop.f32.mrf.mxu0 }
0x15d2   :  { %v2643_v3 = vadd.f32 %v5589_v24, %v4451_v2 }
0x15d3   :  { %v5591_v25 = vpop.f32.mrf.mxu0 }
0x15d4   :  { %v2642_v5 = vadd.f32 %v4451_v2, %v5591_v25 }
0x15d5   :  { %v2796_v26 = vpop.f32.mrf.mxu0 }
0x15d6   :  { %v2797_v27 = vadd.f32 %v5577_v12, %v2796_v26 }
0x15d7   :  { %v4840_v28 = vpop.f32.mrf.mxu0 }
0x15d8   :  { %v2803_v31 = vsel %vm172_vm2, %v2797_v27, -inf }
0x15d9   :  { %2804 = vmax.xlane.f32.xlu1 %v2803_v31 }
0x15ea   :  { %2824 = vrot.lane.b32.xlu1 %v5516_v35, %s5083_s29 }
0x15ee   :  { %3061 = vrot.lane.b32.xlu1 %v5516_v35, %s5848_s24 }
0x15f2   :  { %3139 = vrot.lane.b32.xlu1 %v5514_v33, %s5848_s24 }
0x15f6   :  { %3137 = vrot.lane.b32.xlu1 %v5524_v38, %s5849_s26 }
0x163b   :  { %v2814_v32 = vpop.xlane.xlu0 %2813 }
0x163c   :  { %v2818_v34 = vmax.f32 %v2814_v32, 1e-20 }
0x163e   :  { %5024 = vrcp.f32 %v2818_v34 }
0x164b   :  { %v5025_v37 = vpop.eup %5024 }
0x164c   :  { %v2822_v43 = vmul.f32 %v5025_v37, %v5023_v22 }
0x1662   :  { %v2805_v36 = vpop.xlane.xlu1 %2804 }
0x1663   :  { %v2807_v40 = vsub.f32 %v2797_v27, %v2805_v36 }
0x1665   :  { %v2810_v41 = vmul.f32 1.442695, %v2807_v40 }
0x1666   :  { %v2825_v42 = vpop.permute.xlu1 %2824 }
0x1667   :  { %5026 = vpow2.f32 %v2810_v41  ;;  %4842 = vmatpush3.msra.mxu1 %v2825_v42 }
0x1668   :  { %4844 = vmatmul.mubr.msk.f32.vlgmr.msra.gmra.mxu1 %vm172_vm2, %v2822_v43  ;;  %4851 = vmatprep.subr.mxu1 %v4439_v46 }
0x1669   :  { %4852 = vmatpush3.msra.mxu1 %v4439_v46 }
0x166a   :  { %4861 = vmatprep.subr.mxu1 %v5077_v9  ;;  %v3062_v52 = vpop.permute.xlu1 %3061 }
0x166e   :  { %v3140_v55 = vpop.permute.xlu1 %3139 }
0x1672   :  { %v3138_v57 = vpop.permute.xlu1 %3137 }
0x1674   :  { %v5027_v44 = vpop.eup %5026 }
0x1675   :  { %v2815_v45 = vsel %vm172_vm2, %v5027_v44, 0.0 }
0x1676   :  { %2816 = vadd.xlane.f32.xlu0 %v2815_v45 }
0x168c   :  { %2900 = vrot.lane.b32.xlu0 %v5514_v33, %s5083_s29 }
0x1690   :  { %3059 = vrot.lane.b32.xlu0 %v5531_v39, %s5849_s26 }
0x16ff   :  { %v2817_v47 = vpop.xlane.xlu0 %2816 }
0x1700   :  { %v2819_v48 = vmax.f32 %v2817_v47, 1e-20 }
0x1702   :  { %5028 = vrcp.f32 %v2819_v48 }
0x1703   :  { %v2901_v49 = vpop.permute.xlu0 %2900 }
0x1704   :  { %4847 = vmatpush3.msra.mxu0 %v2901_v49 }
0x1705   :  { %4856 = vmatprep.subr.mxu0 %v5077_v9 }
0x1707   :  { %v3060_v13 = vpop.permute.xlu0 %3059 }
0x170f   :  { %v5029_v50 = vpop.eup %5028 }
0x1710   :  { %v2823_v51 = vmul.f32 %v5029_v50, %v5027_v44 }
0x1712   :  { %4849 = vmatmul.mubr.msk.f32.vlgmr.msra.gmra.mxu0 %vm172_vm2, %v2823_v51 }
0x1713   :  { %4857 = vmatpush3.xpose.msk.msra.mxu0 %vm172_vm2, %v3062_v52  ;;  %4858 = vmatprep.mubr.msk.f32.mxu0 %vm5078_vm1, %v5077_v9 }
0x1714   :  { %4866 = vmatprep.subr.mxu0 %v5077_v9 }
0x1716   :  { %4859 = vmatmul.mubr.msk.f32.vlgmr.msra.gmra.mxu0 %vm172_vm2, %v3060_v13 }
0x1717   :  { %4868 = vmatprep.mubr.msk.f32.mxu0 %vm5078_vm1, %v5077_v9 }
0x1728   :  { %v2896_v53 = vpop.f32.mrf.mxu1 }
0x1729   :  { %4853 = vmatprep.mubr.msk.f32.mxu1 %vm172_vm2, %v2896_v53 }
0x172a   :  { %v4845_v54 = vpop.f32.mrf.mxu1 }
0x17d2   :  { %v2972_v19 = vpop.f32.mrf.mxu0 }
0x17d3   :  { %4854 = vmatmul.mubr.msk.f32.vlgmr.msra.gmra.mxu1 %vm172_vm2, %v2972_v19 }
0x17d4   :  { %4862 = vmatpush3.xpose.msk.msra.mxu1 %vm172_vm2, %v3140_v55  ;;  %v4850_v56 = vpop.f32.mrf.mxu0  ;;  %4863 = vmatprep.mubr.msk.f32.mxu1 %vm5078_vm1, %v5077_v9 }
0x17d5   :  { %4871 = vmatprep.subr.mxu1 %v5077_v9 }
0x17d6   :  { %v3133_v58 = vpop.f32.mrf.mxu0 }
0x17d7   :  { %v3134_v59 = vadd.f32 %v5577_v12, %v3133_v58  ;;  %4864 = vmatmul.mubr.msk.f32.vlgmr.msra.gmra.mxu1 %vm172_vm2, %v3138_v57 }
0x17d8   :  { %v4860_v14 = vpop.f32.mrf.mxu0  ;;  %4873 = vmatprep.mubr.msk.f32.mxu1 %vm5078_vm1, %v5077_v9 }
0x17d9   :  { %v3215_v60 = vsel %vm172_vm2, %v3134_v59, -inf }
0x17da   :  { %3216 = vmax.xlane.f32.xlu0 %v3215_v60 }
0x1863   :  { %v3217_v61 = vpop.xlane.xlu0 %3216 }
0x1864   :  { %v3221_v62 = vsub.f32 %v3134_v59, %v3217_v61 }
0x1866   :  { %v3223_v63 = vmul.f32 1.442695, %v3221_v62 }
0x1868   :  { %5030 = vpow2.f32 %v3223_v63 }
0x1875   :  { %v5031_v0 = vpop.eup %5030 }
0x1876   :  { %v3227_v1 = vsel %vm172_vm2, %v5031_v0, 0.0 }
0x1877   :  { %3228 = vadd.xlane.f32.xlu0 %v3227_v1 }
0x1893   :  { %v4855_v4 = vpop.f32.mrf.mxu1 }
0x1894   :  { %v5639_v18 = vadd.f32 %v4855_v4, %v2643_v3 }
0x1895   :  { %v3048_v7 = vpop.f32.mrf.mxu1 }
0x1896   :  { %v5641_v10 = vadd.f32 %v3048_v7, %v2642_v5 }
0x1897   :  { %v3211_v11 = vpop.f32.mrf.mxu1 }
0x1898   :  { %v3212_v15 = vadd.f32 %v5577_v12, %v3211_v11 }
0x1899   :  { %v4865_v17 = vpop.f32.mrf.mxu1 }
0x189a   :  { %v3218_v16 = vsel %vm172_vm2, %v3212_v15, -inf }
0x189b   :  { %3219 = vmax.xlane.f32.xlu1 %v3218_v16 }
0x18ac   :  { %3239 = vrot.lane.b32.xlu1 %v5516_v35, %s5850_s1 }
0x18b0   :  { %3476 = vrot.lane.b32.xlu1 %v5516_v35, %s5851_s6 }
0x18b4   :  { %3554 = vrot.lane.b32.xlu1 %v5514_v33, %s5851_s6 }
0x18b8   :  { %3552 = vrot.lane.b32.xlu1 %v5524_v38, %s5852_s2  ;;  %v4440_v38 = vld [vmem:[%s5810_s5 + $0x30] sm:$0xff] }
0x1900   :  { %v3229_v8 = vpop.xlane.xlu0 %3228 }
0x1901   :  { %v3233_v6 = vmax.f32 %v3229_v8, 1e-20 }
0x1903   :  { %5032 = vrcp.f32 %v3233_v6 }
0x1910   :  { %v5033_v21 = vpop.eup %5032 }
0x1911   :  { %v3237_v25 = vmul.f32 %v5033_v21, %v5031_v0 }
0x1924   :  { %v3220_v20 = vpop.xlane.xlu1 %3219 }
0x1925   :  { %v3222_v22 = vsub.f32 %v3212_v15, %v3220_v20 }
0x1927   :  { %v3225_v23 = vmul.f32 1.442695, %v3222_v22 }
0x1928   :  { %v3240_v24 = vpop.permute.xlu1 %3239 }
0x1929   :  { %5034 = vpow2.f32 %v3225_v23  ;;  %4867 = vmatpush3.msra.mxu0 %v3240_v24 }
0x192a   :  { %4869 = vmatmul.mubr.msk.f32.vlgmr.msra.gmra.mxu0 %vm172_vm2, %v3237_v25  ;;  %4876 = vmatprep.subr.mxu0 %v4440_v38 }
0x192b   :  { %4877 = vmatpush3.msra.mxu0 %v4440_v38 }
0x192c   :  { %4886 = vmatprep.subr.mxu0 %v5077_v9  ;;  %v3477_v37 = vpop.permute.xlu1 %3476 }
0x1930   :  { %v3555_v42 = vpop.permute.xlu1 %3554 }
0x1934   :  { %v3553_v45 = vpop.permute.xlu1 %3552 }
0x1936   :  { %v5035_v26 = vpop.eup %5034 }
0x1937   :  { %v3230_v27 = vsel %vm172_vm2, %v5035_v26, 0.0 }
0x1938   :  { %3231 = vadd.xlane.f32.xlu0 %v3230_v27 }
0x194e   :  { %3315 = vrot.lane.b32.xlu0 %v5514_v33, %s5850_s1 }
0x1952   :  { %3474 = vrot.lane.b32.xlu0 %v5531_v39, %s5852_s2 }
0x19c1   :  { %v3232_v28 = vpop.xlane.xlu0 %3231 }
0x19c2   :  { %v3234_v31 = vmax.f32 %v3232_v28, 1e-20 }
0x19c4   :  { %5036 = vrcp.f32 %v3234_v31 }
0x19c5   :  { %v3316_v32 = vpop.permute.xlu0 %3315 }
0x19c6   :  { %4872 = vmatpush3.msra.mxu1 %v3316_v32 }
0x19c7   :  { %4881 = vmatprep.subr.mxu1 %v5077_v9 }
0x19c9   :  { %v3475_v39 = vpop.permute.xlu0 %3474 }
0x19d1   :  { %v5037_v34 = vpop.eup %5036 }
0x19d2   :  { %v3238_v36 = vmul.f32 %v5037_v34, %v5035_v26 }
0x19d4   :  { %4874 = vmatmul.mubr.msk.f32.vlgmr.msra.gmra.mxu1 %vm172_vm2, %v3238_v36 }
0x19d5   :  { %4882 = vmatpush3.xpose.msk.msra.mxu1 %vm172_vm2, %v3477_v37  ;;  %4883 = vmatprep.mubr.msk.f32.mxu1 %vm5078_vm1, %v5077_v9  ;;  %v4482_v37 = vld [vmem:[%s5812_s7 + $0x30] sm:$0xff] }
0x19d6   :  { %4891 = vmatprep.subr.mxu1 %v5077_v9 }
0x19d8   :  { %4884 = vmatmul.mubr.msk.f32.vlgmr.msra.gmra.mxu1 %vm172_vm2, %v3475_v39  ;;  %v4481_v39 = vld [vmem:[%s5812_s7 + $0x28] sm:$0xff] }
0x19d9   :  { %4893 = vmatprep.mubr.msk.f32.mxu1 %vm5078_vm1, %v5077_v9 }
0x19ea   :  { %v3311_v40 = vpop.f32.mrf.mxu0 }
0x19eb   :  { %4878 = vmatprep.mubr.msk.f32.mxu0 %vm172_vm2, %v3311_v40  ;;  %v4480_v40 = vld [vmem:[%s5812_s7 + $0x20] sm:$0xff] }
0x19ec   :  { %v4870_v41 = vpop.f32.mrf.mxu0 }
0x19ed   :  { %v4495_v41 = vld [vmem:[%s5814_s9 + $0x78] sm:$0xff] }
0x1a94   :  { %v3387_v43 = vpop.f32.mrf.mxu1 }
0x1a95   :  { %4879 = vmatmul.mubr.msk.f32.vlgmr.msra.gmra.mxu0 %vm172_vm2, %v3387_v43  ;;  %v4493_v43 = vld [vmem:[%s5814_s9 + $0x68] sm:$0xff] }
0x1a96   :  { %4887 = vmatpush3.xpose.msk.msra.mxu0 %vm172_vm2, %v3555_v42  ;;  %v4875_v44 = vpop.f32.mrf.mxu1  ;;  %4888 = vmatprep.mubr.msk.f32.mxu0 %vm5078_vm1, %v5077_v9  ;;  %v4494_v42 = vld [vmem:[%s5814_s9 + $0x70] sm:$0xff] }
0x1a97   :  { %4896 = vmatprep.subr.mxu0 %v5077_v9  ;;  %v4492_v44 = vld [vmem:[%s5814_s9 + $0x60] sm:$0xff] }
0x1a98   :  { %v3548_v46 = vpop.f32.mrf.mxu1 }
0x1a99   :  { %v3549_v47 = vadd.f32 %v5577_v12, %v3548_v46  ;;  %4889 = vmatmul.mubr.msk.f32.vlgmr.msra.gmra.mxu0 %vm172_vm2, %v3553_v45 }
0x1a9a   :  { %v4885_v48 = vpop.f32.mrf.mxu1  ;;  %4898 = vmatprep.mubr.msk.f32.mxu0 %vm5078_vm1, %v5077_v9 }
0x1a9b   :  { %v3630_v49 = vsel %vm172_vm2, %v3549_v47, -inf }
0x1a9c   :  { %3631 = vmax.xlane.f32.xlu0 %v3630_v49 }
0x1b25   :  { %v3632_v50 = vpop.xlane.xlu0 %3631 }
0x1b26   :  { %v3636_v51 = vsub.f32 %v3549_v47, %v3632_v50 }
0x1b28   :  { %v3638_v52 = vmul.f32 1.442695, %v3636_v51 }
0x1b2a   :  { %5038 = vpow2.f32 %v3638_v52  ;;  %v4478_v52 = vld [vmem:[%s5816_s11 + $0x1] ss:$0 sm:$0xff] }
0x1b37   :  { %v5039_v13 = vpop.eup %5038 }
0x1b38   :  { %v3642_v53 = vsel %vm172_vm2, %v5039_v13, 0.0 }
0x1b39   :  { %3643 = vadd.xlane.f32.xlu0 %v3642_v53 }
0x1b55   :  { %v4880_v54 = vpop.f32.mrf.mxu0 }
0x1b56   :  { %v3473_v55 = vadd.f32 %v4880_v54, %v5639_v18 }
0x1b57   :  { %v3463_v19 = vpop.f32.mrf.mxu0 }
0x1b58   :  { %v3472_v56 = vadd.f32 %v3463_v19, %v5641_v10  ;;  %v4479_v19 = vld [vmem:[%s5817_s12 + $0x1] ss:$0 sm:$0xff] }
0x1b59   :  { %v3626_v57 = vpop.f32.mrf.mxu0 }
0x1b5a   :  { %v3627_v9 = vadd.f32 %v5577_v12, %v3626_v57 }
0x1b5b   :  { %v4890_v58 = vpop.f32.mrf.mxu0 }
0x1b5c   :  { %v3633_v59 = vsel %vm172_vm2, %v3627_v9, -inf  ;;  %v4491_v58 = vld [vmem:[%s5814_s9 + $0x58] sm:$0xff] }
0x1b5d   :  { %3634 = vmax.xlane.f32.xlu1 %v3633_v59  ;;  %v4490_v59 = vld [vmem:[%s5814_s9 + $0x50] sm:$0xff] }
0x1b6e   :  { %3654 = vrot.lane.b32.xlu1 %v5516_v35, %s5853_s23  ;;  %v4441_v35 = vld [vmem:[%s5810_s5 + $0x38] sm:$0xff] }
0x1bc2   :  { %v3644_v14 = vpop.xlane.xlu0 %3643 }
0x1bc3   :  { %v3648_v60 = vmax.f32 %v3644_v14, 1e-20  ;;  %v4489_v14 = vld [vmem:[%s5814_s9 + $0x48] sm:$0xff] }
0x1bc5   :  { %5040 = vrcp.f32 %v3648_v60  ;;  %v4488_v60 = vld [vmem:[%s5814_s9 + $0x40] sm:$0xff] }
0x1bd2   :  { %v5041_v62 = vpop.eup %5040 }
0x1bd3   :  { %v3652_v2 = vmul.f32 %v5041_v62, %v5039_v13 }
0x1be6   :  { %v3635_v61 = vpop.xlane.xlu1 %3634 }
0x1be7   :  { %v3637_v63 = vsub.f32 %v3627_v9, %v3635_v61  ;;  %v4485_v61 = vld [vmem:[%s5813_s8 + $0x1] ss:$0 sm:$0xff] }
0x1be9   :  { %v3640_v0 = vmul.f32 1.442695, %v3637_v63 }
0x1bea   :  { %v3655_v1 = vpop.permute.xlu1 %3654 }
0x1beb   :  { %5042 = vpow2.f32 %v3640_v0  ;;  %4892 = vmatpush3.msra.mxu1 %v3655_v1 }
0x1bec   :  { %4894 = vmatmul.mubr.msk.f32.vlgmr.msra.gmra.mxu1 %vm172_vm2, %v3652_v2  ;;  %4901 = vmatprep.subr.mxu1 %v4441_v35 }
0x1bed   :  { %4902 = vmatpush3.msra.mxu1 %v4441_v35 }
0x1bee   :  { %4917 = vmatprep.subr.mxu1 %v4495_v41 }
0x1bf8   :  { %v5043_v12 = vpop.eup %5042 }
0x1bf9   :  { %v3645_v3 = vsel %vm172_vm2, %v5043_v12, 0.0 }
0x1bfa   :  { %3646 = vadd.xlane.f32.xlu0 %v3645_v3  ;;  %v4497_v3 = vld [vmem:[%s5815_s10 + $0x1] ss:$0 sm:$0xff] }
0x1c10   :  { %3730 = vrot.lane.b32.xlu0 %v5514_v33, %s5853_s23 }
0x1c83   :  { %v3647_v4 = vpop.xlane.xlu0 %3646 }
0x1c84   :  { %v3649_v5 = vmax.f32 %v3647_v4, 1e-20 }
0x1c86   :  { %5044 = vrcp.f32 %v3649_v5 }
0x1c87   :  { %v3731_v18 = vpop.permute.xlu0 %3730 }
0x1c88   :  { %4897 = vmatpush3.msra.mxu0 %v3731_v18 }
0x1c93   :  { %v5045_v7 = vpop.eup %5044 }
0x1c94   :  { %v3653_v10 = vmul.f32 %v5045_v7, %v5043_v12 }
0x1c96   :  { %4899 = vmatmul.mubr.msk.f32.vlgmr.msra.gmra.mxu0 %vm172_vm2, %v3653_v10 }
0x1cac   :  { %v3726_v11 = vpop.f32.mrf.mxu1 }
0x1cad   :  { %4903 = vmatprep.mubr.msk.f32.mxu1 %vm172_vm2, %v3726_v11 }
0x1cae   :  { %v4895_v15 = vpop.f32.mrf.mxu1 }
0x1d56   :  { %v3802_v33 = vpop.f32.mrf.mxu0 }
0x1d57   :  { %4904 = vmatmul.mubr.msk.f32.vlgmr.msra.gmra.mxu1 %vm172_vm2, %v3802_v33 }
0x1d58   :  { %v4900_v17 = vpop.f32.mrf.mxu0  ;;  %4918 = vmatpush3.msra.mxu1 %v4495_v41 }
0x1d59   :  { %4919 = vmatprep.subr.mxu1 %v4494_v42 }
0x1d5a   :  { %4920 = vmatpush3.msra.mxu1 %v4494_v42 }
0x1d5b   :  { %4921 = vmatprep.subr.mxu1 %v4493_v43 }
0x1d5c   :  { %4922 = vmatpush3.msra.mxu1 %v4493_v43  ;;  %v4503_v43 = vld [vmem:[%s5819_s14 + $0x1] ss:$0 sm:$0xff] }
0x1d5d   :  { %4923 = vmatprep.subr.mxu1 %v4492_v44 }
0x1d5e   :  { %4924 = vmatpush3.msra.mxu1 %v4492_v44 }
0x1d5f   :  { %4925 = vmatprep.subr.mxu1 %v4491_v58 }
0x1d60   :  { %4926 = vmatpush3.msra.mxu1 %v4491_v58 }
0x1d61   :  { %4927 = vmatprep.subr.mxu1 %v4490_v59 }
0x1d62   :  { %4928 = vmatpush3.msra.mxu1 %v4490_v59 }
0x1d63   :  { %4929 = vmatprep.subr.mxu1 %v4489_v14 }
0x1d64   :  { %4930 = vmatpush3.msra.mxu1 %v4489_v14 }
0x1d65   :  { %4931 = vmatprep.subr.mxu1 %v4488_v60 }
0x1d66   :  { %4932 = vmatpush3.msra.mxu1 %v4488_v60 }
0x1e17   :  { %v4905_v16 = vpop.f32.mrf.mxu1 }
0x1e18   :  { %v3888_v8 = vadd.f32 %v4905_v16, %v3473_v55 }
0x1e19   :  { %v3878_v6 = vpop.f32.mrf.mxu1 }
0x1e1a   :  { %v3887_v20 = vadd.f32 %v3878_v6, %v3472_v56  ;;  %v3890_v21 = vadd.f32 %v3888_v8, %v5503_v30 }
0x1e1c   :  { %v3898_v22 = vsel %vm80_vm0, %v3890_v21, 0.0  ;;  %v3889_v23 = vadd.f32 %v3887_v20, %v5501_v29  ;;  %v4483_v29 = vld [vmem:[%s5812_s7 + $0x38] sm:$0xff] }
0x1e1d   :  { %3899 = vadd.xlane.f32.xlu0 %v3898_v22  ;;  %4906 = vmatprep.subr.mxu0 %v4483_v29 }
0x1e1e   :  { %v3895_v24 = vsel %vm80_vm0, %v3889_v23, 0.0  ;;  %4907 = vmatpush3.msra.mxu0 %v4483_v29 }
0x1e1f   :  { %3896 = vadd.xlane.f32.xlu1 %v3895_v24  ;;  %4908 = vmatprep.subr.mxu0 %v4482_v37 }
0x1e20   :  { %4909 = vmatpush3.msra.mxu0 %v4482_v37  ;;  %v4502_v37 = vld [vmem:[%s5818_s13 + $0x1] ss:$0 sm:$0xff] }
0x1e21   :  { %4910 = vmatprep.subr.mxu0 %v4481_v39 }
0x1e22   :  { %4911 = vmatpush3.msra.mxu0 %v4481_v39 }
0x1e23   :  { %4912 = vmatprep.subr.mxu0 %v4480_v40 }
0x1e24   :  { %4913 = vmatpush3.msra.mxu0 %v4480_v40 }
0x1ea6   :  { %v3900_v25 = vpop.xlane.xlu0 %3899 }
0x1ea7   :  { %v3902_v26 = vmul.f32 0.03125, %v3900_v25  ;;  %v4182_v25 = vld [vmem:[%s5820_s15 + $0x18] sm:$0xff] }
0x1ea8   :  { %v3897_v27 = vpop.xlane.xlu1 %3896  ;;  %4936 = vmatprep.subr.mxu0 %v4182_v25 }
0x1ea9   :  { %v3904_v38 = vsub.f32 %v3890_v21, %v3902_v26  ;;  %v3901_v28 = vmul.f32 0.03125, %v3897_v27  ;;  %v4181_v26 = vld [vmem:[%s5820_s15 + $0x10] sm:$0xff]  ;;  %v4180_v27 = vld [vmem:[%s5820_s15 + $0x8] sm:$0xff] }
0x1eab   :  { %v3903_v31 = vsub.f32 %v3889_v23, %v3901_v28  ;;  %v3906_v32 = vmul.f32 %v3904_v38, %v3904_v38 }
0x1ead   :  { %v3910_v34 = vsel %vm80_vm0, %v3906_v32, 0.0  ;;  %v3905_v36 = vmul.f32 %v3903_v31, %v3903_v31 }
0x1eae   :  { %3911 = vadd.xlane.f32.xlu0 %v3910_v34 }
0x1eaf   :  { %v3907_v30 = vsel %vm80_vm0, %v3905_v36, 0.0 }
0x1eb0   :  { %3908 = vadd.xlane.f32.xlu1 %v3907_v30 }
0x1f37   :  { %v3912_v45 = vpop.xlane.xlu0 %3911 }
0x1f38   :  { %v3914_v46 = vmul.f32 0.03125, %v3912_v45 }
0x1f39   :  { %v3909_v47 = vpop.xlane.xlu1 %3908 }
0x1f3a   :  { %v3916_v48 = vadd.f32 1e-05, %v3914_v46  ;;  %v3913_v49 = vmul.f32 0.03125, %v3909_v47  ;;  %v4276_v47 = vld [vmem:[%s5822_s17 + $0x18] sm:$0xff] }
0x1f3c   :  { %5046 = vrsqrt.f32 %v3916_v48  ;;  %v3915_v50 = vadd.f32 1e-05, %v3913_v49  ;;  %v4275_v48 = vld [vmem:[%s5822_s17 + $0x10] sm:$0xff]  ;;  %v4274_v49 = vld [vmem:[%s5822_s17 + $0x8] sm:$0xff] }
0x1f3e   :  { %5048 = vrsqrt.f32 %v3915_v50  ;;  %v4273_v50 = vld [vmem:[%s5822_s17] sm:$0xff]  ;;  %s5090_s17 = smov [#allocation2]  }
0x1f3f   :  { %s4373_s29 = sshll.u32 %s5090_s17, 4  ;;  %s4374_s29 = int_to_ptr.vmem [resolvable:$true] %s4373_s29 }
0x1f40   :  { %p5060_p1 = scmp.lt.s32.totalorder %s4374_s29, %s4374_s29 }
0x1f49   :  { %v5047_v51 = vpop.eup %5046 }
0x1f4a   :  { %v3920_v13 = vmul.f32 %v5047_v51, %v3904_v38  ;;  %v4179_v38 = vld [vmem:[%s5820_s15] sm:$0xff] }
0x1f4b   :  { %v5049_v53 = vpop.eup %5048  ;;  %v4504_v51 = vld [vmem:[%s5821_s16] ss:$0 sm:$0xff]  ;;  %s5055_s16 = scalar_lea.vmem %s4374_s29, 256 }
0x1f4c   :  { %v3919_v54 = vmul.f32 %v5049_v53, %v3903_v31  ;;  %v3928_v55 = vmul.f32 %v4478_v52, %v3920_v13  ;;  %p5056_p0 = scmp.ne.s32.totalorder %s4374_s29, %s5055_s16  ;;  %p5061_p2 = scmp.lt.s32.totalorder %s5055_s16, %s5055_s16 }
0x1f4e   :  { %v3927_v56 = vmul.f32 %v4478_v52, %v3919_v54  ;;  %v3936_v9 = vadd.f32 %v4479_v19, %v3928_v55  ;;  %p5062_p3 = por %p5061_p2, %p5060_p1 }
0x1f50   :  { %v3935_v57 = vadd.f32 %v4479_v19, %v3927_v56  ;;  %v4507_v56 = vld [vmem:[%s5823_s18] ss:$0 sm:$0xff]  ;;  %p5063_p4 = pnand %p5062_p3, %p5056_p0 }
0x1f52   :  { %4914 = vmatprep.mubr.msk.f32.mxu0 %vm80_vm0, %v3935_v57 }
0x1f53   :  { %4915 = vmatmul.mubr.msk.f32.vlgmr.msra.gmra.mxu0 %vm80_vm0, %v3936_v9 }
0x1f54   :  { %4937 = vmatpush3.msra.mxu0 %v4182_v25 }
0x1f55   :  { %4938 = vmatprep.subr.mxu0 %v4181_v26 }
0x1f56   :  { %4939 = vmatpush3.msra.mxu0 %v4181_v26 }
0x1f57   :  { %4940 = vmatprep.subr.mxu0 %v4180_v27 }
0x1f58   :  { %4941 = vmatpush3.msra.mxu0 %v4180_v27 }
0x1f59   :  { %4942 = vmatprep.subr.mxu0 %v4179_v38 }
0x1f5a   :  { %4943 = vmatpush3.msra.mxu0 %v4179_v38 }
0x1f5b   :  { %4947 = vmatprep.subr.mxu0 %v4276_v47 }
0x2013   :  { %v4916_v62 = vpop.f32.mrf.mxu0 }
0x2014   :  { %v4028_v63 = vadd.f32 %v4916_v62, %v4485_v61 }
0x2015   :  { %v4022_v0 = vpop.f32.mrf.mxu0 }
0x2016   :  { %v4023_v1 = vadd.f32 %v4485_v61, %v4022_v0  ;;  %v4032_v12 = vmax.f32 %v4028_v63, 0.0 }
0x2018   :  { %v4031_v2 = vmax.f32 %v4023_v1, 0.0 }
0x201a   :  { %4933 = vmatprep.mubr.msk.f32.mxu1 %vm1992_vm3, %v4031_v2 }
0x201b   :  { %4934 = vmatmul.mubr.msk.f32.vlgmr.msra.gmra.mxu1 %vm1992_vm3, %v4032_v12 }
0x20db   :  { %v4935_v35 = vpop.f32.mrf.mxu1 }
0x20dc   :  { %v4128_v4 = vadd.f32 %v4935_v35, %v4497_v3 }
0x20dd   :  { %v4122_v5 = vpop.f32.mrf.mxu1 }
0x20de   :  { %v4123_v18 = vadd.f32 %v4497_v3, %v4122_v5  ;;  %v4132_v7 = vadd.f32 %v4128_v4, %v3936_v9 }
0x20e0   :  { %v4140_v10 = vsel %vm80_vm0, %v4132_v7, 0.0  ;;  %v4131_v11 = vadd.f32 %v4123_v18, %v3935_v57 }
0x20e1   :  { %4141 = vadd.xlane.f32.xlu0 %v4140_v10 }
0x20e2   :  { %v4137_v15 = vsel %vm80_vm0, %v4131_v11, 0.0 }
0x20e3   :  { %4138 = vadd.xlane.f32.xlu1 %v4137_v15 }
0x216a   :  { %v4142_v33 = vpop.xlane.xlu0 %4141 }
0x216b   :  { %v4144_v17 = vmul.f32 0.03125, %v4142_v33 }
0x216c   :  { %v4139_v16 = vpop.xlane.xlu1 %4138 }
0x216d   :  { %v4146_v8 = vsub.f32 %v4132_v7, %v4144_v17  ;;  %v4143_v6 = vmul.f32 0.03125, %v4139_v16 }
0x216f   :  { %v4145_v20 = vsub.f32 %v4131_v11, %v4143_v6  ;;  %v4148_v21 = vmul.f32 %v4146_v8, %v4146_v8 }
0x2171   :  { %v4152_v22 = vsel %vm80_vm0, %v4148_v21, 0.0  ;;  %v4147_v23 = vmul.f32 %v4145_v20, %v4145_v20 }
0x2172   :  { %4153 = vadd.xlane.f32.xlu0 %v4152_v22 }
0x2173   :  { %v4149_v24 = vsel %vm80_vm0, %v4147_v23, 0.0 }
0x2174   :  { %4150 = vadd.xlane.f32.xlu1 %v4149_v24 }
0x21fb   :  { %v4154_v28 = vpop.xlane.xlu0 %4153 }
0x21fc   :  { %v4156_v31 = vmul.f32 0.03125, %v4154_v28 }
0x21fd   :  { %v4151_v32 = vpop.xlane.xlu1 %4150 }
0x21fe   :  { %v4158_v34 = vadd.f32 1e-05, %v4156_v31  ;;  %v4155_v36 = vmul.f32 0.03125, %v4151_v32 }
0x2200   :  { %5050 = vrsqrt.f32 %v4158_v34  ;;  %v4157_v30 = vadd.f32 1e-05, %v4155_v36 }
0x2202   :  { %5052 = vrsqrt.f32 %v4157_v30 }
0x220d   :  { %v5051_v29 = vpop.eup %5050 }
0x220e   :  { %v4162_v39 = vmul.f32 %v5051_v29, %v4146_v8 }
0x220f   :  { %v5053_v40 = vpop.eup %5052 }
0x2210   :  { %v4161_v41 = vmul.f32 %v5053_v40, %v4145_v20  ;;  %v4170_v42 = vmul.f32 %v4502_v37, %v4162_v39 }
0x2212   :  { %v4169_v44 = vmul.f32 %v4502_v37, %v4161_v41  ;;  %v4178_v46 = vadd.f32 %v4503_v43, %v4170_v42 }
0x2214   :  { %v4177_v45 = vadd.f32 %v4503_v43, %v4169_v44 }
0x2216   :  { %4944 = vmatprep.mubr.msk.f32.mxu0 %vm80_vm0, %v4177_v45 }
0x2217   :  { %4945 = vmatmul.mubr.msk.f32.vlgmr.msra.gmra.mxu0 %vm80_vm0, %v4178_v46 }
0x2218   :  { %4948 = vmatpush3.msra.mxu0 %v4276_v47 }
0x2219   :  { %4949 = vmatprep.subr.mxu0 %v4275_v48 }
0x221a   :  { %4950 = vmatpush3.msra.mxu0 %v4275_v48 }
0x221b   :  { %4951 = vmatprep.subr.mxu0 %v4274_v49 }
0x221c   :  { %4952 = vmatpush3.msra.mxu0 %v4274_v49 }
0x221d   :  { %4953 = vmatprep.subr.mxu0 %v4273_v50 }
0x221e   :  { %4954 = vmatpush3.msra.mxu0 %v4273_v50 }
0x22d7   :  { %v4946_v52 = vpop.f32.mrf.mxu0 }
0x22d8   :  { %v4268_v13 = vadd.f32 %v4946_v52, %v4504_v51 }
0x22d9   :  { %v4262_v53 = vpop.f32.mrf.mxu0 }
0x22da   :  { %v4263_v54 = vadd.f32 %v4504_v51, %v4262_v53  ;;  %v4272_v19 = vmax.f32 %v4268_v13, 0.0 }
0x22dc   :  { %v4271_v55 = vmax.f32 %v4263_v54, 0.0 }
0x22de   :  { %4955 = vmatprep.mubr.msk.f32.mxu0 %vm80_vm0, %v4271_v55 }
0x22df   :  { %4956 = vmatmul.mubr.msk.f32.vlgmr.msra.gmra.mxu0 %vm80_vm0, %v4272_v19 }
0x239f   :  { %v4957_v57 = vpop.f32.mrf.mxu0 }
0x23a0   :  { %v4362_v9 = vadd.f32 %v4957_v57, %v4507_v56 }
0x23a1   :  { %v4356_v58 = vpop.f32.mrf.mxu0 }
0x23a2   :  { %4367 = vst.msk [vmem:[#allocation2 + $0x8] sm:$0xff] %vm4365_vm4, %v4362_v9  ;;  %v4357_v59 = vadd.f32 %v4507_v56, %v4356_v58 }
0x23a4   :  { %4366 = vst.msk [vmem:[#allocation2] sm:$0xff] %vm4365_vm4, %v4357_v59 }
0x23a5   :  { %5066 = shalt.err (!%p5063_p4)
}
0x23a6   :  { %s5091_s30 = smov 128   ;;  %s5092_s1 = smov 8  }
0x23a7   :  { %4379 = dma.vmem_to_hbm [thread:$0]  %s4374_s29, 256, %s5824_s19, [#allocation3], %s5091_s30, %s5091_s30, %s5092_s1  }
0x23a8   :  { %5075 = dma.done.wait [#allocation3], 256  }
0x23a9   :  { %5076 = vsyncadd [#allocation3], 4294967040 }
0x23aa   :  { %4383 = vsyncpa [#allocation3], 1 }

</bundles_post_ra>
